<compile_context>
chip_gen: v6e
topology: v6e:2x2x1
jax: 0.10.0
libtpu: 0.0.40
codegen_flags: <defaults>
</compile_context>

<pallas_src>
import functools

import jax
import jax.numpy as jnp
from jax import lax
from jax.experimental import pallas as pl
from jax.experimental.pallas import tpu as pltpu


# ---------------------------------------------------------------------------
# Pallas kernel: whole MEEM forward (all batch elements) in one invocation.
# ---------------------------------------------------------------------------
def meem_kernel(
    H, W,                       # static spatial dims (closed over)
    x_ref,                      # (N, Cin, H*W)   -- free reshape of NCHW input
    w_in_ref,                   # (hid, Cin)            BN-scale folded
    w_me_ref,                   # (2*wm1, hid, hid)     [0:wm1]=mid convs, [wm1:]=edge convs
    w_out_ref,                  # (Cin, width*hid)      BN-scale folded
    b_hid_ref,                  # (1 + 2*wm1, hid, 1)   [0]=in, [1:1+wm1]=mid, [1+wm1:]=edge
    b_out_ref,                  # (Cin, 1)
    o_ref,                      # (N, Cin, H*W)
    cat_ref,                    # VMEM scratch (width*hid, M): channel-concat slab
):
    N, _, HW = x_ref.shape
    M = N * HW
    hid = w_in_ref.shape[0]
    wm1 = (b_hid_ref.shape[0] - 1) // 2
    f32 = jnp.float32

    # --- boundary masks for the zero-padded 3x3 pool, computed once ----------
    # lane m = n*H*W + h*W + w; image boundaries coincide with h==0 / h==H-1,
    # so the masks also stop cross-image leakage of the rolls.
    lane = lax.broadcasted_iota(jnp.int32, (1, M), 1)
    if (W & (W - 1)) == 0 and (H & (H - 1)) == 0:
        w_pos = lane & (W - 1)
        h_pos = (lane >> (W.bit_length() - 1)) & (H - 1)
    else:
        w_pos = lane % W
        h_pos = (lane // W) % H
    not_top = (h_pos != 0).astype(f32)
    not_bot = (h_pos != (H - 1)).astype(f32)
    not_lft = (w_pos != 0).astype(f32)
    not_rgt = (w_pos != (W - 1)).astype(f32)

    def avgpool3(a):
        # AvgPool2d(3, stride=1, padding=1), count_include_pad=True (divide by 9).
        # Accumulation-chain form keeps at most ~3 (hid, M) temporaries live.
        v = a + pltpu.roll(a, W, axis=1) * not_top          # + a[h-1, w]
        v = v + pltpu.roll(a, M - W, axis=1) * not_bot      # + a[h+1, w]
        o = v + pltpu.roll(v, 1, axis=1) * not_lft          # + v[h, w-1]
        o = o + pltpu.roll(v, M - 1, axis=1) * not_rgt      # + v[h, w+1]
        return o * (1.0 / 9.0)

    def sigmoid(z):
        return 1.0 / (1.0 + jnp.exp(-z))                    # exp -> EUP slot

    def conv_sig(a, wt, b):
        # 1x1 conv (transposed layout, BN scale pre-folded into wt) + bias + sigmoid.
        return sigmoid(jnp.dot(wt, a, preferred_element_type=jnp.float32) + b)

    # --- in_conv: layout change happens here (no wrapper transpose) ----------
    # Per batch element, the sigmoid'd result is stored straight into the first
    # `hid` rows of the concat slab at static, 128-aligned lane offsets.
    for n in range(N):
        z = jnp.dot(w_in_ref[...], x_ref[n].astype(f32),
                    preferred_element_type=jnp.float32)
        cat_ref[0:hid, n * HW:(n + 1) * HW] = sigmoid(z + b_hid_ref[0])
    mid = cat_ref[0:hid, :]                                  # (hid, M)

    # --- width-1 branches: pool -> mid_conv -> EdgeEnhancer ------------------
    for i in range(wm1):
        mid = avgpool3(mid)
        mid = conv_sig(mid, w_me_ref[i], b_hid_ref[1 + i])
        # EdgeEnhancer: edge = sigmoid(BN(conv1x1(mid - pool(mid)))); branch = mid + edge
        edge = mid - avgpool3(mid)
        edge = conv_sig(edge, w_me_ref[wm1 + i], b_hid_ref[1 + wm1 + i])
        cat_ref[(i + 1) * hid:(i + 2) * hid, :] = mid + edge

    # --- out_conv: single K = width*hid matmul over the concat slab ----------
    y = jnp.dot(w_out_ref[...], cat_ref[...], preferred_element_type=jnp.float32)
    y = jnp.maximum(y + b_out_ref[...], 0.0)                 # folded BN bias + ReLU

    # Per-batch lane-slice stores back to (N, Cin, H*W): wrapper only reshapes.
    for n in range(N):
        o_ref[n] = y[:, n * HW:(n + 1) * HW].astype(o_ref.dtype)


# ---------------------------------------------------------------------------
# Wrapper: weight folding/packing only (tiny); no activation transposes.
# ---------------------------------------------------------------------------
def meem_forward(x_nchw, params):
    N, Cin, H, W = x_nchw.shape
    hid = params["w_in"].shape[1]
    wm1 = params["w_mid"].shape[0]
    width = wm1 + 1
    HW = H * W
    M = N * HW

    # Free reshape: NCHW -> (N, Cin, H*W).  The kernel does the rest of the layout.
    x_flat = x_nchw.reshape(N, Cin, HW)

    # Fold BN scale into the transposed conv weights:  s*(W @ a) + b == (s*W) @ a + b.
    w_in = params["w_in"].T * params["s_in"].reshape(hid, 1)                    # (hid, Cin)
    w_mid = jnp.swapaxes(params["w_mid"], 1, 2) * params["s_mid"][..., None]    # (wm1, hid, hid)
    w_ee = jnp.swapaxes(params["w_ee"], 1, 2) * params["s_ee"][..., None]       # (wm1, hid, hid)
    w_me = jnp.concatenate([w_mid, w_ee], axis=0)                               # (2*wm1, hid, hid)
    w_out = params["w_out"].T * params["s_out"].reshape(Cin, 1)                 # (Cin, width*hid)

    b_hid = jnp.concatenate(
        [params["b_in"].reshape(1, hid), params["b_mid"], params["b_ee"]], axis=0
    )[..., None]                                                                # (1+2*wm1, hid, 1)
    b_out = params["b_out"].reshape(Cin, 1)

    vmem = pl.BlockSpec(memory_space=pltpu.MemorySpace.VMEM)

    out_flat = pl.pallas_call(
        functools.partial(meem_kernel, H, W),
        out_shape=jax.ShapeDtypeStruct((N, Cin, HW), x_nchw.dtype),
        in_specs=[vmem] * 6,
        out_specs=vmem,
        scratch_shapes=[pltpu.VMEM((width * hid, M), jnp.float32)],
    )(x_flat, w_in, w_me, w_out, b_hid, b_out)

    # Free reshape back to PyTorch NCHW.
    return out_flat.reshape(N, Cin, H, W)


# ---------------------------------------------------------------------------
# Pure-JAX reference (NCHW, independent of the kernel's pooling implementation).
# ---------------------------------------------------------------------------
def _avgpool3_ref(x):  # NCHW
    s = lax.reduce_window(
        x, 0.0, lax.add,
        window_dimensions=(1, 1, 3, 3),
        window_strides=(1, 1, 1, 1),
        padding=((0, 0), (0, 0), (1, 1), (1, 1)))
    return s / 9.0


def _conv_bn_sig_ref(x, w, s, b):  # x: NCHW, w: (Cin, Cout), s/b: (Cout,)
    y = jnp.einsum("nchw,cd->ndhw", x, w)
    return jax.nn.sigmoid(y * s[None, :, None, None] + b[None, :, None, None])


def meem_reference(x, params):
    wm1 = params["w_mid"].shape[0]
    mid = _conv_bn_sig_ref(x, params["w_in"], params["s_in"][0], params["b_in"][0])
    outs = [mid]
    for i in range(wm1):
        mid = _avgpool3_ref(mid)
        mid = _conv_bn_sig_ref(mid, params["w_mid"][i],
                               params["s_mid"][i], params["b_mid"][i])
        edge = mid - _avgpool3_ref(mid)
        edge = _conv_bn_sig_ref(edge, params["w_ee"][i],
                                params["s_ee"][i], params["b_ee"][i])
        outs.append(mid + edge)
    cat = jnp.concatenate(outs, axis=1)
    y = jnp.einsum("nchw,cd->ndhw", cat, params["w_out"])
    y = (y * params["s_out"][0][None, :, None, None]
         + params["b_out"][0][None, :, None, None])
    return jnp.maximum(y, 0.0)


# ---------------------------------------------------------------------------
# Main
# ---------------------------------------------------------------------------
if __name__ == "__main__":
    N, Cin, H, W = 2, 4, 16, 16
    hid, width = 32, 4
    wm1 = width - 1

    key = jax.random.PRNGKey(0)
    keys = jax.random.split(key, 16)

    # Deterministic synthetic parameters (BN folded into per-channel scale/bias).
    params = {
        "w_in":  0.5 * jax.random.normal(keys[0], (Cin, hid), jnp.float32),
        "s_in":  1.0 + 0.1 * jax.random.normal(keys[1], (1, hid), jnp.float32),
        "b_in":  0.1 * jax.random.normal(keys[2], (1, hid), jnp.float32),
        "w_mid": 0.5 * jax.random.normal(keys[3], (wm1, hid, hid), jnp.float32),
        "s_mid": 1.0 + 0.1 * jax.random.normal(keys[4], (wm1, hid), jnp.float32),
        "b_mid": 0.1 * jax.random.normal(keys[5], (wm1, hid), jnp.float32),
        "w_ee":  0.5 * jax.random.normal(keys[6], (wm1, hid, hid), jnp.float32),
        "s_ee":  1.0 + 0.1 * jax.random.normal(keys[7], (wm1, hid), jnp.float32),
        "b_ee":  0.1 * jax.random.normal(keys[8], (wm1, hid), jnp.float32),
        "w_out": 0.5 * jax.random.normal(keys[9], (hid * width, Cin), jnp.float32),
        "s_out": 1.0 + 0.1 * jax.random.normal(keys[10], (1, Cin), jnp.float32),
        "b_out": 0.1 * jax.random.normal(keys[11], (1, Cin), jnp.float32),
    }

    # Input in PyTorch NCHW layout: (2, 4, 16, 16).
    x = jax.random.normal(keys[12], (N, Cin, H, W), jnp.float32)

    meem_jit = jax.jit(meem_forward)
    out = meem_jit(x, params)
    out = jax.block_until_ready(out)

    ref = meem_reference(x, params)
    assert out.shape == (N, Cin, H, W)
    max_err = float(jnp.max(jnp.abs(out - ref)))
    assert jnp.allclose(out, ref, atol=1e-3, rtol=1e-3), max_err

    print("KERNEL_OK")
</pallas_src>

<mosaic_0001>
module attributes {stable_mosaic.version = 11 : i64} {
  func.func @meem_kernel(%arg0: memref<2x4x256xf32, #tpu.memory_space<vmem>>, %arg1: memref<32x4xf32, #tpu.memory_space<vmem>>, %arg2: memref<6x32x32xf32, #tpu.memory_space<vmem>>, %arg3: memref<4x128xf32, #tpu.memory_space<vmem>>, %arg4: memref<7x32x1xf32, #tpu.memory_space<vmem>>, %arg5: memref<4x1xf32, #tpu.memory_space<vmem>>, %arg6: memref<2x4x256xf32, #tpu.memory_space<vmem>>, %arg7: memref<128x512xf32, #tpu.memory_space<vmem>>) attributes {dimension_semantics = [], scalar_prefetch = 0 : i64, scratch_operands = 1 : i64, tpu.core_type = #tpu.core_type<tc>} {
    %0 = tpu.iota {dimensions = array<i32: 1>} : vector<1x512xi32>
    %c15_i32 = arith.constant 15 : i32
    %1 = vector.broadcast %c15_i32 : i32 to vector<1x512xi32>
    %2 = arith.andi %0, %1 : vector<1x512xi32>
    %c4_i32 = arith.constant 4 : i32
    %3 = vector.broadcast %c4_i32 : i32 to vector<1x512xi32>
    %4 = arith.shrsi %0, %3 : vector<1x512xi32>
    %c15_i32_0 = arith.constant 15 : i32
    %5 = vector.broadcast %c15_i32_0 : i32 to vector<1x512xi32>
    %6 = arith.andi %4, %5 : vector<1x512xi32>
    %c0_i32 = arith.constant 0 : i32
    %7 = vector.broadcast %c0_i32 : i32 to vector<1x512xi32>
    %8 = arith.cmpi ne, %6, %7 : vector<1x512xi32>
    %9 = arith.extui %8 : vector<1x512xi1> to vector<1x512xi32>
    %10 = arith.sitofp %9 : vector<1x512xi32> to vector<1x512xf32>
    %c15_i32_1 = arith.constant 15 : i32
    %11 = vector.broadcast %c15_i32_1 : i32 to vector<1x512xi32>
    %12 = arith.cmpi ne, %6, %11 : vector<1x512xi32>
    %13 = arith.extui %12 : vector<1x512xi1> to vector<1x512xi32>
    %14 = arith.sitofp %13 : vector<1x512xi32> to vector<1x512xf32>
    %c0_i32_2 = arith.constant 0 : i32
    %15 = vector.broadcast %c0_i32_2 : i32 to vector<1x512xi32>
    %16 = arith.cmpi ne, %2, %15 : vector<1x512xi32>
    %17 = arith.extui %16 : vector<1x512xi1> to vector<1x512xi32>
    %18 = arith.sitofp %17 : vector<1x512xi32> to vector<1x512xf32>
    %c15_i32_3 = arith.constant 15 : i32
    %19 = vector.broadcast %c15_i32_3 : i32 to vector<1x512xi32>
    %20 = arith.cmpi ne, %2, %19 : vector<1x512xi32>
    %21 = arith.extui %20 : vector<1x512xi1> to vector<1x512xi32>
    %22 = arith.sitofp %21 : vector<1x512xi32> to vector<1x512xf32>
    %c0 = arith.constant 0 : index
    %c0_4 = arith.constant 0 : index
    %23 = vector.load %arg1[%c0, %c0_4] : memref<32x4xf32, #tpu.memory_space<vmem>>, vector<32x4xf32>
    %c0_5 = arith.constant 0 : index
    %c0_6 = arith.constant 0 : index
    %c0_7 = arith.constant 0 : index
    %24 = vector.load %arg0[%c0_5, %c0_6, %c0_7] : memref<2x4x256xf32, #tpu.memory_space<vmem>>, vector<1x4x256xf32>
    %25 = vector.shape_cast %24 : vector<1x4x256xf32> to vector<4x256xf32>
    %cst = arith.constant dense<0.000000e+00> : vector<32x256xf32>
    %26 = tpu.matmul %23, %25, %cst {dimension_numbers = #tpu.dot_dimension_numbers<[1], [0], [0], [1], [0, 0, 1, 1], [], []>} : vector<32x4xf32>, vector<4x256xf32>, vector<32x256xf32> -> vector<32x256xf32>
    %c0_8 = arith.constant 0 : index
    %c0_9 = arith.constant 0 : index
    %c0_10 = arith.constant 0 : index
    %27 = vector.load %arg4[%c0_8, %c0_9, %c0_10] : memref<7x32x1xf32, #tpu.memory_space<vmem>>, vector<1x32x1xf32>
    %28 = vector.shape_cast %27 : vector<1x32x1xf32> to vector<32x1xf32>
    %29 = vector.broadcast %28 : vector<32x1xf32> to vector<32x256xf32>
    %30 = arith.addf %26, %29 : vector<32x256xf32>
    %cst_11 = arith.constant 0.000000e+00 : f32
    %31 = vector.broadcast %cst_11 : f32 to vector<32x256xf32>
    %32 = arith.subf %31, %30 : vector<32x256xf32>
    %33 = math.exp %32 : vector<32x256xf32>
    %cst_12 = arith.constant 1.000000e+00 : f32
    %34 = vector.broadcast %cst_12 : f32 to vector<32x256xf32>
    %35 = arith.addf %34, %33 : vector<32x256xf32>
    %cst_13 = arith.constant 1.000000e+00 : f32
    %36 = vector.broadcast %cst_13 : f32 to vector<32x256xf32>
    %37 = arith.divf %36, %35 : vector<32x256xf32>
    %c0_14 = arith.constant 0 : index
    %c0_15 = arith.constant 0 : index
    %38 = vector.load %arg7[%c0_14, %c0_15] : memref<128x512xf32, #tpu.memory_space<vmem>>, vector<32x256xf32>
    tpu.vector_store %arg7[%c0_14, %c0_15], %37 {strides = array<i32>} : memref<128x512xf32, #tpu.memory_space<vmem>>, vector<32x256xf32>,
    %c0_16 = arith.constant 0 : index
    %c0_17 = arith.constant 0 : index
    %39 = vector.load %arg1[%c0_16, %c0_17] : memref<32x4xf32, #tpu.memory_space<vmem>>, vector<32x4xf32>
    %c1 = arith.constant 1 : index
    %c0_18 = arith.constant 0 : index
    %c0_19 = arith.constant 0 : index
    %40 = vector.load %arg0[%c1, %c0_18, %c0_19] : memref<2x4x256xf32, #tpu.memory_space<vmem>>, vector<1x4x256xf32>
    %41 = vector.shape_cast %40 : vector<1x4x256xf32> to vector<4x256xf32>
    %cst_20 = arith.constant dense<0.000000e+00> : vector<32x256xf32>
    %42 = tpu.matmul %39, %41, %cst_20 {dimension_numbers = #tpu.dot_dimension_numbers<[1], [0], [0], [1], [0, 0, 1, 1], [], []>} : vector<32x4xf32>, vector<4x256xf32>, vector<32x256xf32> -> vector<32x256xf32>
    %c0_21 = arith.constant 0 : index
    %c0_22 = arith.constant 0 : index
    %c0_23 = arith.constant 0 : index
    %43 = vector.load %arg4[%c0_21, %c0_22, %c0_23] : memref<7x32x1xf32, #tpu.memory_space<vmem>>, vector<1x32x1xf32>
    %44 = vector.shape_cast %43 : vector<1x32x1xf32> to vector<32x1xf32>
    %45 = vector.broadcast %44 : vector<32x1xf32> to vector<32x256xf32>
    %46 = arith.addf %42, %45 : vector<32x256xf32>
    %cst_24 = arith.constant 0.000000e+00 : f32
    %47 = vector.broadcast %cst_24 : f32 to vector<32x256xf32>
    %48 = arith.subf %47, %46 : vector<32x256xf32>
    %49 = math.exp %48 : vector<32x256xf32>
    %cst_25 = arith.constant 1.000000e+00 : f32
    %50 = vector.broadcast %cst_25 : f32 to vector<32x256xf32>
    %51 = arith.addf %50, %49 : vector<32x256xf32>
    %cst_26 = arith.constant 1.000000e+00 : f32
    %52 = vector.broadcast %cst_26 : f32 to vector<32x256xf32>
    %53 = arith.divf %52, %51 : vector<32x256xf32>
    %c0_27 = arith.constant 0 : index
    %c256 = arith.constant 256 : index
    %54 = vector.load %arg7[%c0_27, %c256] : memref<128x512xf32, #tpu.memory_space<vmem>>, vector<32x256xf32>
    tpu.vector_store %arg7[%c0_27, %c256], %53 {strides = array<i32>} : memref<128x512xf32, #tpu.memory_space<vmem>>, vector<32x256xf32>,
    %c0_28 = arith.constant 0 : index
    %c0_29 = arith.constant 0 : index
    %55 = vector.load %arg7[%c0_28, %c0_29] : memref<128x512xf32, #tpu.memory_space<vmem>>, vector<32x512xf32>
    %c16_i32 = arith.constant 16 : i32
    %56 = tpu.dynamic_rotate %55 by %c16_i32 dim 1 : vector<32x512xf32>, i32 -> vector<32x512xf32>
    %57 = vector.broadcast %10 : vector<1x512xf32> to vector<32x512xf32>
    %58 = arith.mulf %56, %57 : vector<32x512xf32>
    %59 = arith.addf %55, %58 : vector<32x512xf32>
    %c496_i32 = arith.constant 496 : i32
    %60 = tpu.dynamic_rotate %55 by %c496_i32 dim 1 : vector<32x512xf32>, i32 -> vector<32x512xf32>
    %61 = vector.broadcast %14 : vector<1x512xf32> to vector<32x512xf32>
    %62 = arith.mulf %60, %61 : vector<32x512xf32>
    %63 = arith.addf %59, %62 : vector<32x512xf32>
    %c1_i32 = arith.constant 1 : i32
    %64 = tpu.dynamic_rotate %63 by %c1_i32 dim 1 : vector<32x512xf32>, i32 -> vector<32x512xf32>
    %65 = vector.broadcast %18 : vector<1x512xf32> to vector<32x512xf32>
    %66 = arith.mulf %64, %65 : vector<32x512xf32>
    %67 = arith.addf %63, %66 : vector<32x512xf32>
    %c511_i32 = arith.constant 511 : i32
    %68 = tpu.dynamic_rotate %63 by %c511_i32 dim 1 : vector<32x512xf32>, i32 -> vector<32x512xf32>
    %69 = vector.broadcast %22 : vector<1x512xf32> to vector<32x512xf32>
    %70 = arith.mulf %68, %69 : vector<32x512xf32>
    %71 = arith.addf %67, %70 : vector<32x512xf32>
    %cst_30 = arith.constant 0.111111112 : f32
    %72 = vector.broadcast %cst_30 : f32 to vector<32x512xf32>
    %73 = arith.mulf %71, %72 : vector<32x512xf32>
    %c0_31 = arith.constant 0 : index
    %c0_32 = arith.constant 0 : index
    %c0_33 = arith.constant 0 : index
    %74 = vector.load %arg2[%c0_31, %c0_32, %c0_33] : memref<6x32x32xf32, #tpu.memory_space<vmem>>, vector<1x32x32xf32>
    %75 = vector.shape_cast %74 : vector<1x32x32xf32> to vector<32x32xf32>
    %c1_34 = arith.constant 1 : index
    %c0_35 = arith.constant 0 : index
    %c0_36 = arith.constant 0 : index
    %76 = vector.load %arg4[%c1_34, %c0_35, %c0_36] : memref<7x32x1xf32, #tpu.memory_space<vmem>>, vector<1x32x1xf32>
    %77 = vector.shape_cast %76 : vector<1x32x1xf32> to vector<32x1xf32>
    %cst_37 = arith.constant dense<0.000000e+00> : vector<32x512xf32>
    %78 = tpu.matmul %75, %73, %cst_37 {dimension_numbers = #tpu.dot_dimension_numbers<[1], [0], [0], [1], [0, 0, 1, 1], [], []>} : vector<32x32xf32>, vector<32x512xf32>, vector<32x512xf32> -> vector<32x512xf32>
    %79 = vector.broadcast %77 : vector<32x1xf32> to vector<32x512xf32>
    %80 = arith.addf %78, %79 : vector<32x512xf32>
    %cst_38 = arith.constant 0.000000e+00 : f32
    %81 = vector.broadcast %cst_38 : f32 to vector<32x512xf32>
    %82 = arith.subf %81, %80 : vector<32x512xf32>
    %83 = math.exp %82 : vector<32x512xf32>
    %cst_39 = arith.constant 1.000000e+00 : f32
    %84 = vector.broadcast %cst_39 : f32 to vector<32x512xf32>
    %85 = arith.addf %84, %83 : vector<32x512xf32>
    %cst_40 = arith.constant 1.000000e+00 : f32
    %86 = vector.broadcast %cst_40 : f32 to vector<32x512xf32>
    %87 = arith.divf %86, %85 : vector<32x512xf32>
    %c16_i32_41 = arith.constant 16 : i32
    %88 = tpu.dynamic_rotate %87 by %c16_i32_41 dim 1 : vector<32x512xf32>, i32 -> vector<32x512xf32>
    %89 = vector.broadcast %10 : vector<1x512xf32> to vector<32x512xf32>
    %90 = arith.mulf %88, %89 : vector<32x512xf32>
    %91 = arith.addf %87, %90 : vector<32x512xf32>
    %c496_i32_42 = arith.constant 496 : i32
    %92 = tpu.dynamic_rotate %87 by %c496_i32_42 dim 1 : vector<32x512xf32>, i32 -> vector<32x512xf32>
    %93 = vector.broadcast %14 : vector<1x512xf32> to vector<32x512xf32>
    %94 = arith.mulf %92, %93 : vector<32x512xf32>
    %95 = arith.addf %91, %94 : vector<32x512xf32>
    %c1_i32_43 = arith.constant 1 : i32
    %96 = tpu.dynamic_rotate %95 by %c1_i32_43 dim 1 : vector<32x512xf32>, i32 -> vector<32x512xf32>
    %97 = vector.broadcast %18 : vector<1x512xf32> to vector<32x512xf32>
    %98 = arith.mulf %96, %97 : vector<32x512xf32>
    %99 = arith.addf %95, %98 : vector<32x512xf32>
    %c511_i32_44 = arith.constant 511 : i32
    %100 = tpu.dynamic_rotate %95 by %c511_i32_44 dim 1 : vector<32x512xf32>, i32 -> vector<32x512xf32>
    %101 = vector.broadcast %22 : vector<1x512xf32> to vector<32x512xf32>
    %102 = arith.mulf %100, %101 : vector<32x512xf32>
    %103 = arith.addf %99, %102 : vector<32x512xf32>
    %cst_45 = arith.constant 0.111111112 : f32
    %104 = vector.broadcast %cst_45 : f32 to vector<32x512xf32>
    %105 = arith.mulf %103, %104 : vector<32x512xf32>
    %106 = arith.subf %87, %105 : vector<32x512xf32>
    %c3 = arith.constant 3 : index
    %c0_46 = arith.constant 0 : index
    %c0_47 = arith.constant 0 : index
    %107 = vector.load %arg2[%c3, %c0_46, %c0_47] : memref<6x32x32xf32, #tpu.memory_space<vmem>>, vector<1x32x32xf32>
    %108 = vector.shape_cast %107 : vector<1x32x32xf32> to vector<32x32xf32>
    %c4 = arith.constant 4 : index
    %c0_48 = arith.constant 0 : index
    %c0_49 = arith.constant 0 : index
    %109 = vector.load %arg4[%c4, %c0_48, %c0_49] : memref<7x32x1xf32, #tpu.memory_space<vmem>>, vector<1x32x1xf32>
    %110 = vector.shape_cast %109 : vector<1x32x1xf32> to vector<32x1xf32>
    %cst_50 = arith.constant dense<0.000000e+00> : vector<32x512xf32>
    %111 = tpu.matmul %108, %106, %cst_50 {dimension_numbers = #tpu.dot_dimension_numbers<[1], [0], [0], [1], [0, 0, 1, 1], [], []>} : vector<32x32xf32>, vector<32x512xf32>, vector<32x512xf32> -> vector<32x512xf32>
    %112 = vector.broadcast %110 : vector<32x1xf32> to vector<32x512xf32>
    %113 = arith.addf %111, %112 : vector<32x512xf32>
    %cst_51 = arith.constant 0.000000e+00 : f32
    %114 = vector.broadcast %cst_51 : f32 to vector<32x512xf32>
    %115 = arith.subf %114, %113 : vector<32x512xf32>
    %116 = math.exp %115 : vector<32x512xf32>
    %cst_52 = arith.constant 1.000000e+00 : f32
    %117 = vector.broadcast %cst_52 : f32 to vector<32x512xf32>
    %118 = arith.addf %117, %116 : vector<32x512xf32>
    %cst_53 = arith.constant 1.000000e+00 : f32
    %119 = vector.broadcast %cst_53 : f32 to vector<32x512xf32>
    %120 = arith.divf %119, %118 : vector<32x512xf32>
    %121 = arith.addf %87, %120 : vector<32x512xf32>
    %c32 = arith.constant 32 : index
    %c0_54 = arith.constant 0 : index
    %122 = vector.load %arg7[%c32, %c0_54] : memref<128x512xf32, #tpu.memory_space<vmem>>, vector<32x512xf32>
    tpu.vector_store %arg7[%c32, %c0_54], %121 {strides = array<i32>} : memref<128x512xf32, #tpu.memory_space<vmem>>, vector<32x512xf32>,
    %c16_i32_55 = arith.constant 16 : i32
    %123 = tpu.dynamic_rotate %87 by %c16_i32_55 dim 1 : vector<32x512xf32>, i32 -> vector<32x512xf32>
    %124 = vector.broadcast %10 : vector<1x512xf32> to vector<32x512xf32>
    %125 = arith.mulf %123, %124 : vector<32x512xf32>
    %126 = arith.addf %87, %125 : vector<32x512xf32>
    %c496_i32_56 = arith.constant 496 : i32
    %127 = tpu.dynamic_rotate %87 by %c496_i32_56 dim 1 : vector<32x512xf32>, i32 -> vector<32x512xf32>
    %128 = vector.broadcast %14 : vector<1x512xf32> to vector<32x512xf32>
    %129 = arith.mulf %127, %128 : vector<32x512xf32>
    %130 = arith.addf %126, %129 : vector<32x512xf32>
    %c1_i32_57 = arith.constant 1 : i32
    %131 = tpu.dynamic_rotate %130 by %c1_i32_57 dim 1 : vector<32x512xf32>, i32 -> vector<32x512xf32>
    %132 = vector.broadcast %18 : vector<1x512xf32> to vector<32x512xf32>
    %133 = arith.mulf %131, %132 : vector<32x512xf32>
    %134 = arith.addf %130, %133 : vector<32x512xf32>
    %c511_i32_58 = arith.constant 511 : i32
    %135 = tpu.dynamic_rotate %130 by %c511_i32_58 dim 1 : vector<32x512xf32>, i32 -> vector<32x512xf32>
    %136 = vector.broadcast %22 : vector<1x512xf32> to vector<32x512xf32>
    %137 = arith.mulf %135, %136 : vector<32x512xf32>
    %138 = arith.addf %134, %137 : vector<32x512xf32>
    %cst_59 = arith.constant 0.111111112 : f32
    %139 = vector.broadcast %cst_59 : f32 to vector<32x512xf32>
    %140 = arith.mulf %138, %139 : vector<32x512xf32>
    %c1_60 = arith.constant 1 : index
    %c0_61 = arith.constant 0 : index
    %c0_62 = arith.constant 0 : index
    %141 = vector.load %arg2[%c1_60, %c0_61, %c0_62] : memref<6x32x32xf32, #tpu.memory_space<vmem>>, vector<1x32x32xf32>
    %142 = vector.shape_cast %141 : vector<1x32x32xf32> to vector<32x32xf32>
    %c2 = arith.constant 2 : index
    %c0_63 = arith.constant 0 : index
    %c0_64 = arith.constant 0 : index
    %143 = vector.load %arg4[%c2, %c0_63, %c0_64] : memref<7x32x1xf32, #tpu.memory_space<vmem>>, vector<1x32x1xf32>
    %144 = vector.shape_cast %143 : vector<1x32x1xf32> to vector<32x1xf32>
    %cst_65 = arith.constant dense<0.000000e+00> : vector<32x512xf32>
    %145 = tpu.matmul %142, %140, %cst_65 {dimension_numbers = #tpu.dot_dimension_numbers<[1], [0], [0], [1], [0, 0, 1, 1], [], []>} : vector<32x32xf32>, vector<32x512xf32>, vector<32x512xf32> -> vector<32x512xf32>
    %146 = vector.broadcast %144 : vector<32x1xf32> to vector<32x512xf32>
    %147 = arith.addf %145, %146 : vector<32x512xf32>
    %cst_66 = arith.constant 0.000000e+00 : f32
    %148 = vector.broadcast %cst_66 : f32 to vector<32x512xf32>
    %149 = arith.subf %148, %147 : vector<32x512xf32>
    %150 = math.exp %149 : vector<32x512xf32>
    %cst_67 = arith.constant 1.000000e+00 : f32
    %151 = vector.broadcast %cst_67 : f32 to vector<32x512xf32>
    %152 = arith.addf %151, %150 : vector<32x512xf32>
    %cst_68 = arith.constant 1.000000e+00 : f32
    %153 = vector.broadcast %cst_68 : f32 to vector<32x512xf32>
    %154 = arith.divf %153, %152 : vector<32x512xf32>
    %c16_i32_69 = arith.constant 16 : i32
    %155 = tpu.dynamic_rotate %154 by %c16_i32_69 dim 1 : vector<32x512xf32>, i32 -> vector<32x512xf32>
    %156 = vector.broadcast %10 : vector<1x512xf32> to vector<32x512xf32>
    %157 = arith.mulf %155, %156 : vector<32x512xf32>
    %158 = arith.addf %154, %157 : vector<32x512xf32>
    %c496_i32_70 = arith.constant 496 : i32
    %159 = tpu.dynamic_rotate %154 by %c496_i32_70 dim 1 : vector<32x512xf32>, i32 -> vector<32x512xf32>
    %160 = vector.broadcast %14 : vector<1x512xf32> to vector<32x512xf32>
    %161 = arith.mulf %159, %160 : vector<32x512xf32>
    %162 = arith.addf %158, %161 : vector<32x512xf32>
    %c1_i32_71 = arith.constant 1 : i32
    %163 = tpu.dynamic_rotate %162 by %c1_i32_71 dim 1 : vector<32x512xf32>, i32 -> vector<32x512xf32>
    %164 = vector.broadcast %18 : vector<1x512xf32> to vector<32x512xf32>
    %165 = arith.mulf %163, %164 : vector<32x512xf32>
    %166 = arith.addf %162, %165 : vector<32x512xf32>
    %c511_i32_72 = arith.constant 511 : i32
    %167 = tpu.dynamic_rotate %162 by %c511_i32_72 dim 1 : vector<32x512xf32>, i32 -> vector<32x512xf32>
    %168 = vector.broadcast %22 : vector<1x512xf32> to vector<32x512xf32>
    %169 = arith.mulf %167, %168 : vector<32x512xf32>
    %170 = arith.addf %166, %169 : vector<32x512xf32>
    %cst_73 = arith.constant 0.111111112 : f32
    %171 = vector.broadcast %cst_73 : f32 to vector<32x512xf32>
    %172 = arith.mulf %170, %171 : vector<32x512xf32>
    %173 = arith.subf %154, %172 : vector<32x512xf32>
    %c4_74 = arith.constant 4 : index
    %c0_75 = arith.constant 0 : index
    %c0_76 = arith.constant 0 : index
    %174 = vector.load %arg2[%c4_74, %c0_75, %c0_76] : memref<6x32x32xf32, #tpu.memory_space<vmem>>, vector<1x32x32xf32>
    %175 = vector.shape_cast %174 : vector<1x32x32xf32> to vector<32x32xf32>
    %c5 = arith.constant 5 : index
    %c0_77 = arith.constant 0 : index
    %c0_78 = arith.constant 0 : index
    %176 = vector.load %arg4[%c5, %c0_77, %c0_78] : memref<7x32x1xf32, #tpu.memory_space<vmem>>, vector<1x32x1xf32>
    %177 = vector.shape_cast %176 : vector<1x32x1xf32> to vector<32x1xf32>
    %cst_79 = arith.constant dense<0.000000e+00> : vector<32x512xf32>
    %178 = tpu.matmul %175, %173, %cst_79 {dimension_numbers = #tpu.dot_dimension_numbers<[1], [0], [0], [1], [0, 0, 1, 1], [], []>} : vector<32x32xf32>, vector<32x512xf32>, vector<32x512xf32> -> vector<32x512xf32>
    %179 = vector.broadcast %177 : vector<32x1xf32> to vector<32x512xf32>
    %180 = arith.addf %178, %179 : vector<32x512xf32>
    %cst_80 = arith.constant 0.000000e+00 : f32
    %181 = vector.broadcast %cst_80 : f32 to vector<32x512xf32>
    %182 = arith.subf %181, %180 : vector<32x512xf32>
    %183 = math.exp %182 : vector<32x512xf32>
    %cst_81 = arith.constant 1.000000e+00 : f32
    %184 = vector.broadcast %cst_81 : f32 to vector<32x512xf32>
    %185 = arith.addf %184, %183 : vector<32x512xf32>
    %cst_82 = arith.constant 1.000000e+00 : f32
    %186 = vector.broadcast %cst_82 : f32 to vector<32x512xf32>
    %187 = arith.divf %186, %185 : vector<32x512xf32>
    %188 = arith.addf %154, %187 : vector<32x512xf32>
    %c64 = arith.constant 64 : index
    %c0_83 = arith.constant 0 : index
    %189 = vector.load %arg7[%c64, %c0_83] : memref<128x512xf32, #tpu.memory_space<vmem>>, vector<32x512xf32>
    tpu.vector_store %arg7[%c64, %c0_83], %188 {strides = array<i32>} : memref<128x512xf32, #tpu.memory_space<vmem>>, vector<32x512xf32>,
    %c16_i32_84 = arith.constant 16 : i32
    %190 = tpu.dynamic_rotate %154 by %c16_i32_84 dim 1 : vector<32x512xf32>, i32 -> vector<32x512xf32>
    %191 = vector.broadcast %10 : vector<1x512xf32> to vector<32x512xf32>
    %192 = arith.mulf %190, %191 : vector<32x512xf32>
    %193 = arith.addf %154, %192 : vector<32x512xf32>
    %c496_i32_85 = arith.constant 496 : i32
    %194 = tpu.dynamic_rotate %154 by %c496_i32_85 dim 1 : vector<32x512xf32>, i32 -> vector<32x512xf32>
    %195 = vector.broadcast %14 : vector<1x512xf32> to vector<32x512xf32>
    %196 = arith.mulf %194, %195 : vector<32x512xf32>
    %197 = arith.addf %193, %196 : vector<32x512xf32>
    %c1_i32_86 = arith.constant 1 : i32
    %198 = tpu.dynamic_rotate %197 by %c1_i32_86 dim 1 : vector<32x512xf32>, i32 -> vector<32x512xf32>
    %199 = vector.broadcast %18 : vector<1x512xf32> to vector<32x512xf32>
    %200 = arith.mulf %198, %199 : vector<32x512xf32>
    %201 = arith.addf %197, %200 : vector<32x512xf32>
    %c511_i32_87 = arith.constant 511 : i32
    %202 = tpu.dynamic_rotate %197 by %c511_i32_87 dim 1 : vector<32x512xf32>, i32 -> vector<32x512xf32>
    %203 = vector.broadcast %22 : vector<1x512xf32> to vector<32x512xf32>
    %204 = arith.mulf %202, %203 : vector<32x512xf32>
    %205 = arith.addf %201, %204 : vector<32x512xf32>
    %cst_88 = arith.constant 0.111111112 : f32
    %206 = vector.broadcast %cst_88 : f32 to vector<32x512xf32>
    %207 = arith.mulf %205, %206 : vector<32x512xf32>
    %c2_89 = arith.constant 2 : index
    %c0_90 = arith.constant 0 : index
    %c0_91 = arith.constant 0 : index
    %208 = vector.load %arg2[%c2_89, %c0_90, %c0_91] : memref<6x32x32xf32, #tpu.memory_space<vmem>>, vector<1x32x32xf32>
    %209 = vector.shape_cast %208 : vector<1x32x32xf32> to vector<32x32xf32>
    %c3_92 = arith.constant 3 : index
    %c0_93 = arith.constant 0 : index
    %c0_94 = arith.constant 0 : index
    %210 = vector.load %arg4[%c3_92, %c0_93, %c0_94] : memref<7x32x1xf32, #tpu.memory_space<vmem>>, vector<1x32x1xf32>
    %211 = vector.shape_cast %210 : vector<1x32x1xf32> to vector<32x1xf32>
    %cst_95 = arith.constant dense<0.000000e+00> : vector<32x512xf32>
    %212 = tpu.matmul %209, %207, %cst_95 {dimension_numbers = #tpu.dot_dimension_numbers<[1], [0], [0], [1], [0, 0, 1, 1], [], []>} : vector<32x32xf32>, vector<32x512xf32>, vector<32x512xf32> -> vector<32x512xf32>
    %213 = vector.broadcast %211 : vector<32x1xf32> to vector<32x512xf32>
    %214 = arith.addf %212, %213 : vector<32x512xf32>
    %cst_96 = arith.constant 0.000000e+00 : f32
    %215 = vector.broadcast %cst_96 : f32 to vector<32x512xf32>
    %216 = arith.subf %215, %214 : vector<32x512xf32>
    %217 = math.exp %216 : vector<32x512xf32>
    %cst_97 = arith.constant 1.000000e+00 : f32
    %218 = vector.broadcast %cst_97 : f32 to vector<32x512xf32>
    %219 = arith.addf %218, %217 : vector<32x512xf32>
    %cst_98 = arith.constant 1.000000e+00 : f32
    %220 = vector.broadcast %cst_98 : f32 to vector<32x512xf32>
    %221 = arith.divf %220, %219 : vector<32x512xf32>
    %c16_i32_99 = arith.constant 16 : i32
    %222 = tpu.dynamic_rotate %221 by %c16_i32_99 dim 1 : vector<32x512xf32>, i32 -> vector<32x512xf32>
    %223 = vector.broadcast %10 : vector<1x512xf32> to vector<32x512xf32>
    %224 = arith.mulf %222, %223 : vector<32x512xf32>
    %225 = arith.addf %221, %224 : vector<32x512xf32>
    %c496_i32_100 = arith.constant 496 : i32
    %226 = tpu.dynamic_rotate %221 by %c496_i32_100 dim 1 : vector<32x512xf32>, i32 -> vector<32x512xf32>
    %227 = vector.broadcast %14 : vector<1x512xf32> to vector<32x512xf32>
    %228 = arith.mulf %226, %227 : vector<32x512xf32>
    %229 = arith.addf %225, %228 : vector<32x512xf32>
    %c1_i32_101 = arith.constant 1 : i32
    %230 = tpu.dynamic_rotate %229 by %c1_i32_101 dim 1 : vector<32x512xf32>, i32 -> vector<32x512xf32>
    %231 = vector.broadcast %18 : vector<1x512xf32> to vector<32x512xf32>
    %232 = arith.mulf %230, %231 : vector<32x512xf32>
    %233 = arith.addf %229, %232 : vector<32x512xf32>
    %c511_i32_102 = arith.constant 511 : i32
    %234 = tpu.dynamic_rotate %229 by %c511_i32_102 dim 1 : vector<32x512xf32>, i32 -> vector<32x512xf32>
    %235 = vector.broadcast %22 : vector<1x512xf32> to vector<32x512xf32>
    %236 = arith.mulf %234, %235 : vector<32x512xf32>
    %237 = arith.addf %233, %236 : vector<32x512xf32>
    %cst_103 = arith.constant 0.111111112 : f32
    %238 = vector.broadcast %cst_103 : f32 to vector<32x512xf32>
    %239 = arith.mulf %237, %238 : vector<32x512xf32>
    %240 = arith.subf %221, %239 : vector<32x512xf32>
    %c5_104 = arith.constant 5 : index
    %c0_105 = arith.constant 0 : index
    %c0_106 = arith.constant 0 : index
    %241 = vector.load %arg2[%c5_104, %c0_105, %c0_106] : memref<6x32x32xf32, #tpu.memory_space<vmem>>, vector<1x32x32xf32>
    %242 = vector.shape_cast %241 : vector<1x32x32xf32> to vector<32x32xf32>
    %c6 = arith.constant 6 : index
    %c0_107 = arith.constant 0 : index
    %c0_108 = arith.constant 0 : index
    %243 = vector.load %arg4[%c6, %c0_107, %c0_108] : memref<7x32x1xf32, #tpu.memory_space<vmem>>, vector<1x32x1xf32>
    %244 = vector.shape_cast %243 : vector<1x32x1xf32> to vector<32x1xf32>
    %cst_109 = arith.constant dense<0.000000e+00> : vector<32x512xf32>
    %245 = tpu.matmul %242, %240, %cst_109 {dimension_numbers = #tpu.dot_dimension_numbers<[1], [0], [0], [1], [0, 0, 1, 1], [], []>} : vector<32x32xf32>, vector<32x512xf32>, vector<32x512xf32> -> vector<32x512xf32>
    %246 = vector.broadcast %244 : vector<32x1xf32> to vector<32x512xf32>
    %247 = arith.addf %245, %246 : vector<32x512xf32>
    %cst_110 = arith.constant 0.000000e+00 : f32
    %248 = vector.broadcast %cst_110 : f32 to vector<32x512xf32>
    %249 = arith.subf %248, %247 : vector<32x512xf32>
    %250 = math.exp %249 : vector<32x512xf32>
    %cst_111 = arith.constant 1.000000e+00 : f32
    %251 = vector.broadcast %cst_111 : f32 to vector<32x512xf32>
    %252 = arith.addf %251, %250 : vector<32x512xf32>
    %cst_112 = arith.constant 1.000000e+00 : f32
    %253 = vector.broadcast %cst_112 : f32 to vector<32x512xf32>
    %254 = arith.divf %253, %252 : vector<32x512xf32>
    %255 = arith.addf %221, %254 : vector<32x512xf32>
    %c96 = arith.constant 96 : index
    %c0_113 = arith.constant 0 : index
    %256 = vector.load %arg7[%c96, %c0_113] : memref<128x512xf32, #tpu.memory_space<vmem>>, vector<32x512xf32>
    tpu.vector_store %arg7[%c96, %c0_113], %255 {strides = array<i32>} : memref<128x512xf32, #tpu.memory_space<vmem>>, vector<32x512xf32>,
    %c0_114 = arith.constant 0 : index
    %c0_115 = arith.constant 0 : index
    %257 = vector.load %arg3[%c0_114, %c0_115] : memref<4x128xf32, #tpu.memory_space<vmem>>, vector<4x128xf32>
    %c0_116 = arith.constant 0 : index
    %c0_117 = arith.constant 0 : index
    %258 = vector.load %arg7[%c0_116, %c0_117] : memref<128x512xf32, #tpu.memory_space<vmem>>, vector<128x512xf32>
    %cst_118 = arith.constant dense<0.000000e+00> : vector<4x512xf32>
    %259 = tpu.matmul %257, %258, %cst_118 {dimension_numbers = #tpu.dot_dimension_numbers<[1], [0], [0], [1], [0, 0, 1, 1], [], []>} : vector<4x128xf32>, vector<128x512xf32>, vector<4x512xf32> -> vector<4x512xf32>
    %c0_119 = arith.constant 0 : index
    %c0_120 = arith.constant 0 : index
    %260 = vector.load %arg5[%c0_119, %c0_120] : memref<4x1xf32, #tpu.memory_space<vmem>>, vector<4x1xf32>
    %261 = vector.broadcast %260 : vector<4x1xf32> to vector<4x512xf32>
    %262 = arith.addf %259, %261 : vector<4x512xf32>
    %cst_121 = arith.constant 0.000000e+00 : f32
    %263 = vector.broadcast %cst_121 : f32 to vector<4x512xf32>
    %264 = arith.maximumf %262, %263 : vector<4x512xf32>
    %265 = vector.extract_strided_slice %264 {offsets = [0, 0], sizes = [4, 256], strides = [1, 1]} : vector<4x512xf32> to vector<4x256xf32>
    %c0_122 = arith.constant 0 : index
    %c0_123 = arith.constant 0 : index
    %c0_124 = arith.constant 0 : index
    %266 = vector.load %arg6[%c0_122, %c0_123, %c0_124] : memref<2x4x256xf32, #tpu.memory_space<vmem>>, vector<1x4x256xf32>
    %267 = vector.shape_cast %266 : vector<1x4x256xf32> to vector<4x256xf32>
    %268 = vector.shape_cast %265 : vector<4x256xf32> to vector<1x4x256xf32>
    tpu.vector_store %arg6[%c0_122, %c0_123, %c0_124], %268 {strides = array<i32>} : memref<2x4x256xf32, #tpu.memory_space<vmem>>, vector<1x4x256xf32>,
    %269 = vector.extract_strided_slice %264 {offsets = [0, 256], sizes = [4, 256], strides = [1, 1]} : vector<4x512xf32> to vector<4x256xf32>
    %c1_125 = arith.constant 1 : index
    %c0_126 = arith.constant 0 : index
    %c0_127 = arith.constant 0 : index
    %270 = vector.load %arg6[%c1_125, %c0_126, %c0_127] : memref<2x4x256xf32, #tpu.memory_space<vmem>>, vector<1x4x256xf32>
    %271 = vector.shape_cast %270 : vector<1x4x256xf32> to vector<4x256xf32>
    %272 = vector.shape_cast %269 : vector<4x256xf32> to vector<1x4x256xf32>
    tpu.vector_store %arg6[%c1_125, %c0_126, %c0_127], %272 {strides = array<i32>} : memref<2x4x256xf32, #tpu.memory_space<vmem>>, vector<1x4x256xf32>,
    return
  }
}

</mosaic_0001>

<bundles_post_ra>
// kernel: meem_forward.1
= control target key start
LH: loop header
LB: loop body
LE: loop exit
PB: predicated region body
PF: predicated region fallthrough
CT: control target
= control target key end

     0   :  { %vm132_vm0 = vcmask 1043456   ;;  %v7596_v2 = vmov 0.0   ;;  %v4692_v5 = vmov 0   ;;  %vm119_vm1 = vcmask 31744   ;;  %s4694_s16 = smov 112   ;;  %s4695_s17 = smov 1   ;;  %s7582_s0 = inlined_call_operand.vmem [shape: f32[2,4,256], index: 0, kind: input, shape index: {}]   ;;  %s7583_s1 = inlined_call_operand.vmem [shape: f32[32,4], index: 1, kind: input, shape index: {}]   ;;  %s7584_s4 = inlined_call_operand.vmem [shape: f32[7,32,1], index: 4, kind: input, shape index: {}]   ;;  %s7585_s2 = inlined_call_operand.vmem [shape: f32[6,32,32], index: 2, kind: input, shape index: {}]   ;;  %s7586_s5 = inlined_call_operand.vmem [shape: f32[4,1], index: 5, kind: input, shape index: {}]   ;;  %s7587_s3 = inlined_call_operand.vmem [shape: f32[4,128], index: 3, kind: input, shape index: {}]   ;;  %s7588_s6 = inlined_call_operand.vmem [shape: f32[2,4,256], index: 6, kind: output, shape index: {}]  }
   0x1   :  { %v92_v0 = vld [vmem:[%s7582_s0] sm:$0xff]  ;;  %v4133_v1 = vld [vmem:[%s7582_s0 + $0x8] sm:$0xff]  ;;  %201 = vmatprep.mubr.f32.mxu0 %v7596_v2  ;;  %394 = vmatprep.mubr.f32.mxu1 %v7596_v2  ;;  %v96_v7 = vld [vmem:[%s7584_s4 + $0x18] sm:$0xff]  ;;  %s4696_s18 = smov 127  }
   0x2   :  { %v118_v3 = vcombine.high %v92_v0, %v92_v0  ;;  %v313_v4 = vcombine.high %v4133_v1, %v4133_v1  ;;  %4239 = vset.pattern.permute.xlu0 %v4692_v5  ;;  %4240 = vset.pattern.permute.xlu1 %v4692_v5  ;;  %v88_v6 = vld [vmem:[%s7583_s1] sm:$0xff]  ;;  %v95_v8 = vld [vmem:[%s7584_s4 + $0x10] sm:$0xff]  ;;  %v89_v9 = vld [vmem:[%s7583_s1 + $0x8] sm:$0xff] }
   0x3   :  { %114 = vperm.xlu0 %4239, %v96_v7   ;;  %109 = vperm.xlu1 %4240, %v95_v8   ;;  %v90_v10 = vld [vmem:[%s7583_s1 + $0x10] sm:$0xff]  ;;  %v94_v11 = vld [vmem:[%s7584_s4 + $0x8] sm:$0xff]  ;;  %v91_v12 = vld [vmem:[%s7583_s1 + $0x18] sm:$0xff]  ;;  %s4693_s1 = smov 16  }
   0x4   :  { %4127 = vmatprep.subr.msk.mxu0 %vm132_vm0, %v118_v3  ;;  %4134 = vmatprep.subr.msk.mxu1 %vm132_vm0, %v313_v4  ;;  %v93_v13 = vld [vmem:[%s7584_s4] sm:$0xff] }
   0x5   :  { %4128 = vmatpush1.msk.msra.mxu0 %vm132_vm0, %v92_v0  ;;  %4135 = vmatpush1.msk.msra.mxu1 %vm132_vm0, %v4133_v1 }
   0x6   :  { %4129 = vmatmul.mubr.msk.f32.vlgmr.msra.gmra.mxu0 %vm119_vm1, %v88_v6  ;;  %4136 = vmatmul.mubr.msk.f32.vlgmr.msra.gmra.mxu1 %vm119_vm1, %v88_v6 }
   0x7   :  { %207 = vmatprep.mubr.f32.mxu0 %v7596_v2  ;;  %400 = vmatprep.mubr.f32.mxu1 %v7596_v2 }
   0x8   :  { %309 = vperm.xlu0 %4239, %v96_v7   ;;  %304 = vperm.xlu1 %4240, %v95_v8  }
   0xa   :  { %4130 = vmatmul.mubr.msk.f32.gmra.mxu0 %vm119_vm1, %v89_v9  ;;  %4137 = vmatmul.mubr.msk.f32.gmra.mxu1 %vm119_vm1, %v89_v9 }
   0xb   :  { %213 = vmatprep.mubr.f32.mxu0 %v7596_v2  ;;  %406 = vmatprep.mubr.f32.mxu1 %v7596_v2 }
   0xc   :  { %104 = vperm.xlu0 %4239, %v94_v11   ;;  %299 = vperm.xlu1 %4240, %v94_v11  }
   0xe   :  { %4131 = vmatmul.mubr.msk.f32.gmra.mxu0 %vm119_vm1, %v90_v10  ;;  %4138 = vmatmul.mubr.msk.f32.gmra.mxu1 %vm119_vm1, %v90_v10 }
   0xf   :  { %219 = vmatprep.mubr.f32.mxu0 %v7596_v2  ;;  %412 = vmatprep.mubr.f32.mxu1 %v7596_v2 }
  0x10   :  { %99 = vperm.xlu0 %4239, %v93_v13   ;;  %294 = vperm.xlu1 %4240, %v93_v13  }
  0x12   :  { %4132 = vmatmul.mubr.msk.f32.gmra.mxu0 %vm119_vm1, %v91_v12  ;;  %4139 = vmatmul.mubr.msk.f32.gmra.mxu1 %vm119_vm1, %v91_v12 }
  0x13   :  { %937 = vmatprep.mubr.f32.mxu0 %v7596_v2  ;;  %1026 = vmatprep.mubr.f32.mxu1 %v7596_v2 }
  0x7e   :  { %v4784_v14 = vpop.permute.xlu0 %114  ;;  %v110_v15 = vpop.permute.xlu1 %109 }
  0x83   :  { %v4786_v16 = vpop.permute.xlu0 %309  ;;  %v305_v17 = vpop.permute.xlu1 %304 }
  0x87   :  { %v105_v18 = vpop.permute.xlu0 %104  ;;  %v300_v19 = vpop.permute.xlu1 %299 }
  0x8b   :  { %v100_v20 = vpop.permute.xlu0 %99  ;;  %v295_v21 = vpop.permute.xlu1 %294 }
  0xc6   :  { %v203_v22 = vpop.f32.mrf.mxu0  ;;  %v396_v23 = vpop.f32.mrf.mxu1 }
  0xc7   :  { %v204_v24 = vadd.f32 %v203_v22, %v100_v20  ;;  %v397_v25 = vadd.f32 %v396_v23, %v295_v21 }
  0xc8   :  { %v205_v26 = vpop.f32.mrf.mxu0  ;;  %v398_v27 = vpop.f32.mrf.mxu1 }
  0xc9   :  { %v226_v28 = vsub.f32 0.0, %v204_v24  ;;  %v419_v29 = vsub.f32 0.0, %v397_v25  ;;  %v206_v30 = vadd.f32 %v205_v26, %v100_v20  ;;  %v399_v31 = vadd.f32 %v398_v27, %v295_v21 }
  0xca   :  { %v209_v32 = vpop.f32.mrf.mxu0  ;;  %v402_v33 = vpop.f32.mrf.mxu1 }
  0xcb   :  { %v234_v34 = vmul.f32 1.442695, %v226_v28  ;;  %v427_v35 = vmul.f32 1.442695, %v419_v29  ;;  %v227_v36 = vsub.f32 0.0, %v206_v30  ;;  %v420_v37 = vsub.f32 0.0, %v399_v31 }
  0xcc   :  { %v210_v38 = vadd.f32 %v209_v32, %v105_v18  ;;  %v403_v39 = vadd.f32 %v402_v33, %v300_v19  ;;  %v211_v40 = vpop.f32.mrf.mxu0  ;;  %v404_v41 = vpop.f32.mrf.mxu1 }
  0xcd   :  { %4243 = vpow2.f32 %v234_v34  ;;  %v236_v42 = vmul.f32 1.442695, %v227_v36  ;;  %v429_v43 = vmul.f32 1.442695, %v420_v37  ;;  %v212_v44 = vadd.f32 %v211_v40, %v105_v18 }
  0xce   :  { %4245 = vpow2.f32 %v427_v35  ;;  %v228_v45 = vsub.f32 0.0, %v210_v38  ;;  %v421_v46 = vsub.f32 0.0, %v403_v39  ;;  %v405_v47 = vadd.f32 %v404_v41, %v300_v19  ;;  %v215_v49 = vpop.f32.mrf.mxu0  ;;  %v408_v55 = vpop.f32.mrf.mxu1 }
  0xcf   :  { %4247 = vpow2.f32 %v236_v42  ;;  %v229_v48 = vsub.f32 0.0, %v212_v44  ;;  %v216_v57 = vadd.f32 %v215_v49, %v110_v15  ;;  %v409_v61 = vadd.f32 %v408_v55, %v305_v17 }
  0xd0   :  { %4249 = vpow2.f32 %v429_v43  ;;  %v238_v50 = vmul.f32 1.442695, %v228_v45  ;;  %v422_v51 = vsub.f32 0.0, %v405_v47  ;;  %v431_v52 = vmul.f32 1.442695, %v421_v46  ;;  %v217_v56 = vpop.f32.mrf.mxu0  ;;  %v410_v59 = vpop.f32.mrf.mxu1 }
  0xd1   :  { %v240_v53 = vmul.f32 1.442695, %v229_v48  ;;  %v218_v58 = vadd.f32 %v217_v56, %v110_v15  ;;  %v230_v60 = vsub.f32 0.0, %v216_v57  ;;  %v411_v0 = vadd.f32 %v410_v59, %v305_v17 }
  0xd2   :  { %4251 = vpow2.f32 %v238_v50  ;;  %v433_v54 = vmul.f32 1.442695, %v422_v51  ;;  %v423_v6 = vsub.f32 0.0, %v409_v61  ;;  %v221_v18 = vpop.f32.mrf.mxu0  ;;  %v414_v23 = vpop.f32.mrf.mxu1 }
  0xd3   :  { %4253 = vpow2.f32 %v240_v53  ;;  %v231_v63 = vsub.f32 0.0, %v218_v58  ;;  %v242_v5 = vmul.f32 1.442695, %v230_v60  ;;  %v424_v11 = vsub.f32 0.0, %v411_v0 }
  0xd4   :  { %4255 = vpow2.f32 %v431_v52  ;;  %v435_v15 = vmul.f32 1.442695, %v423_v6  ;;  %v223_v25 = vpop.f32.mrf.mxu0  ;;  %v222_v27 = vadd.f32 %v221_v18, %v4784_v14  ;;  %v416_v30 = vpop.f32.mrf.mxu1  ;;  %v415_v31 = vadd.f32 %v414_v23, %v4786_v16 }
  0xd5   :  { %4257 = vpow2.f32 %v433_v54  ;;  %v244_v10 = vmul.f32 1.442695, %v231_v63  ;;  %v437_v21 = vmul.f32 1.442695, %v424_v11  ;;  %v224_v29 = vadd.f32 %v223_v25, %v4784_v14 }
  0xd6   :  { %v232_v32 = vsub.f32 0.0, %v222_v27  ;;  %v417_v34 = vadd.f32 %v416_v30, %v4786_v16  ;;  %v425_v37 = vsub.f32 0.0, %v415_v31 }
  0xd7   :  { %v233_v35 = vsub.f32 0.0, %v224_v29 }
  0xd8   :  { %v246_v14 = vmul.f32 1.442695, %v232_v32  ;;  %v426_v40 = vsub.f32 0.0, %v417_v34  ;;  %v439_v43 = vmul.f32 1.442695, %v425_v37 }
  0xd9   :  { %v248_v42 = vmul.f32 1.442695, %v233_v35 }
  0xda   :  { %v4244_v62 = vpop.eup %4243  ;;  %v441_v47 = vmul.f32 1.442695, %v426_v40 }
  0xdb   :  { %v4246_v1 = vpop.eup %4245  ;;  %v250_v3 = vadd.f32 1.0, %v4244_v62 }
  0xdc   :  { %v4248_v4 = vpop.eup %4247  ;;  %v443_v8 = vadd.f32 1.0, %v4246_v1 }
  0xdd   :  { %v4250_v7 = vpop.eup %4249  ;;  %4259 = vrcp.f32 %v250_v3  ;;  %v251_v9 = vadd.f32 1.0, %v4248_v4 }
  0xde   :  { %v444_v13 = vadd.f32 1.0, %v4250_v7 }
  0xdf   :  { %v4252_v12 = vpop.eup %4251  ;;  %4261 = vrcp.f32 %v251_v9 }
  0xe0   :  { %4263 = vpow2.f32 %v242_v5  ;;  %v4254_v19 = vpop.eup %4253  ;;  %v252_v17 = vadd.f32 1.0, %v4252_v12 }
  0xe1   :  { %4265 = vrcp.f32 %v443_v8  ;;  %v4256_v20 = vpop.eup %4255  ;;  %v253_v22 = vadd.f32 1.0, %v4254_v19 }
  0xe2   :  { %4267 = vpow2.f32 %v244_v10  ;;  %v4258_v24 = vpop.eup %4257  ;;  %v445_v26 = vadd.f32 1.0, %v4256_v20 }
  0xe3   :  { %4269 = vrcp.f32 %v444_v13  ;;  %v446_v28 = vadd.f32 1.0, %v4258_v24 }
  0xe4   :  { %4271 = vpow2.f32 %v435_v15 }
  0xe5   :  { %4273 = vrcp.f32 %v252_v17 }
  0xe6   :  { %4275 = vpow2.f32 %v437_v21 }
  0xe7   :  { %4277 = vrcp.f32 %v253_v22 }
  0xe8   :  { %4279 = vrcp.f32 %v445_v26  ;;  %v23_v26 = vlaneseq }
  0xe9   :  { %4281 = vrcp.f32 %v446_v28 }
  0xea   :  { %v4791_v33 = vpop.eup %4259  ;;  %4283 = vpow2.f32 %v246_v14  ;;  %v4916_v29 = vand.u32 127, %v23_v26 }
  0xeb   :  { %7741 = vst [vmem:[#allocation3_spill] sm:$0xff] %v4791_v33  ;;  %491 = vrot.lane.b32.xlu0 %v4791_v33, %s4693_s1  ;;  %4285 = vpow2.f32 %v248_v42 }
  0xec   :  { %v4796_v36 = vpop.eup %4261  ;;  %4287 = vpow2.f32 %v439_v43  ;;  %v4923_v32 = vadd.s32 128, %v4916_v29  ;;  %v4926_v34 = vadd.s32 256, %v4916_v29  ;;  %v32_v37 = vshra.s32 %v4916_v29, 4 }
  0xed   :  { %7742 = vst [vmem:[#allocation4_spill] sm:$0xff] %v4796_v36  ;;  %v4264_v38 = vpop.eup %4263  ;;  %499 = vrot.lane.b32.xlu1 %v4796_v36, %s4693_s1  ;;  %vm523_vm4 = vcmp.lt.s32.totalorder %v4916_v29, 16  ;;  %vm604_vm10 = vcmp.lt.s32.totalorder %v4916_v29, 112  ;;  %vm685_vm15 = vcmp.lt.s32.totalorder %v4916_v29, 1 }
  0xee   :  { %v4800_v39 = vpop.eup %4265  ;;  %v254_v45 = vadd.f32 1.0, %v4264_v38  ;;  %7757 = vst [vmem:[#allocation19_spill] sm:$0xff] %v4923_v32  ;;  %7758 = vst [vmem:[#allocation20_spill] sm:$0xff] %v4926_v34  ;;  %v33_v14 = vshra.s32 %v4923_v32, 4  ;;  %v34_v40 = vshra.s32 %v4926_v34, 4  ;;  %v36_v43 = vand.u32 15, %v32_v37 }
  0xef   :  { %7743 = vst [vmem:[#allocation5_spill] sm:$0xff] %v4800_v39  ;;  %v4268_v41 = vpop.eup %4267  ;;  %507 = vrot.lane.b32.xlu0 %v4800_v39, %s4693_s1 }
  0xf0   :  { %v4804_v16 = vpop.eup %4269  ;;  %v255_v49 = vadd.f32 1.0, %v4268_v41  ;;  %4289 = vrcp.f32 %v254_v45  ;;  %v4936_v41 = vadd.s32 384, %v4916_v29  ;;  %v37_v45 = vand.u32 15, %v33_v14 }
  0xf1   :  { %7744 = vst [vmem:[#allocation6_spill] sm:$0xff] %v4804_v16  ;;  %v4272_v44 = vpop.eup %4271  ;;  %515 = vrot.lane.b32.xlu1 %v4804_v16, %s4693_s1  ;;  %4291 = vpow2.f32 %v441_v47  ;;  %v38_v47 = vand.u32 15, %v34_v40  ;;  %vm40_vm2 = vcmp.ne.s32.totalorder %v36_v43, 0  ;;  %vm52_vm7 = vcmp.ne.s32.totalorder %v36_v43, 15 }
  0xf2   :  { %v4808_v46 = vpop.eup %4273  ;;  %v447_v51 = vadd.f32 1.0, %v4272_v44  ;;  %4293 = vrcp.f32 %v255_v49  ;;  %7759 = vst [vmem:[#allocation21_spill] sm:$0xff] %v4936_v41  ;;  %vm41_vm3 = vcmp.ne.s32.totalorder %v37_v45, 0  ;;  %vm53_vm8 = vcmp.ne.s32.totalorder %v37_v45, 15 }
  0xf3   :  { %7745 = vst [vmem:[#allocation7_spill] sm:$0xff] %v4808_v46  ;;  %v4276_v48 = vpop.eup %4275  ;;  %493 = vrot.lane.b32.xlu0 %v4808_v46, %s4693_s1  ;;  %vm42_vm5 = vcmp.ne.s32.totalorder %v38_v47, 0  ;;  %vm54_vm9 = vcmp.ne.s32.totalorder %v38_v47, 15  ;;  %v4982_v45 = vsel %vm53_vm8, 1.0, %v7596_v2 }
  0xf4   :  { %v4812_v50 = vpop.eup %4277  ;;  %v448_v53 = vadd.f32 1.0, %v4276_v48  ;;  %4295 = vrcp.f32 %v447_v51  ;;  %v35_v48 = vshra.s32 %v4936_v41, 4  ;;  %7765 = vst [vmem:[#allocation27_spill] sm:$0xff] %v4982_v45  ;;  %v4985_v47 = vsel %vm54_vm9, 1.0, %v7596_v2 }
  0xf5   :  { %7746 = vst [vmem:[#allocation8_spill] sm:$0xff] %v4812_v50  ;;  %501 = vrot.lane.b32.xlu1 %v4812_v50, %s4693_s1  ;;  %v4816_v52 = vpop.eup %4279  ;;  %7766 = vst [vmem:[#allocation28_spill] sm:$0xff] %v4985_v47 }
  0xf6   :  { %7747 = vst [vmem:[#allocation9_spill] sm:$0xff] %v4816_v52  ;;  %v4820_v54 = vpop.eup %4281  ;;  %4297 = vrcp.f32 %v448_v53  ;;  %v39_v53 = vand.u32 15, %v35_v48 }
  0xf7   :  { %509 = vrot.lane.b32.xlu0 %v4816_v52, %s4693_s1  ;;  %7748 = vst [vmem:[#allocation10_spill] sm:$0xff] %v4820_v54  ;;  %v4284_v55 = vpop.eup %4283 }
  0xf8   :  { %v4286_v56 = vpop.eup %4285  ;;  %v256_v58 = vadd.f32 1.0, %v4284_v55  ;;  %vm43_vm6 = vcmp.ne.s32.totalorder %v39_v53, 0  ;;  %vm55_vm11 = vcmp.ne.s32.totalorder %v39_v53, 15 }
  0xf9   :  { %517 = vrot.lane.b32.xlu1 %v4820_v54, %s4693_s1  ;;  %v4288_v57 = vpop.eup %4287  ;;  %v257_v61 = vadd.f32 1.0, %v4286_v56  ;;  %v4951_v56 = vsel %vm40_vm2, 1.0, %v7596_v2  ;;  %v4972_v48 = vsel %vm43_vm6, 1.0, %v7596_v2  ;;  %vm766_vm2 = vcmp.lt.s32.totalorder %v4916_v29, 127 }
  0xfa   :  { %4299 = vrcp.f32 %v256_v58  ;;  %v449_v63 = vadd.f32 1.0, %v4288_v57  ;;  %7760 = vst [vmem:[#allocation22_spill] sm:$0xff] %v4951_v56  ;;  %v4956_v58 = vsel %vm41_vm3, 1.0, %v7596_v2  ;;  %7763 = vst [vmem:[#allocation25_spill] sm:$0xff] %v4972_v48 }
  0xfb   :  { %574 = vrot.lane.b32.xlu0 %v4808_v46, %s4694_s16  ;;  %4301 = vrcp.f32 %v257_v61  ;;  %7761 = vst [vmem:[#allocation23_spill] sm:$0xff] %v4956_v58 }
  0xfc   :  { %4303 = vrcp.f32 %v449_v63  ;;  %v4963_v63 = vsel %vm42_vm5, 1.0, %v7596_v2 }
  0xfd   :  { %582 = vrot.lane.b32.xlu1 %v4812_v50, %s4694_s16  ;;  %v4832_v59 = vpop.eup %4289  ;;  %7762 = vst [vmem:[#allocation24_spill] sm:$0xff] %v4963_v63 }
  0xfe   :  { %7749 = vst [vmem:[#allocation11_spill] sm:$0xff] %v4832_v59  ;;  %v4292_v60 = vpop.eup %4291 }
  0xff   :  { %590 = vrot.lane.b32.xlu0 %v4816_v52, %s4694_s16  ;;  %v4836_v62 = vpop.eup %4293  ;;  %v450_v1 = vadd.f32 1.0, %v4292_v60 }
 0x100   :  { %7750 = vst [vmem:[#allocation12_spill] sm:$0xff] %v4836_v62 }
 0x101   :  { %598 = vrot.lane.b32.xlu1 %v4820_v54, %s4694_s16  ;;  %v4840_v0 = vpop.eup %4295  ;;  %4305 = vrcp.f32 %v450_v1 }
 0x102   :  { %7751 = vst [vmem:[#allocation13_spill] sm:$0xff] %v4840_v0 }
 0x103   :  { %495 = vrot.lane.b32.xlu0 %v4832_v59, %s4693_s1  ;;  %v4844_v3 = vpop.eup %4297 }
 0x104   :  { %7752 = vst [vmem:[#allocation14_spill] sm:$0xff] %v4844_v3 }
 0x105   :  { %503 = vrot.lane.b32.xlu1 %v4836_v62, %s4693_s1 }
 0x107   :  { %511 = vrot.lane.b32.xlu0 %v4840_v0, %s4693_s1  ;;  %v4856_v4 = vpop.eup %4299 }
 0x108   :  { %7753 = vst [vmem:[#allocation15_spill] sm:$0xff] %v4856_v4  ;;  %v4860_v5 = vpop.eup %4301 }
 0x109   :  { %519 = vrot.lane.b32.xlu1 %v4844_v3, %s4693_s1  ;;  %7754 = vst [vmem:[#allocation16_spill] sm:$0xff] %v4860_v5  ;;  %v4864_v6 = vpop.eup %4303 }
 0x10a   :  { %7755 = vst [vmem:[#allocation17_spill] sm:$0xff] %v4864_v6 }
 0x10b   :  { %576 = vrot.lane.b32.xlu0 %v4832_v59, %s4694_s16 }
 0x10d   :  { %584 = vrot.lane.b32.xlu1 %v4836_v62, %s4694_s16 }
 0x10e   :  { %v4868_v7 = vpop.eup %4305 }
 0x10f   :  { %592 = vrot.lane.b32.xlu0 %v4840_v0, %s4694_s16  ;;  %7756 = vst [vmem:[#allocation18_spill] sm:$0xff] %v4868_v7 }
 0x111   :  { %600 = vrot.lane.b32.xlu1 %v4844_v3, %s4694_s16 }
 0x113   :  { %497 = vrot.lane.b32.xlu0 %v4856_v4, %s4693_s1 }
 0x115   :  { %505 = vrot.lane.b32.xlu1 %v4860_v5, %s4693_s1 }
 0x117   :  { %513 = vrot.lane.b32.xlu0 %v4864_v6, %s4693_s1 }
 0x119   :  { %521 = vrot.lane.b32.xlu1 %v4868_v7, %s4693_s1 }
 0x11b   :  { %578 = vrot.lane.b32.xlu0 %v4856_v4, %s4694_s16 }
 0x11d   :  { %586 = vrot.lane.b32.xlu1 %v4860_v5, %s4694_s16 }
 0x11f   :  { %594 = vrot.lane.b32.xlu0 %v4864_v6, %s4694_s16 }
 0x121   :  { %602 = vrot.lane.b32.xlu1 %v4868_v7, %s4694_s16 }
 0x123   :  { %572 = vrot.lane.b32.xlu0 %v4791_v33, %s4694_s16 }
 0x125   :  { %580 = vrot.lane.b32.xlu1 %v4796_v36, %s4694_s16 }
 0x127   :  { %588 = vrot.lane.b32.xlu0 %v4800_v39, %s4694_s16 }
 0x129   :  { %596 = vrot.lane.b32.xlu1 %v4804_v16, %s4694_s16 }
 0x15d   :  { %v492_v8 = vpop.permute.xlu0 %491 }
 0x15f   :  { %v500_v9 = vpop.permute.xlu1 %499 }
 0x160   :  { %v532_v60 = vsel %vm523_vm4, %v492_v8, %v500_v9 }
 0x161   :  { %v508_v10 = vpop.permute.xlu0 %507  ;;  %v541_v14 = vmul.f32 %v4956_v58, %v532_v60 }
 0x162   :  { %v528_v1 = vsel %vm523_vm4, %v500_v9, %v508_v10 }
 0x163   :  { %v516_v11 = vpop.permute.xlu1 %515  ;;  %v542_v40 = vmul.f32 %v4963_v63, %v528_v1  ;;  %v557_v34 = vadd.f32 %v4796_v36, %v541_v14 }
 0x164   :  { %v536_v57 = vsel %vm523_vm4, %v516_v11, %v492_v8  ;;  %v524_v9 = vsel %vm523_vm4, %v508_v10, %v516_v11  ;;  %v4994_v11 = vsel %vm55_vm11, 1.0, %v7596_v2 }
 0x165   :  { %v4888_v12 = vpop.permute.xlu0 %493  ;;  %v540_v26 = vmul.f32 %v4951_v56, %v536_v57  ;;  %v4977_v57 = vsel %vm52_vm7, 1.0, %v7596_v2  ;;  %7767 = vst [vmem:[#allocation29_spill] sm:$0xff] %v4994_v11  ;;  %v543_v32 = vmul.f32 %v4972_v48, %v524_v9  ;;  %vm860_vm7 = vcmask 261120  }
 0x166   :  { %7764 = vst [vmem:[#allocation26_spill] sm:$0xff] %v4977_v57 }
 0x167   :  { %v4890_v13 = vpop.permute.xlu1 %501  ;;  %v556_v1 = vadd.f32 %v4791_v33, %v540_v26  ;;  %v558_v26 = vadd.f32 %v4800_v39, %v542_v40 }
 0x168   :  { %v533_v2 = vsel %vm523_vm4, %v4888_v12, %v4890_v13 }
 0x169   :  { %v4892_v15 = vpop.permute.xlu0 %509 }
 0x16b   :  { %v4894_v18 = vpop.permute.xlu1 %517 }
 0x16c   :  { %v537_v10 = vsel %vm523_vm4, %v4894_v18, %v4888_v12 }
 0x16d   :  { %v4896_v19 = vpop.permute.xlu0 %574  ;;  %v544_v9 = vmul.f32 %v4951_v56, %v537_v10 }
 0x16f   :  { %v4898_v17 = vpop.permute.xlu1 %582 }
 0x171   :  { %v4900_v20 = vpop.permute.xlu0 %590 }
 0x173   :  { %v4902_v21 = vpop.permute.xlu1 %598 }
 0x175   :  { %v4904_v22 = vpop.permute.xlu0 %495 }
 0x177   :  { %v4906_v23 = vpop.permute.xlu1 %503 }
 0x179   :  { %v4908_v24 = vpop.permute.xlu0 %511 }
 0x17b   :  { %v4910_v25 = vpop.permute.xlu1 %519 }
 0x17d   :  { %v4912_v27 = vpop.permute.xlu0 %576 }
 0x17f   :  { %v4914_v28 = vpop.permute.xlu1 %584 }
 0x181   :  { %v4918_v30 = vpop.permute.xlu0 %592 }
 0x183   :  { %v4920_v31 = vpop.permute.xlu1 %600 }
 0x185   :  { %v4928_v35 = vpop.permute.xlu0 %497 }
 0x187   :  { %v4931_v38 = vpop.permute.xlu1 %505 }
 0x189   :  { %v4938_v42 = vpop.permute.xlu0 %513 }
 0x18b   :  { %v4940_v44 = vpop.permute.xlu1 %521 }
 0x18d   :  { %v4943_v49 = vpop.permute.xlu0 %578 }
 0x18f   :  { %v4945_v51 = vpop.permute.xlu1 %586 }
 0x191   :  { %v4948_v55 = vpop.permute.xlu0 %594 }
 0x193   :  { %v4960_v61 = vpop.permute.xlu1 %602 }
 0x195   :  { %v573_v37 = vpop.permute.xlu0 %572 }
 0x197   :  { %v581_v8 = vpop.permute.xlu1 %580 }
 0x198   :  { %v613_v43 = vsel %vm604_vm10, %v573_v37, %v581_v8 }
 0x199   :  { %v621_v53 = vmul.f32 %v4977_v57, %v613_v43  ;;  %v589_v60 = vpop.permute.xlu0 %588 }
 0x19a   :  { %v609_v41 = vsel %vm604_vm10, %v581_v8, %v589_v60  ;;  %v614_v8 = vsel %vm604_vm10, %v4896_v19, %v4898_v17 }
 0x19b   :  { %v622_v43 = vmul.f32 %v4982_v45, %v609_v41  ;;  %v597_v7 = vpop.permute.xlu1 %596  ;;  %v5001_v6 = vadd.f32 %v621_v53, %v556_v1  ;;  %v625_v1 = vmul.f32 %v4977_v57, %v614_v8 }
 0x19c   :  { %v605_v14 = vsel %vm604_vm10, %v589_v60, %v597_v7  ;;  %v617_v41 = vsel %vm604_vm10, %v597_v7, %v573_v37  ;;  %v529_v60 = vsel %vm523_vm4, %v4890_v13, %v4892_v15  ;;  %v610_v7 = vsel %vm604_vm10, %v4898_v17, %v4900_v20 }
 0x19d   :  { %v623_v40 = vmul.f32 %v4985_v47, %v605_v14  ;;  %v624_v53 = vmul.f32 %v4994_v11, %v617_v41  ;;  %653 = vrot.lane.b32.xlu0 %v5001_v6, %s4695_s17  ;;  %v5021_v12 = vadd.f32 %v622_v43, %v557_v34  ;;  %v545_v37 = vmul.f32 %v4956_v58, %v533_v2 }
 0x19e   :  { %v559_v34 = vadd.f32 %v4804_v16, %v543_v32  ;;  %v525_v13 = vsel %vm523_vm4, %v4892_v15, %v4894_v18  ;;  %v606_v17 = vsel %vm604_vm10, %v4900_v20, %v4902_v21  ;;  %v546_v2 = vmul.f32 %v4963_v63, %v529_v60 }
 0x19f   :  { %661 = vrot.lane.b32.xlu1 %v5021_v12, %s4695_s17  ;;  %v5035_v10 = vadd.f32 %v623_v40, %v558_v26  ;;  %v626_v43 = vmul.f32 %v4982_v45, %v610_v7  ;;  %v560_v32 = vadd.f32 %v4808_v46, %v544_v9  ;;  %v618_v15 = vsel %vm604_vm10, %v4902_v21, %v4896_v19 }
 0x1a0   :  { %v5050_v26 = vadd.f32 %v624_v53, %v559_v34  ;;  %v547_v18 = vmul.f32 %v4972_v48, %v525_v13  ;;  %v627_v20 = vmul.f32 %v4985_v47, %v606_v17  ;;  %v561_v14 = vadd.f32 %v4812_v50, %v545_v37 }
 0x1a1   :  { %669 = vrot.lane.b32.xlu0 %v5035_v10, %s4695_s17  ;;  %v5061_v8 = vadd.f32 %v625_v1, %v560_v32  ;;  %v628_v41 = vmul.f32 %v4994_v11, %v618_v15  ;;  %v562_v19 = vadd.f32 %v4816_v52, %v546_v2  ;;  %v538_v60 = vsel %vm523_vm4, %v4910_v25, %v4904_v22 }
 0x1a2   :  { %v5067_v9 = vadd.f32 %v626_v43, %v561_v14  ;;  %v563_v40 = vadd.f32 %v4820_v54, %v547_v18  ;;  %v534_v7 = vsel %vm523_vm4, %v4904_v22, %v4906_v23  ;;  %v615_v37 = vsel %vm604_vm10, %v4912_v27, %v4914_v28 }
 0x1a3   :  { %677 = vrot.lane.b32.xlu1 %v5050_v26, %s4695_s17  ;;  %v5072_v21 = vadd.f32 %v627_v20, %v562_v19  ;;  %v548_v1 = vmul.f32 %v4951_v56, %v538_v60  ;;  %v530_v34 = vsel %vm523_vm4, %v4906_v23, %v4908_v24  ;;  %v611_v22 = vsel %vm604_vm10, %v4914_v28, %v4918_v30 }
 0x1a4   :  { %v5077_v53 = vadd.f32 %v628_v41, %v563_v40  ;;  %v549_v13 = vmul.f32 %v4956_v58, %v534_v7  ;;  %v629_v17 = vmul.f32 %v4977_v57, %v615_v37  ;;  %v526_v2 = vsel %vm523_vm4, %v4908_v24, %v4910_v25 }
 0x1a5   :  { %655 = vrot.lane.b32.xlu0 %v5061_v8, %s4695_s17  ;;  %v607_v23 = vsel %vm604_vm10, %v4918_v30, %v4920_v31  ;;  %v550_v43 = vmul.f32 %v4963_v63, %v530_v34  ;;  %v630_v28 = vmul.f32 %v4982_v45, %v611_v22  ;;  %v564_v32 = vadd.f32 %v4832_v59, %v548_v1 }
 0x1a6   :  { %v619_v15 = vsel %vm604_vm10, %v4920_v31, %v4912_v27  ;;  %v551_v24 = vmul.f32 %v4972_v48, %v526_v2  ;;  %v631_v25 = vmul.f32 %v4985_v47, %v607_v23  ;;  %v565_v18 = vadd.f32 %v4836_v62, %v549_v13 }
 0x1a7   :  { %663 = vrot.lane.b32.xlu1 %v5067_v9, %s4695_s17  ;;  %v5129_v30 = vadd.f32 %v629_v17, %v564_v32  ;;  %v632_v20 = vmul.f32 %v4994_v11, %v619_v15  ;;  %v566_v27 = vadd.f32 %v4840_v0, %v550_v43  ;;  %v539_v40 = vsel %vm523_vm4, %v4940_v44, %v4928_v35  ;;  %v7768_v15 = vld [vmem:[#allocation17_spill] sm:$0xff] }
 0x1a8   :  { %v5135_v14 = vadd.f32 %v630_v28, %v565_v18  ;;  %v567_v41 = vadd.f32 %v4844_v3, %v551_v24  ;;  %v535_v60 = vsel %vm523_vm4, %v4928_v35, %v4931_v38  ;;  %v616_v7 = vsel %vm604_vm10, %v4943_v49, %v4945_v51  ;;  %v7769_v24 = vld [vmem:[#allocation18_spill] sm:$0xff] }
 0x1a9   :  { %671 = vrot.lane.b32.xlu0 %v5072_v21, %s4695_s17  ;;  %v5140_v31 = vadd.f32 %v631_v25, %v566_v27  ;;  %v552_v37 = vmul.f32 %v4951_v56, %v539_v40  ;;  %v531_v1 = vsel %vm523_vm4, %v4931_v38, %v4938_v42  ;;  %v612_v35 = vsel %vm604_vm10, %v4945_v51, %v4948_v55  ;;  %v4142_v27 = vld [vmem:[%s7584_s4 + $0x30] sm:$0xff]  ;;  %v4140_v40 = vld [vmem:[%s7584_s4 + $0x20] sm:$0xff] }
 0x1aa   :  { %v5145_v19 = vadd.f32 %v632_v20, %v567_v41  ;;  %v553_v34 = vmul.f32 %v4956_v58, %v535_v60  ;;  %v633_v22 = vmul.f32 %v4977_v57, %v616_v7  ;;  %v527_v13 = vsel %vm523_vm4, %v4938_v42, %v4940_v44  ;;  %v4143_v20 = vld [vmem:[%s7584_s4 + $0x38] sm:$0xff]  ;;  %v4141_v41 = vld [vmem:[%s7584_s4 + $0x28] sm:$0xff] }
 0x1ab   :  { %679 = vrot.lane.b32.xlu1 %v5077_v53, %s4695_s17  ;;  %v608_v38 = vsel %vm604_vm10, %v4948_v55, %v4960_v61  ;;  %v554_v17 = vmul.f32 %v4963_v63, %v531_v1  ;;  %v634_v51 = vmul.f32 %v4982_v45, %v612_v35  ;;  %v568_v2 = vadd.f32 %v4856_v4, %v552_v37 }
 0x1ac   :  { %v620_v23 = vsel %vm604_vm10, %v4960_v61, %v4943_v49  ;;  %v555_v42 = vmul.f32 %v4972_v48, %v527_v13  ;;  %v635_v44 = vmul.f32 %v4985_v47, %v608_v38  ;;  %v569_v43 = vadd.f32 %v4860_v5, %v553_v34 }
 0x1ad   :  { %736 = vrot.lane.b32.xlu0 %v5061_v8, %s4696_s18  ;;  %v5197_v55 = vadd.f32 %v633_v22, %v568_v2  ;;  %v636_v28 = vmul.f32 %v4994_v11, %v620_v23  ;;  %v570_v49 = vadd.f32 %v7768_v15, %v554_v17 }
 0x1ae   :  { %v5203_v32 = vadd.f32 %v634_v51, %v569_v43  ;;  %v571_v25 = vadd.f32 %v7769_v24, %v555_v42 }
 0x1af   :  { %744 = vrot.lane.b32.xlu1 %v5067_v9, %s4696_s18  ;;  %v5208_v61 = vadd.f32 %v635_v44, %v570_v49  ;;  %v7770_v44 = vld [vmem:[#allocation19_spill] sm:$0xff] }
 0x1b0   :  { %v5213_v18 = vadd.f32 %v636_v28, %v571_v25  ;;  %v29_v43 = vand.u32 15, %v7770_v44  ;;  %v7771_v28 = vld [vmem:[#allocation20_spill] sm:$0xff]  ;;  %v28_v25 = vand.u32 15, %v4916_v29  ;;  %v7773_v44 = vmov 0.0  }
 0x1b1   :  { %752 = vrot.lane.b32.xlu0 %v5072_v21, %s4696_s18  ;;  %v30_v49 = vand.u32 15, %v7771_v28 }
 0x1b2   :  { %vm65_vm12 = vcmp.ne.s32.totalorder %v29_v43, 0  ;;  %vm64_vm14 = vcmp.ne.s32.totalorder %v28_v25, 0  ;;  %vm76_vm1 = vcmp.ne.s32.totalorder %v28_v25, 15  ;;  %vm77_vm3 = vcmp.ne.s32.totalorder %v29_v43, 15 }
 0x1b3   :  { %760 = vrot.lane.b32.xlu1 %v5077_v53, %s4696_s18  ;;  %vm66_vm13 = vcmp.ne.s32.totalorder %v30_v49, 0  ;;  %v5263_v52 = vsel %vm65_vm12, 1.0, %v7773_v44  ;;  %v5286_v36 = vsel %vm76_vm1, 1.0, %v7773_v44  ;;  %vm78_vm5 = vcmp.ne.s32.totalorder %v30_v49, 15 }
 0x1b4   :  { %7774 = vst [vmem:[#allocation19_spill] sm:$0xff] %v5263_v52  ;;  %v5266_v28 = vsel %vm66_vm13, 1.0, %v7773_v44  ;;  %7778 = vst [vmem:[#allocation31_spill] sm:$0xff] %v5286_v36  ;;  %v5306_v49 = vsel %vm77_vm3, 1.0, %v7773_v44 }
 0x1b5   :  { %657 = vrot.lane.b32.xlu0 %v5129_v30, %s4695_s17  ;;  %7775 = vst [vmem:[#allocation20_spill] sm:$0xff] %v5266_v28  ;;  %7779 = vst [vmem:[#allocation32_spill] sm:$0xff] %v5306_v49 }
 0x1b7   :  { %665 = vrot.lane.b32.xlu1 %v5135_v14, %s4695_s17 }
 0x1b9   :  { %673 = vrot.lane.b32.xlu0 %v5140_v31, %s4695_s17 }
 0x1bb   :  { %681 = vrot.lane.b32.xlu1 %v5145_v19, %s4695_s17 }
 0x1bd   :  { %738 = vrot.lane.b32.xlu0 %v5129_v30, %s4696_s18 }
 0x1bf   :  { %746 = vrot.lane.b32.xlu1 %v5135_v14, %s4696_s18 }
 0x1c1   :  { %754 = vrot.lane.b32.xlu0 %v5140_v31, %s4696_s18 }
 0x1c3   :  { %762 = vrot.lane.b32.xlu1 %v5145_v19, %s4696_s18 }
 0x1c5   :  { %659 = vrot.lane.b32.xlu0 %v5197_v55, %s4695_s17 }
 0x1c7   :  { %667 = vrot.lane.b32.xlu1 %v5203_v32, %s4695_s17 }
 0x1c9   :  { %675 = vrot.lane.b32.xlu0 %v5208_v61, %s4695_s17 }
 0x1cb   :  { %683 = vrot.lane.b32.xlu1 %v5213_v18, %s4695_s17 }
 0x1cd   :  { %740 = vrot.lane.b32.xlu0 %v5197_v55, %s4696_s18 }
 0x1cf   :  { %748 = vrot.lane.b32.xlu1 %v5203_v32, %s4696_s18 }
 0x1d1   :  { %756 = vrot.lane.b32.xlu0 %v5208_v61, %s4696_s18 }
 0x1d3   :  { %764 = vrot.lane.b32.xlu1 %v5213_v18, %s4696_s18 }
 0x1d5   :  { %734 = vrot.lane.b32.xlu0 %v5001_v6, %s4696_s18 }
 0x1d7   :  { %742 = vrot.lane.b32.xlu1 %v5021_v12, %s4696_s18 }
 0x1d9   :  { %750 = vrot.lane.b32.xlu0 %v5035_v10, %s4696_s18 }
 0x1db   :  { %758 = vrot.lane.b32.xlu1 %v5050_v26, %s4696_s18 }
 0x1dd   :  { %857 = vperm.xlu0 %4239, %v4143_v20  }
 0x1df   :  { %852 = vperm.xlu1 %4240, %v4142_v27   ;;  %v7772_v27 = vld [vmem:[#allocation21_spill] sm:$0xff] }
 0x1e1   :  { %847 = vperm.xlu0 %4239, %v4141_v41   ;;  %v31_v41 = vand.u32 15, %v7772_v27  ;;  %v5269_v27 = vsel %vm64_vm14, 1.0, %v7773_v44 }
 0x1e2   :  { %7776 = vst [vmem:[#allocation21_spill] sm:$0xff] %v5269_v27 }
 0x1e3   :  { %842 = vperm.xlu1 %4240, %v4140_v40   ;;  %vm67_vm0 = vcmp.ne.s32.totalorder %v31_v41, 0  ;;  %vm79_vm6 = vcmp.ne.s32.totalorder %v31_v41, 15  ;;  %v5309_v41 = vsel %vm78_vm5, 1.0, %v7773_v44 }
 0x1e4   :  { %v5276_v3 = vsel %vm67_vm0, 1.0, %v7773_v44  ;;  %7780 = vst [vmem:[#allocation33_spill] sm:$0xff] %v5309_v41 }
 0x1e5   :  { %7777 = vst [vmem:[#allocation30_spill] sm:$0xff] %v5276_v3 }
 0x20f   :  { %v654_v60 = vpop.permute.xlu0 %653 }
 0x211   :  { %v662_v7 = vpop.permute.xlu1 %661 }
 0x212   :  { %v694_v54 = vsel %vm685_vm15, %v654_v60, %v662_v7 }
 0x213   :  { %v670_v37 = vpop.permute.xlu0 %669 }
 0x214   :  { %v690_v0 = vsel %vm685_vm15, %v662_v7, %v670_v37 }
 0x215   :  { %v678_v1 = vpop.permute.xlu1 %677  ;;  %v704_v59 = vmul.f32 %v5266_v28, %v690_v0 }
 0x216   :  { %v698_v15 = vsel %vm685_vm15, %v678_v1, %v654_v60  ;;  %v703_v60 = vmul.f32 %v5263_v52, %v694_v54  ;;  %v686_v62 = vsel %vm685_vm15, %v670_v37, %v678_v1  ;;  %v5312_v37 = vsel %vm79_vm6, 1.0, %v7773_v44 }
 0x217   :  { %v656_v35 = vpop.permute.xlu0 %655  ;;  %7781 = vst [vmem:[#allocation34_spill] sm:$0xff] %v5312_v37 }
 0x218   :  { %v5324_v1 = vadd.f32 %v703_v60, %v5021_v12 }
 0x219   :  { %v664_v34 = vpop.permute.xlu1 %663 }
 0x21a   :  { %v695_v33 = vsel %vm685_vm15, %v656_v35, %v664_v34 }
 0x21b   :  { %v672_v22 = vpop.permute.xlu0 %671  ;;  %v707_v4 = vmul.f32 %v5263_v52, %v695_v33  ;;  %v5315_v33 = vadd.f32 %v704_v59, %v5035_v10 }
 0x21c   :  { %v691_v7 = vsel %vm685_vm15, %v664_v34, %v672_v22  ;;  %v702_v34 = vmul.f32 %v5269_v27, %v698_v15 }
 0x21d   :  { %v680_v13 = vpop.permute.xlu1 %679  ;;  %v708_v43 = vmul.f32 %v5266_v28, %v691_v7 }
 0x21e   :  { %v699_v24 = vsel %vm685_vm15, %v680_v13, %v656_v35  ;;  %v687_v46 = vsel %vm685_vm15, %v672_v22, %v680_v13  ;;  %v5327_v7 = vadd.f32 %v702_v34, %v5001_v6 }
 0x21f   :  { %v5245_v38 = vpop.permute.xlu0 %736  ;;  %v706_v22 = vmul.f32 %v5269_v27, %v699_v24  ;;  %v709_v54 = vmul.f32 %v5276_v3, %v687_v46  ;;  %v5318_v24 = vmul.f32 %v5276_v3, %v686_v62  ;;  %v723_v62 = vadd.f32 %v707_v4, %v5067_v9 }
 0x220   :  { %v5335_v5 = vadd.f32 %v708_v43, %v5072_v21 }
 0x221   :  { %v745_v17 = vpop.permute.xlu1 %744  ;;  %v5342_v6 = vadd.f32 %v709_v54, %v5077_v53 }
 0x222   :  { %v776_v35 = vsel %vm766_vm2, %v5245_v38, %v745_v17 }
 0x223   :  { %v5247_v51 = vpop.permute.xlu0 %752  ;;  %v787_v0 = vmul.f32 %v5286_v36, %v776_v35  ;;  %v722_v35 = vadd.f32 %v706_v22, %v5061_v8 }
 0x224   :  { %v772_v46 = vsel %vm766_vm2, %v745_v17, %v5247_v51 }
 0x225   :  { %v5249_v2 = vpop.permute.xlu1 %760  ;;  %v5344_v8 = vadd.f32 %v787_v0, %v722_v35  ;;  %v788_v60 = vmul.f32 %v5306_v49, %v772_v46 }
 0x226   :  { %v780_v4 = vsel %vm766_vm2, %v5249_v2, %v5245_v38  ;;  %v768_v38 = vsel %vm766_vm2, %v5247_v51, %v5249_v2 }
 0x227   :  { %v658_v23 = vpop.permute.xlu0 %657  ;;  %v790_v54 = vmul.f32 %v5312_v37, %v780_v4 }
 0x229   :  { %v5251_v42 = vpop.permute.xlu1 %665 }
 0x22a   :  { %v696_v59 = vsel %vm685_vm15, %v658_v23, %v5251_v42 }
 0x22b   :  { %v674_v20 = vpop.permute.xlu0 %673  ;;  %v711_v34 = vmul.f32 %v5263_v52, %v696_v59 }
 0x22c   :  { %v692_v9 = vsel %vm685_vm15, %v5251_v42, %v674_v20 }
 0x22d   :  { %v682_v40 = vpop.permute.xlu1 %681  ;;  %v712_v0 = vmul.f32 %v5266_v28, %v692_v9  ;;  %v727_v4 = vadd.f32 %v711_v34, %v5135_v14 }
 0x22e   :  { %v688_v17 = vsel %vm685_vm15, %v674_v20, %v682_v40  ;;  %v700_v12 = vsel %vm685_vm15, %v682_v40, %v658_v23 }
 0x22f   :  { %v5257_v39 = vpop.permute.xlu0 %738  ;;  %v710_v42 = vmul.f32 %v5269_v27, %v700_v12  ;;  %v713_v20 = vmul.f32 %v5276_v3, %v688_v17 }
 0x231   :  { %v5260_v16 = vpop.permute.xlu1 %746 }
 0x232   :  { %v777_v51 = vsel %vm766_vm2, %v5257_v39, %v5260_v16 }
 0x233   :  { %v755_v25 = vpop.permute.xlu0 %754 }
 0x234   :  { %v773_v53 = vsel %vm766_vm2, %v5260_v16, %v755_v25  ;;  %v726_v16 = vadd.f32 %v710_v42, %v5129_v30 }
 0x235   :  { %v763_v50 = vpop.permute.xlu1 %762  ;;  %v792_v2 = vmul.f32 %v5306_v49, %v773_v53  ;;  %v729_v53 = vadd.f32 %v713_v20, %v5145_v19 }
 0x236   :  { %v781_v17 = vsel %vm766_vm2, %v763_v50, %v5257_v39 }
 0x237   :  { %v660_v13 = vpop.permute.xlu0 %659  ;;  %v794_v14 = vmul.f32 %v5312_v37, %v781_v17 }
 0x239   :  { %v668_v15 = vpop.permute.xlu1 %667 }
 0x23a   :  { %v697_v23 = vsel %vm685_vm15, %v660_v13, %v668_v15 }
 0x23b   :  { %v676_v10 = vpop.permute.xlu0 %675  ;;  %v715_v35 = vmul.f32 %v5263_v52, %v697_v23  ;;  %v791_v23 = vmul.f32 %v5286_v36, %v777_v51 }
 0x23c   :  { %v693_v22 = vsel %vm685_vm15, %v668_v15, %v676_v10  ;;  %v769_v15 = vsel %vm766_vm2, %v755_v25, %v763_v50 }
 0x23d   :  { %v684_v21 = vpop.permute.xlu1 %683  ;;  %v793_v39 = vmul.f32 %v5309_v41, %v769_v15  ;;  %v731_v42 = vadd.f32 %v715_v35, %v5203_v32  ;;  %v789_v32 = vmul.f32 %v5309_v41, %v768_v38  ;;  %v804_v35 = vadd.f32 %v788_v60, %v723_v62 }
 0x23e   :  { %v701_v40 = vsel %vm685_vm15, %v684_v21, %v660_v13  ;;  %v689_v13 = vsel %vm685_vm15, %v676_v10, %v684_v21  ;;  %v716_v10 = vmul.f32 %v5266_v28, %v693_v22  ;;  %v808_v22 = vadd.f32 %v792_v2, %v727_v4 }
 0x23f   :  { %v741_v43 = vpop.permute.xlu0 %740  ;;  %v714_v46 = vmul.f32 %v5269_v27, %v701_v40  ;;  %v717_v9 = vmul.f32 %v5276_v3, %v689_v13  ;;  %v728_v2 = vadd.f32 %v712_v0, %v5140_v31  ;;  %v805_v62 = vadd.f32 %v789_v32, %v5335_v5 }
 0x240   :  { %v732_v13 = vadd.f32 %v716_v10, %v5208_v61  ;;  %v807_v61 = vadd.f32 %v791_v23, %v726_v16  ;;  %v824_v31 = vmul.f32 0.11111111, %v808_v22  ;;  %v820_v23 = vmul.f32 0.11111111, %v804_v35 }
 0x241   :  { %v749_v59 = vpop.permute.xlu1 %748  ;;  %v730_v50 = vadd.f32 %v714_v46, %v5197_v55  ;;  %v733_v17 = vadd.f32 %v717_v9, %v5213_v18  ;;  %v721_v9 = vadd.f32 %v5318_v24, %v5050_v26 }
 0x242   :  { %v778_v12 = vsel %vm766_vm2, %v741_v43, %v749_v59  ;;  %v823_v60 = vmul.f32 0.11111111, %v807_v61 }
 0x243   :  { %v795_v25 = vmul.f32 %v5286_v36, %v778_v12  ;;  %v757_v21 = vpop.permute.xlu0 %756 }
 0x244   :  { %v774_v40 = vsel %vm766_vm2, %v749_v59, %v757_v21 }
 0x245   :  { %v796_v30 = vmul.f32 %v5306_v49, %v774_v40  ;;  %v765_v34 = vpop.permute.xlu1 %764  ;;  %v811_v19 = vadd.f32 %v795_v25, %v730_v50 }
 0x246   :  { %v770_v20 = vsel %vm766_vm2, %v757_v21, %v765_v34  ;;  %v782_v55 = vsel %vm766_vm2, %v765_v34, %v741_v43  ;;  %v810_v21 = vadd.f32 %v794_v14, %v729_v53  ;;  %v809_v43 = vadd.f32 %v793_v39, %v728_v2 }
 0x247   :  { %v797_v46 = vmul.f32 %v5309_v41, %v770_v20  ;;  %v798_v51 = vmul.f32 %v5312_v37, %v782_v55  ;;  %v735_v15 = vpop.permute.xlu0 %734  ;;  %v812_v59 = vadd.f32 %v796_v30, %v731_v42  ;;  %v827_v50 = vmul.f32 0.11111111, %v811_v19 }
 0x248   :  { %v806_v30 = vadd.f32 %v790_v54, %v5342_v6  ;;  %v819_v53 = vmul.f32 0.11111111, %v5344_v8  ;;  %v826_v39 = vmul.f32 0.11111111, %v810_v21  ;;  %v825_v14 = vmul.f32 0.11111111, %v809_v43 }
 0x249   :  { %v813_v10 = vadd.f32 %v797_v46, %v732_v13  ;;  %v743_v12 = vpop.permute.xlu1 %742  ;;  %v828_v4 = vmul.f32 0.11111111, %v812_v59  ;;  %v814_v25 = vadd.f32 %v798_v51, %v733_v17  ;;  %v821_v19 = vmul.f32 0.11111111, %v805_v62  ;;  %v831_v51 = vld [vmem:[%s7585_s2] sm:$0xff]  ;;  %v834_v17 = vld [vmem:[%s7585_s2 + $0x18] sm:$0xff] }
 0x24a   :  { %v775_v40 = vsel %vm766_vm2, %v735_v15, %v743_v12  ;;  %v822_v8 = vmul.f32 0.11111111, %v806_v30 }
 0x24b   :  { %v829_v34 = vmul.f32 0.11111111, %v813_v10  ;;  %v783_v18 = vmul.f32 %v5286_v36, %v775_v40  ;;  %897 = vmatprep.subr.mxu0 %v828_v4  ;;  %v751_v38 = vpop.permute.xlu0 %750  ;;  %v830_v0 = vmul.f32 0.11111111, %v814_v25 }
 0x24c   :  { %v771_v16 = vsel %vm766_vm2, %v743_v12, %v751_v38  ;;  %898 = vmatpush1.msra.mxu0 %v827_v50 }
 0x24d   :  { %v784_v6 = vmul.f32 %v5306_v49, %v771_v16  ;;  %v759_v54 = vpop.permute.xlu1 %758  ;;  %899 = vmatprep.subr.mxu0 %v824_v31  ;;  %986 = vmatprep.subr.mxu1 %v830_v0  ;;  %v799_v5 = vadd.f32 %v783_v18, %v5327_v7 }
 0x24e   :  { %v767_v42 = vsel %vm766_vm2, %v751_v38, %v759_v54  ;;  %v779_v22 = vsel %vm766_vm2, %v759_v54, %v735_v15  ;;  %900 = vmatpush1.msra.mxu0 %v823_v60  ;;  %987 = vmatpush1.msra.mxu1 %v829_v34 }
 0x24f   :  { %v785_v26 = vmul.f32 %v5309_v41, %v767_v42  ;;  %v786_v24 = vmul.f32 %v5312_v37, %v779_v22  ;;  %901 = vmatprep.subr.mxu0 %v820_v23  ;;  %988 = vmatprep.subr.mxu1 %v826_v39  ;;  %v800_v13 = vadd.f32 %v784_v6, %v5324_v1  ;;  %v815_v46 = vmul.f32 0.11111111, %v799_v5  ;;  %v833_v1 = vld [vmem:[%s7585_s2 + $0x10] sm:$0xff] }
 0x250   :  { %902 = vmatpush1.msra.mxu0 %v819_v53  ;;  %989 = vmatpush1.msra.mxu1 %v825_v14 }
 0x251   :  { %v801_v7 = vadd.f32 %v785_v26, %v5315_v33  ;;  %990 = vmatprep.subr.mxu1 %v822_v8  ;;  %v816_v20 = vmul.f32 0.11111111, %v800_v13  ;;  %v802_v55 = vadd.f32 %v786_v24, %v721_v9  ;;  %v832_v33 = vld [vmem:[%s7585_s2 + $0x8] sm:$0xff] }
 0x252   :  { %991 = vmatpush1.msra.mxu1 %v821_v19 }
 0x253   :  { %v817_v15 = vmul.f32 0.11111111, %v801_v7  ;;  %903 = vmatprep.subr.mxu0 %v816_v20  ;;  %v818_v59 = vmul.f32 0.11111111, %v802_v55 }
 0x254   :  { %904 = vmatpush1.msra.mxu0 %v815_v46 }
 0x255   :  { %4144 = vmatmul.mubr.msk.f32.vlgmr.msra.gmra.mxu0 %vm860_vm7, %v831_v51  ;;  %992 = vmatprep.subr.mxu1 %v818_v59 }
 0x256   :  { %993 = vmatpush1.msra.mxu1 %v817_v15  ;;  %943 = vmatprep.mubr.f32.mxu0 %v7773_v44 }
 0x257   :  { %4148 = vmatmul.mubr.msk.f32.vlgmr.msra.gmra.mxu1 %vm860_vm7, %v831_v51 }
 0x258   :  { %1032 = vmatprep.mubr.f32.mxu1 %v7773_v44  ;;  %v5460_v2 = vpop.permute.xlu0 %857 }
 0x259   :  { %4145 = vmatmul.mubr.msk.f32.gmra.mxu0 %vm860_vm7, %v832_v33 }
 0x25a   :  { %949 = vmatprep.mubr.f32.mxu0 %v7773_v44  ;;  %v853_v32 = vpop.permute.xlu1 %852 }
 0x25b   :  { %4149 = vmatmul.mubr.msk.f32.gmra.mxu1 %vm860_vm7, %v832_v33 }
 0x25c   :  { %1038 = vmatprep.mubr.f32.mxu1 %v7773_v44  ;;  %v848_v25 = vpop.permute.xlu0 %847 }
 0x25d   :  { %4146 = vmatmul.mubr.msk.f32.gmra.mxu0 %vm860_vm7, %v833_v1 }
 0x25e   :  { %955 = vmatprep.mubr.f32.mxu0 %v7773_v44  ;;  %v843_v61 = vpop.permute.xlu1 %842 }
 0x25f   :  { %4150 = vmatmul.mubr.msk.f32.gmra.mxu1 %vm860_vm7, %v833_v1 }
 0x260   :  { %1044 = vmatprep.mubr.f32.mxu1 %v7773_v44 }
 0x261   :  { %4147 = vmatmul.mubr.msk.f32.gmra.mxu0 %vm860_vm7, %v834_v17 }
 0x262   :  { %1605 = vmatprep.mubr.f32.mxu0 %v7773_v44 }
 0x263   :  { %4151 = vmatmul.mubr.msk.f32.gmra.mxu1 %vm860_vm7, %v834_v17 }
 0x264   :  { %1694 = vmatprep.mubr.f32.mxu1 %v7773_v44 }
 0x315   :  { %v939_v35 = vpop.f32.mrf.mxu0 }
 0x316   :  { %v940_v10 = vadd.f32 %v939_v35, %v843_v61 }
 0x317   :  { %v941_v12 = vpop.f32.mrf.mxu0  ;;  %v1028_v4 = vpop.f32.mrf.mxu1 }
 0x318   :  { %v1051_v21 = vsub.f32 0.0, %v940_v10  ;;  %v942_v43 = vadd.f32 %v941_v12, %v843_v61  ;;  %v1029_v50 = vadd.f32 %v1028_v4, %v843_v61 }
 0x319   :  { %v945_v40 = vpop.f32.mrf.mxu0  ;;  %v1030_v30 = vpop.f32.mrf.mxu1 }
 0x31a   :  { %v1067_v34 = vmul.f32 1.442695, %v1051_v21  ;;  %v1052_v18 = vsub.f32 0.0, %v942_v43  ;;  %v1053_v38 = vsub.f32 0.0, %v1029_v50  ;;  %v946_v31 = vadd.f32 %v945_v40, %v848_v25 }
 0x31b   :  { %v1031_v0 = vadd.f32 %v1030_v30, %v843_v61  ;;  %v947_v62 = vpop.f32.mrf.mxu0  ;;  %v1034_v60 = vpop.f32.mrf.mxu1 }
 0x31c   :  { %4307 = vpow2.f32 %v1067_v34  ;;  %v1069_v16 = vmul.f32 1.442695, %v1052_v18  ;;  %v1071_v9 = vmul.f32 1.442695, %v1053_v38  ;;  %v1055_v53 = vsub.f32 0.0, %v946_v31 }
 0x31d   :  { %v1054_v6 = vsub.f32 0.0, %v1031_v0  ;;  %v948_v54 = vadd.f32 %v947_v62, %v848_v25  ;;  %v1035_v23 = vadd.f32 %v1034_v60, %v848_v25  ;;  %v1036_v39 = vpop.f32.mrf.mxu1  ;;  %v951_v5 = vpop.f32.mrf.mxu0 }
 0x31e   :  { %4309 = vpow2.f32 %v1069_v16  ;;  %v1075_v14 = vmul.f32 1.442695, %v1055_v53  ;;  %v1037_v42 = vadd.f32 %v1036_v39, %v848_v25  ;;  %v952_v46 = vadd.f32 %v951_v5, %v853_v32 }
 0x31f   :  { %4311 = vpow2.f32 %v1071_v9  ;;  %v1073_v22 = vmul.f32 1.442695, %v1054_v6  ;;  %v1056_v26 = vsub.f32 0.0, %v948_v54  ;;  %v1057_v24 = vsub.f32 0.0, %v1035_v23  ;;  %v953_v20 = vpop.f32.mrf.mxu0  ;;  %v1040_v55 = vpop.f32.mrf.mxu1 }
 0x320   :  { %4313 = vpow2.f32 %v1075_v14  ;;  %v1058_v8 = vsub.f32 0.0, %v1037_v42  ;;  %v954_v51 = vadd.f32 %v953_v20, %v853_v32  ;;  %v1059_v59 = vsub.f32 0.0, %v952_v46 }
 0x321   :  { %4315 = vpow2.f32 %v1073_v22  ;;  %v1077_v13 = vmul.f32 1.442695, %v1056_v26  ;;  %v1079_v19 = vmul.f32 1.442695, %v1057_v24  ;;  %v1042_v15 = vpop.f32.mrf.mxu1  ;;  %v1041_v33 = vadd.f32 %v1040_v55, %v853_v32  ;;  %v957_v31 = vpop.f32.mrf.mxu0 }
 0x322   :  { %v1081_v7 = vmul.f32 1.442695, %v1058_v8  ;;  %v1060_v17 = vsub.f32 0.0, %v954_v51  ;;  %v1043_v61 = vadd.f32 %v1042_v15, %v853_v32  ;;  %v1083_v12 = vmul.f32 1.442695, %v1059_v59 }
 0x323   :  { %4317 = vpow2.f32 %v1077_v13  ;;  %v1061_v4 = vsub.f32 0.0, %v1041_v33  ;;  %v1046_v9 = vpop.f32.mrf.mxu1  ;;  %v959_v6 = vpop.f32.mrf.mxu0  ;;  %v958_v23 = vadd.f32 %v957_v31, %v5460_v2 }
 0x324   :  { %4319 = vpow2.f32 %v1079_v19  ;;  %v1085_v40 = vmul.f32 1.442695, %v1060_v17  ;;  %v1062_v30 = vsub.f32 0.0, %v1043_v61  ;;  %v960_v14 = vadd.f32 %v959_v6, %v5460_v2 }
 0x325   :  { %4321 = vpow2.f32 %v1081_v7  ;;  %v1087_v38 = vmul.f32 1.442695, %v1061_v4  ;;  %v1048_v5 = vpop.f32.mrf.mxu1  ;;  %v1047_v42 = vadd.f32 %v1046_v9, %v5460_v2  ;;  %v1063_v22 = vsub.f32 0.0, %v958_v23 }
 0x326   :  { %v1089_v60 = vmul.f32 1.442695, %v1062_v30  ;;  %v1049_v24 = vadd.f32 %v1048_v5, %v5460_v2  ;;  %v1064_v8 = vsub.f32 0.0, %v960_v14 }
 0x327   :  { %v1065_v19 = vsub.f32 0.0, %v1047_v42  ;;  %v1091_v20 = vmul.f32 1.442695, %v1063_v22 }
 0x328   :  { %v1066_v46 = vsub.f32 0.0, %v1049_v24  ;;  %v1093_v15 = vmul.f32 1.442695, %v1064_v8 }
 0x329   :  { %v4308_v1 = vpop.eup %4307  ;;  %v1095_v59 = vmul.f32 1.442695, %v1065_v19 }
 0x32a   :  { %v1099_v35 = vadd.f32 1.0, %v4308_v1  ;;  %v1097_v61 = vmul.f32 1.442695, %v1066_v46 }
 0x32b   :  { %v4310_v10 = vpop.eup %4309 }
 0x32c   :  { %v4312_v25 = vpop.eup %4311  ;;  %4323 = vrcp.f32 %v1099_v35  ;;  %v1100_v21 = vadd.f32 1.0, %v4310_v10 }
 0x32d   :  { %v4314_v43 = vpop.eup %4313  ;;  %v1101_v50 = vadd.f32 1.0, %v4312_v25 }
 0x32e   :  { %v4316_v34 = vpop.eup %4315  ;;  %4325 = vrcp.f32 %v1100_v21  ;;  %v1103_v32 = vadd.f32 1.0, %v4314_v43 }
 0x32f   :  { %v1102_v18 = vadd.f32 1.0, %v4316_v34  ;;  %4327 = vpow2.f32 %v1083_v12 }
 0x330   :  { %v4318_v0 = vpop.eup %4317  ;;  %4329 = vrcp.f32 %v1101_v50 }
 0x331   :  { %v4320_v62 = vpop.eup %4319  ;;  %4331 = vpow2.f32 %v1085_v40  ;;  %v1104_v16 = vadd.f32 1.0, %v4318_v0 }
 0x332   :  { %4333 = vrcp.f32 %v1102_v18  ;;  %v4322_v53 = vpop.eup %4321  ;;  %v1105_v54 = vadd.f32 1.0, %v4320_v62 }
 0x333   :  { %4335 = vpow2.f32 %v1087_v38  ;;  %v1106_v39 = vadd.f32 1.0, %v4322_v53 }
 0x334   :  { %4337 = vrcp.f32 %v1103_v32 }
 0x335   :  { %4339 = vpow2.f32 %v1089_v60 }
 0x336   :  { %4341 = vrcp.f32 %v1104_v16 }
 0x337   :  { %4343 = vrcp.f32 %v1105_v54 }
 0x338   :  { %4345 = vrcp.f32 %v1106_v39 }
 0x339   :  { %v5465_v26 = vpop.eup %4323  ;;  %4347 = vpow2.f32 %v1091_v20 }
 0x33a   :  { %7782 = vst [vmem:[#allocation35_spill] sm:$0xff] %v5465_v26  ;;  %1147 = vrot.lane.b32.xlu0 %v5465_v26, %s4693_s1  ;;  %4349 = vpow2.f32 %v1093_v15 }
 0x33b   :  { %v5470_v13 = vpop.eup %4325  ;;  %4351 = vpow2.f32 %v1095_v59 }
 0x33c   :  { %7783 = vst [vmem:[#allocation36_spill] sm:$0xff] %v5470_v13  ;;  %v4328_v7 = vpop.eup %4327  ;;  %1155 = vrot.lane.b32.xlu1 %v5470_v13, %s4693_s1 }
 0x33d   :  { %v5474_v55 = vpop.eup %4329  ;;  %v1107_v1 = vadd.f32 1.0, %v4328_v7 }
 0x33e   :  { %7784 = vst [vmem:[#allocation37_spill] sm:$0xff] %v5474_v55  ;;  %v4332_v51 = vpop.eup %4331  ;;  %1163 = vrot.lane.b32.xlu0 %v5474_v55, %s4693_s1 }
 0x33f   :  { %v5478_v2 = vpop.eup %4333  ;;  %v1108_v10 = vadd.f32 1.0, %v4332_v51  ;;  %4353 = vrcp.f32 %v1107_v1 }
 0x340   :  { %7785 = vst [vmem:[#allocation38_spill] sm:$0xff] %v5478_v2  ;;  %v4336_v33 = vpop.eup %4335  ;;  %1171 = vrot.lane.b32.xlu1 %v5478_v2, %s4693_s1  ;;  %4355 = vpow2.f32 %v1097_v61 }
 0x341   :  { %v5482_v17 = vpop.eup %4337  ;;  %v1109_v4 = vadd.f32 1.0, %v4336_v33  ;;  %4357 = vrcp.f32 %v1108_v10 }
 0x342   :  { %7786 = vst [vmem:[#allocation39_spill] sm:$0xff] %v5482_v17  ;;  %v4340_v35 = vpop.eup %4339  ;;  %1149 = vrot.lane.b32.xlu0 %v5482_v17, %s4693_s1 }
 0x343   :  { %v5486_v12 = vpop.eup %4341  ;;  %v1110_v21 = vadd.f32 1.0, %v4340_v35  ;;  %4359 = vrcp.f32 %v1109_v4 }
 0x344   :  { %7787 = vst [vmem:[#allocation40_spill] sm:$0xff] %v5486_v12  ;;  %1157 = vrot.lane.b32.xlu1 %v5486_v12, %s4693_s1  ;;  %v5490_v25 = vpop.eup %4343 }
 0x345   :  { %7788 = vst [vmem:[#allocation41_spill] sm:$0xff] %v5490_v25  ;;  %v5494_v43 = vpop.eup %4345  ;;  %4361 = vrcp.f32 %v1110_v21 }
 0x346   :  { %1165 = vrot.lane.b32.xlu0 %v5490_v25, %s4693_s1  ;;  %7789 = vst [vmem:[#allocation42_spill] sm:$0xff] %v5494_v43  ;;  %v4348_v50 = vpop.eup %4347 }
 0x347   :  { %v4350_v40 = vpop.eup %4349  ;;  %v1111_v34 = vadd.f32 1.0, %v4348_v50 }
 0x348   :  { %1173 = vrot.lane.b32.xlu1 %v5494_v43, %s4693_s1  ;;  %v4352_v30 = vpop.eup %4351  ;;  %v1112_v31 = vadd.f32 1.0, %v4350_v40 }
 0x349   :  { %4363 = vrcp.f32 %v1111_v34  ;;  %v1113_v32 = vadd.f32 1.0, %v4352_v30 }
 0x34a   :  { %1229 = vrot.lane.b32.xlu0 %v5482_v17, %s4694_s16  ;;  %4365 = vrcp.f32 %v1112_v31 }
 0x34b   :  { %4367 = vrcp.f32 %v1113_v32 }
 0x34c   :  { %1237 = vrot.lane.b32.xlu1 %v5486_v12, %s4694_s16  ;;  %v5506_v18 = vpop.eup %4353 }
 0x34d   :  { %7790 = vst [vmem:[#allocation43_spill] sm:$0xff] %v5506_v18  ;;  %v4356_v38 = vpop.eup %4355 }
 0x34e   :  { %1245 = vrot.lane.b32.xlu0 %v5490_v25, %s4694_s16  ;;  %v5510_v0 = vpop.eup %4357  ;;  %v1114_v60 = vadd.f32 1.0, %v4356_v38 }
 0x34f   :  { %7791 = vst [vmem:[#allocation44_spill] sm:$0xff] %v5510_v0 }
 0x350   :  { %1253 = vrot.lane.b32.xlu1 %v5494_v43, %s4694_s16  ;;  %v5514_v62 = vpop.eup %4359  ;;  %4369 = vrcp.f32 %v1114_v60 }
 0x351   :  { %7792 = vst [vmem:[#allocation45_spill] sm:$0xff] %v5514_v62 }
 0x352   :  { %1151 = vrot.lane.b32.xlu0 %v5506_v18, %s4693_s1  ;;  %v5518_v16 = vpop.eup %4361 }
 0x353   :  { %7793 = vst [vmem:[#allocation46_spill] sm:$0xff] %v5518_v16 }
 0x354   :  { %1159 = vrot.lane.b32.xlu1 %v5510_v0, %s4693_s1 }
 0x356   :  { %1167 = vrot.lane.b32.xlu0 %v5514_v62, %s4693_s1  ;;  %v5530_v9 = vpop.eup %4363 }
 0x357   :  { %7794 = vst [vmem:[#allocation47_spill] sm:$0xff] %v5530_v9  ;;  %v5534_v53 = vpop.eup %4365 }
 0x358   :  { %1175 = vrot.lane.b32.xlu1 %v5518_v16, %s4693_s1  ;;  %7795 = vst [vmem:[#allocation48_spill] sm:$0xff] %v5534_v53  ;;  %v5538_v6 = vpop.eup %4367 }
 0x359   :  { %7796 = vst [vmem:[#allocation49_spill] sm:$0xff] %v5538_v6 }
 0x35a   :  { %1231 = vrot.lane.b32.xlu0 %v5506_v18, %s4694_s16 }
 0x35c   :  { %1239 = vrot.lane.b32.xlu1 %v5510_v0, %s4694_s16 }
 0x35d   :  { %v5542_v54 = vpop.eup %4369 }
 0x35e   :  { %1247 = vrot.lane.b32.xlu0 %v5514_v62, %s4694_s16  ;;  %7797 = vst [vmem:[#allocation50_spill] sm:$0xff] %v5542_v54 }
 0x360   :  { %1255 = vrot.lane.b32.xlu1 %v5518_v16, %s4694_s16 }
 0x362   :  { %1153 = vrot.lane.b32.xlu0 %v5530_v9, %s4693_s1 }
 0x364   :  { %1161 = vrot.lane.b32.xlu1 %v5534_v53, %s4693_s1 }
 0x366   :  { %1169 = vrot.lane.b32.xlu0 %v5538_v6, %s4693_s1 }
 0x368   :  { %1177 = vrot.lane.b32.xlu1 %v5542_v54, %s4693_s1 }
 0x36a   :  { %1233 = vrot.lane.b32.xlu0 %v5530_v9, %s4694_s16 }
 0x36c   :  { %1241 = vrot.lane.b32.xlu1 %v5534_v53, %s4694_s16 }
 0x36e   :  { %1249 = vrot.lane.b32.xlu0 %v5538_v6, %s4694_s16 }
 0x370   :  { %1257 = vrot.lane.b32.xlu1 %v5542_v54, %s4694_s16 }
 0x372   :  { %1227 = vrot.lane.b32.xlu0 %v5465_v26, %s4694_s16 }
 0x374   :  { %1235 = vrot.lane.b32.xlu1 %v5470_v13, %s4694_s16 }
 0x376   :  { %1243 = vrot.lane.b32.xlu0 %v5474_v55, %s4694_s16 }
 0x378   :  { %1251 = vrot.lane.b32.xlu1 %v5478_v2, %s4694_s16 }
 0x3ac   :  { %v1148_v23 = vpop.permute.xlu0 %1147 }
 0x3ae   :  { %v1156_v39 = vpop.permute.xlu1 %1155 }
 0x3af   :  { %v1187_v32 = vsel %vm523_vm4, %v1148_v23, %v1156_v39 }
 0x3b0   :  { %v1164_v14 = vpop.permute.xlu0 %1163  ;;  %v1196_v3 = vmul.f32 %v4956_v58, %v1187_v32 }
 0x3b1   :  { %v1183_v44 = vsel %vm523_vm4, %v1156_v39, %v1164_v14 }
 0x3b2   :  { %v1172_v5 = vpop.permute.xlu1 %1171  ;;  %v1197_v28 = vmul.f32 %v4963_v63, %v1183_v44  ;;  %v1212_v39 = vadd.f32 %v5470_v13, %v1196_v3  ;;  %v7804_v13 = vld [vmem:[#allocation20_spill] sm:$0xff] }
 0x3b3   :  { %v1191_v31 = vsel %vm523_vm4, %v1172_v5, %v1148_v23  ;;  %v1179_v36 = vsel %vm523_vm4, %v1164_v14, %v1172_v5 }
 0x3b4   :  { %v1150_v42 = vpop.permute.xlu0 %1149  ;;  %v1195_v37 = vmul.f32 %v4951_v56, %v1191_v31  ;;  %v1213_v32 = vadd.f32 %v5474_v55, %v1197_v28  ;;  %v1198_v14 = vmul.f32 %v4972_v48, %v1179_v36  ;;  %v7803_v55 = vld [vmem:[#allocation32_spill] sm:$0xff] }
 0x3b6   :  { %v1158_v22 = vpop.permute.xlu1 %1157  ;;  %v1211_v23 = vadd.f32 %v5465_v26, %v1195_v37 }
 0x3b8   :  { %v1166_v24 = vpop.permute.xlu0 %1165 }
 0x3ba   :  { %v1174_v8 = vpop.permute.xlu1 %1173 }
 0x3bb   :  { %v1192_v31 = vsel %vm523_vm4, %v1174_v8, %v1150_v42 }
 0x3bc   :  { %v5562_v19 = vpop.permute.xlu0 %1229  ;;  %v1199_v36 = vmul.f32 %v4951_v56, %v1192_v31 }
 0x3be   :  { %v1238_v7 = vpop.permute.xlu1 %1237 }
 0x3bf   :  { %v1268_v3 = vsel %vm604_vm10, %v5562_v19, %v1238_v7 }
 0x3c0   :  { %v1246_v20 = vpop.permute.xlu0 %1245 }
 0x3c2   :  { %v1254_v46 = vpop.permute.xlu1 %1253 }
 0x3c4   :  { %v5564_v51 = vpop.permute.xlu0 %1151 }
 0x3c6   :  { %v5566_v15 = vpop.permute.xlu1 %1159 }
 0x3c8   :  { %v5568_v59 = vpop.permute.xlu0 %1167 }
 0x3ca   :  { %v5570_v33 = vpop.permute.xlu1 %1175 }
 0x3cc   :  { %v5572_v1 = vpop.permute.xlu0 %1231 }
 0x3ce   :  { %v5574_v61 = vpop.permute.xlu1 %1239 }
 0x3d0   :  { %v5576_v35 = vpop.permute.xlu0 %1247 }
 0x3d2   :  { %v5578_v10 = vpop.permute.xlu1 %1255 }
 0x3d4   :  { %v5580_v4 = vpop.permute.xlu0 %1153 }
 0x3d6   :  { %v5582_v21 = vpop.permute.xlu1 %1161 }
 0x3d8   :  { %v5584_v50 = vpop.permute.xlu0 %1169 }
 0x3da   :  { %v5586_v40 = vpop.permute.xlu1 %1177 }
 0x3dc   :  { %v5588_v30 = vpop.permute.xlu0 %1233 }
 0x3de   :  { %v5590_v34 = vpop.permute.xlu1 %1241 }
 0x3e0   :  { %v5592_v38 = vpop.permute.xlu0 %1249 }
 0x3e2   :  { %v5598_v60 = vpop.permute.xlu1 %1257 }
 0x3e4   :  { %v1228_v41 = vpop.permute.xlu0 %1227 }
 0x3e6   :  { %v1236_v49 = vpop.permute.xlu1 %1235 }
 0x3e7   :  { %v1267_v52 = vsel %vm604_vm10, %v1228_v41, %v1236_v49 }
 0x3e8   :  { %v1275_v27 = vmul.f32 %v4977_v57, %v1267_v52  ;;  %v1244_v54 = vpop.permute.xlu0 %1243  ;;  %v1188_v52 = vsel %vm523_vm4, %v1150_v42, %v1158_v22  ;;  %v1184_v42 = vsel %vm523_vm4, %v1158_v22, %v1166_v24  ;;  %v1260_v22 = vsel %vm604_vm10, %v1246_v20, %v1254_v46 }
 0x3e9   :  { %v1263_v44 = vsel %vm604_vm10, %v1236_v49, %v1244_v54  ;;  %v1201_v31 = vmul.f32 %v4963_v63, %v1184_v42  ;;  %v1189_v42 = vsel %vm523_vm4, %v5564_v51, %v5566_v15 }
 0x3ea   :  { %v5618_v5 = vadd.f32 %v1275_v27, %v1211_v23  ;;  %v1276_v6 = vmul.f32 %v4982_v45, %v1263_v44  ;;  %v1252_v37 = vpop.permute.xlu1 %1251  ;;  %v1214_v44 = vadd.f32 %v5478_v2, %v1198_v14 }
 0x3eb   :  { %v1259_v26 = vsel %vm604_vm10, %v1244_v54, %v1252_v37  ;;  %v1271_v28 = vsel %vm604_vm10, %v1252_v37, %v1228_v41  ;;  %v1264_v54 = vsel %vm604_vm10, %v1238_v7, %v1246_v20  ;;  %v1200_v41 = vmul.f32 %v4956_v58, %v1188_v52 }
 0x3ec   :  { %v5631_v27 = vadd.f32 %v1276_v6, %v1212_v39  ;;  %v1277_v49 = vmul.f32 %v4985_v47, %v1259_v26  ;;  %v1278_v23 = vmul.f32 %v4994_v11, %v1271_v28  ;;  %1307 = vrot.lane.b32.xlu0 %v5618_v5, %s4695_s17  ;;  %v1279_v6 = vmul.f32 %v4977_v57, %v1268_v3 }
 0x3ed   :  { %v1180_v26 = vsel %vm523_vm4, %v1166_v24, %v1174_v8  ;;  %v1215_v7 = vadd.f32 %v5482_v17, %v1199_v36  ;;  %v1280_v14 = vmul.f32 %v4982_v45, %v1264_v54  ;;  %v1216_v24 = vadd.f32 %v5486_v12, %v1200_v41 }
 0x3ee   :  { %v5644_v39 = vadd.f32 %v1277_v49, %v1213_v32  ;;  %1315 = vrot.lane.b32.xlu1 %v5631_v27, %s4695_s17  ;;  %v5655_v37 = vadd.f32 %v1278_v23, %v1214_v44  ;;  %v1272_v32 = vsel %vm604_vm10, %v1254_v46, %v5562_v19  ;;  %v1202_v8 = vmul.f32 %v4972_v48, %v1180_v26 }
 0x3ef   :  { %v5664_v20 = vadd.f32 %v1279_v6, %v1215_v7  ;;  %v1281_v52 = vmul.f32 %v4985_v47, %v1260_v22  ;;  %v1217_v3 = vadd.f32 %v5490_v25, %v1201_v31  ;;  %v5670_v28 = vadd.f32 %v1280_v14, %v1216_v24 }
 0x3f0   :  { %1323 = vrot.lane.b32.xlu0 %v5644_v39, %s4695_s17  ;;  %v1282_v36 = vmul.f32 %v4994_v11, %v1272_v32  ;;  %v1218_v19 = vadd.f32 %v5494_v43, %v1202_v8  ;;  %v1193_v23 = vsel %vm523_vm4, %v5570_v33, %v5564_v51  ;;  %v1269_v54 = vsel %vm604_vm10, %v5572_v1, %v5574_v61 }
 0x3f1   :  { %v5676_v46 = vadd.f32 %v1281_v52, %v1217_v3  ;;  %v1203_v44 = vmul.f32 %v4951_v56, %v1193_v23  ;;  %v1185_v41 = vsel %vm523_vm4, %v5566_v15, %v5568_v59  ;;  %v1265_v51 = vsel %vm604_vm10, %v5574_v61, %v5576_v35 }
 0x3f2   :  { %1331 = vrot.lane.b32.xlu1 %v5655_v37, %s4695_s17  ;;  %v5680_v49 = vadd.f32 %v1282_v36, %v1218_v19  ;;  %v1204_v6 = vmul.f32 %v4956_v58, %v1189_v42  ;;  %v1283_v26 = vmul.f32 %v4977_v57, %v1269_v54  ;;  %v1181_v22 = vsel %vm523_vm4, %v5568_v59, %v5570_v33 }
 0x3f3   :  { %v1261_v15 = vsel %vm604_vm10, %v5576_v35, %v5578_v10  ;;  %v1205_v31 = vmul.f32 %v4963_v63, %v1185_v41  ;;  %v1219_v61 = vadd.f32 %v5506_v18, %v1203_v44  ;;  %v1284_v7 = vmul.f32 %v4982_v45, %v1265_v51 }
 0x3f4   :  { %1309 = vrot.lane.b32.xlu0 %v5664_v20, %s4695_s17  ;;  %v1273_v14 = vsel %vm604_vm10, %v5578_v10, %v5572_v1  ;;  %v1220_v59 = vadd.f32 %v5510_v0, %v1204_v6  ;;  %v1206_v33 = vmul.f32 %v4972_v48, %v1181_v22  ;;  %v1285_v35 = vmul.f32 %v4985_v47, %v1261_v15 }
 0x3f5   :  { %v5732_v32 = vadd.f32 %v1283_v26, %v1219_v61  ;;  %v1221_v24 = vadd.f32 %v5514_v62, %v1205_v31  ;;  %v1286_v52 = vmul.f32 %v4994_v11, %v1273_v14  ;;  %v1194_v36 = vsel %vm523_vm4, %v5586_v40, %v5580_v4  ;;  %v7798_v31 = vld [vmem:[#allocation49_spill] sm:$0xff] }
 0x3f6   :  { %1317 = vrot.lane.b32.xlu1 %v5670_v28, %s4695_s17  ;;  %v5738_v8 = vadd.f32 %v1284_v7, %v1220_v59  ;;  %v1222_v1 = vadd.f32 %v5518_v16, %v1206_v33  ;;  %v1190_v19 = vsel %vm523_vm4, %v5580_v4, %v5582_v21  ;;  %v1270_v23 = vsel %vm604_vm10, %v5588_v30, %v5590_v34 }
 0x3f7   :  { %v5744_v10 = vadd.f32 %v1285_v35, %v1221_v24  ;;  %v1207_v42 = vmul.f32 %v4951_v56, %v1194_v36  ;;  %v1186_v54 = vsel %vm523_vm4, %v5582_v21, %v5584_v50  ;;  %v1266_v4 = vsel %vm604_vm10, %v5590_v34, %v5592_v38  ;;  %v4175_v35 = vld [vmem:[%s7584_s4 + $0x58] sm:$0xff]  ;;  %v4174_v24 = vld [vmem:[%s7584_s4 + $0x50] sm:$0xff] }
 0x3f8   :  { %1325 = vrot.lane.b32.xlu0 %v5676_v46, %s4695_s17  ;;  %v5748_v3 = vadd.f32 %v1286_v52, %v1222_v1  ;;  %v1208_v44 = vmul.f32 %v4956_v58, %v1190_v19  ;;  %v1287_v41 = vmul.f32 %v4977_v57, %v1270_v23  ;;  %v1182_v51 = vsel %vm523_vm4, %v5584_v50, %v5586_v40  ;;  %v4173_v52 = vld [vmem:[%s7584_s4 + $0x48] sm:$0xff]  ;;  %v4172_v1 = vld [vmem:[%s7584_s4 + $0x40] sm:$0xff] }
 0x3f9   :  { %v1262_v21 = vsel %vm604_vm10, %v5592_v38, %v5598_v60  ;;  %v1209_v6 = vmul.f32 %v4963_v63, %v1186_v54  ;;  %v1223_v34 = vadd.f32 %v5530_v9, %v1207_v42  ;;  %v1288_v26 = vmul.f32 %v4982_v45, %v1266_v4  ;;  %v7801_v45 = vld [vmem:[#allocation19_spill] sm:$0xff] }
 0x3fa   :  { %1333 = vrot.lane.b32.xlu1 %v5680_v49, %s4695_s17  ;;  %v1274_v22 = vsel %vm604_vm10, %v5598_v60, %v5588_v30  ;;  %v1224_v50 = vadd.f32 %v5534_v53, %v1208_v44  ;;  %v1210_v40 = vmul.f32 %v4972_v48, %v1182_v51  ;;  %v1289_v38 = vmul.f32 %v4985_v47, %v1262_v21  ;;  %v7799_v30 = vld [vmem:[#allocation50_spill] sm:$0xff]  ;;  %v7802_v58 = vld [vmem:[#allocation31_spill] sm:$0xff] }
 0x3fb   :  { %v5800_v15 = vadd.f32 %v1287_v41, %v1223_v34  ;;  %v1225_v61 = vadd.f32 %v7798_v31, %v1209_v6  ;;  %v1290_v14 = vmul.f32 %v4994_v11, %v1274_v22 }
 0x3fc   :  { %1389 = vrot.lane.b32.xlu0 %v5664_v20, %s4696_s18  ;;  %v5806_v7 = vadd.f32 %v1288_v26, %v1224_v50  ;;  %v1226_v60 = vadd.f32 %v7799_v30, %v1210_v40 }
 0x3fd   :  { %v5812_v59 = vadd.f32 %v1289_v38, %v1225_v61 }
 0x3fe   :  { %1397 = vrot.lane.b32.xlu1 %v5670_v28, %s4696_s18  ;;  %v5816_v33 = vadd.f32 %v1290_v14, %v1226_v60 }
 0x400   :  { %1405 = vrot.lane.b32.xlu0 %v5676_v46, %s4696_s18 }
 0x402   :  { %1413 = vrot.lane.b32.xlu1 %v5680_v49, %s4696_s18 }
 0x404   :  { %1311 = vrot.lane.b32.xlu0 %v5732_v32, %s4695_s17 }
 0x406   :  { %1319 = vrot.lane.b32.xlu1 %v5738_v8, %s4695_s17 }
 0x408   :  { %1327 = vrot.lane.b32.xlu0 %v5744_v10, %s4695_s17 }
 0x40a   :  { %1335 = vrot.lane.b32.xlu1 %v5748_v3, %s4695_s17 }
 0x40c   :  { %1391 = vrot.lane.b32.xlu0 %v5732_v32, %s4696_s18 }
 0x40e   :  { %1399 = vrot.lane.b32.xlu1 %v5738_v8, %s4696_s18 }
 0x410   :  { %1407 = vrot.lane.b32.xlu0 %v5744_v10, %s4696_s18 }
 0x412   :  { %1415 = vrot.lane.b32.xlu1 %v5748_v3, %s4696_s18 }
 0x414   :  { %1313 = vrot.lane.b32.xlu0 %v5800_v15, %s4695_s17 }
 0x416   :  { %1321 = vrot.lane.b32.xlu1 %v5806_v7, %s4695_s17 }
 0x418   :  { %1329 = vrot.lane.b32.xlu0 %v5812_v59, %s4695_s17 }
 0x41a   :  { %1337 = vrot.lane.b32.xlu1 %v5816_v33, %s4695_s17 }
 0x41c   :  { %1393 = vrot.lane.b32.xlu0 %v5800_v15, %s4696_s18 }
 0x41e   :  { %1401 = vrot.lane.b32.xlu1 %v5806_v7, %s4696_s18 }
 0x420   :  { %1409 = vrot.lane.b32.xlu0 %v5812_v59, %s4696_s18 }
 0x422   :  { %1417 = vrot.lane.b32.xlu1 %v5816_v33, %s4696_s18 }
 0x424   :  { %1387 = vrot.lane.b32.xlu0 %v5618_v5, %s4696_s18 }
 0x426   :  { %1395 = vrot.lane.b32.xlu1 %v5631_v27, %s4696_s18 }
 0x428   :  { %1403 = vrot.lane.b32.xlu0 %v5644_v39, %s4696_s18 }
 0x42a   :  { %1411 = vrot.lane.b32.xlu1 %v5655_v37, %s4696_s18 }
 0x42c   :  { %1874 = vperm.xlu0 %4239, %v4175_v35  }
 0x42e   :  { %1869 = vperm.xlu1 %4240, %v4174_v24   ;;  %v7800_v24 = vld [vmem:[#allocation21_spill] sm:$0xff] }
 0x430   :  { %1864 = vperm.xlu0 %4239, %v4173_v52  }
 0x432   :  { %1859 = vperm.xlu1 %4240, %v4172_v1  }
 0x45e   :  { %v1308_v36 = vpop.permute.xlu0 %1307 }
 0x460   :  { %v1316_v19 = vpop.permute.xlu1 %1315 }
 0x461   :  { %v1347_v11 = vsel %vm685_vm15, %v1308_v36, %v1316_v19 }
 0x462   :  { %v1324_v23 = vpop.permute.xlu0 %1323 }
 0x463   :  { %v1343_v47 = vsel %vm685_vm15, %v1316_v19, %v1324_v23 }
 0x464   :  { %v1332_v42 = vpop.permute.xlu1 %1331  ;;  %v1357_v25 = vmul.f32 %v7804_v13, %v1343_v47 }
 0x465   :  { %v1339_v63 = vsel %vm685_vm15, %v1324_v23, %v1332_v42 }
 0x466   :  { %v1310_v54 = vpop.permute.xlu0 %1309 }
 0x468   :  { %v1318_v4 = vpop.permute.xlu1 %1317 }
 0x469   :  { %v1348_v14 = vsel %vm685_vm15, %v1310_v54, %v1318_v4 }
 0x46a   :  { %v1326_v44 = vpop.permute.xlu0 %1325  ;;  %v1360_v48 = vmul.f32 %v7801_v45, %v1348_v14 }
 0x46c   :  { %v1334_v41 = vpop.permute.xlu1 %1333 }
 0x46d   :  { %v1352_v38 = vsel %vm685_vm15, %v1334_v41, %v1310_v54  ;;  %v1344_v54 = vsel %vm685_vm15, %v1318_v4, %v1326_v44  ;;  %v1356_v4 = vmul.f32 %v7801_v45, %v1347_v11 }
 0x46e   :  { %v1390_v51 = vpop.permute.xlu0 %1389  ;;  %v1359_v52 = vmul.f32 %v7800_v24, %v1352_v38  ;;  %v1351_v38 = vsel %vm685_vm15, %v1332_v42, %v1308_v36  ;;  %v1361_v23 = vmul.f32 %v7804_v13, %v1344_v54  ;;  %v7805_v42 = vld [vmem:[#allocation30_spill] sm:$0xff] }
 0x46f   :  { %v1355_v36 = vmul.f32 %v7800_v24, %v1351_v38  ;;  %v5888_v54 = vadd.f32 %v1356_v4, %v5631_v27 }
 0x470   :  { %v1398_v21 = vpop.permute.xlu1 %1397  ;;  %v1375_v43 = vadd.f32 %v1359_v52, %v5664_v20  ;;  %v5891_v20 = vadd.f32 %v1357_v25, %v5644_v39  ;;  %v7807_v25 = vld [vmem:[#allocation34_spill] sm:$0xff] }
 0x471   :  { %v1428_v60 = vsel %vm766_vm2, %v1390_v51, %v1398_v21 }
 0x472   :  { %v1406_v6 = vpop.permute.xlu0 %1405  ;;  %v1439_v56 = vmul.f32 %v7802_v58, %v1428_v60 }
 0x473   :  { %v1424_v1 = vsel %vm766_vm2, %v1398_v21, %v1406_v6  ;;  %v1340_v21 = vsel %vm685_vm15, %v1326_v44, %v1334_v41  ;;  %v1358_v44 = vmul.f32 %v7805_v42, %v1339_v63  ;;  %v1376_v41 = vadd.f32 %v1360_v48, %v5670_v28 }
 0x474   :  { %v1414_v34 = vpop.permute.xlu1 %1413  ;;  %v1440_v2 = vmul.f32 %v7803_v55, %v1424_v1  ;;  %v1362_v60 = vmul.f32 %v7805_v42, %v1340_v21  ;;  %v1455_v62 = vadd.f32 %v1439_v56, %v1375_v43  ;;  %v1377_v63 = vadd.f32 %v1361_v23, %v5676_v46 }
 0x475   :  { %v1420_v19 = vsel %vm766_vm2, %v1406_v6, %v1414_v34  ;;  %v7806_v6 = vld [vmem:[#allocation33_spill] sm:$0xff]  ;;  %v1432_v11 = vsel %vm766_vm2, %v1414_v34, %v1390_v51  ;;  %v5897_v56 = vadd.f32 %v1355_v36, %v5618_v5  ;;  %v5900_v43 = vadd.f32 %v1358_v44, %v5655_v37 }
 0x476   :  { %v1312_v26 = vpop.permute.xlu0 %1311  ;;  %v1441_v17 = vmul.f32 %v7806_v6, %v1420_v19  ;;  %v1456_v16 = vadd.f32 %v1440_v2, %v1376_v41  ;;  %v1378_v28 = vadd.f32 %v1362_v60, %v5680_v49  ;;  %v5905_v51 = vmul.f32 0.11111111, %v1455_v62 }
 0x477   :  { %v1442_v39 = vmul.f32 %v7807_v25, %v1432_v11 }
 0x478   :  { %v1320_v22 = vpop.permute.xlu1 %1319  ;;  %v1457_v46 = vadd.f32 %v1441_v17, %v1377_v63  ;;  %v5915_v38 = vmul.f32 0.11111111, %v1456_v16 }
 0x479   :  { %v1349_v48 = vsel %vm685_vm15, %v1312_v26, %v1320_v22  ;;  %v1458_v36 = vadd.f32 %v1442_v39, %v1378_v28 }
 0x47a   :  { %v1328_v50 = vpop.permute.xlu0 %1327  ;;  %v1364_v5 = vmul.f32 %v7801_v45, %v1349_v48 }
 0x47b   :  { %v1345_v2 = vsel %vm685_vm15, %v1320_v22, %v1328_v50 }
 0x47c   :  { %v1336_v40 = vpop.permute.xlu1 %1335  ;;  %v1365_v62 = vmul.f32 %v7804_v13, %v1345_v2  ;;  %v1380_v44 = vadd.f32 %v1364_v5, %v5738_v8 }
 0x47d   :  { %v1353_v34 = vsel %vm685_vm15, %v1336_v40, %v1312_v26  ;;  %v1341_v37 = vsel %vm685_vm15, %v1328_v50, %v1336_v40 }
 0x47e   :  { %v1392_v61 = vpop.permute.xlu0 %1391  ;;  %v1363_v21 = vmul.f32 %v7800_v24, %v1353_v34  ;;  %v1366_v4 = vmul.f32 %v7805_v42, %v1341_v37  ;;  %v1381_v11 = vadd.f32 %v1365_v62, %v5744_v10 }
 0x480   :  { %v1400_v35 = vpop.permute.xlu1 %1399  ;;  %v1379_v28 = vadd.f32 %v1363_v21, %v5732_v32 }
 0x481   :  { %v1429_v22 = vsel %vm766_vm2, %v1392_v61, %v1400_v35 }
 0x482   :  { %v1408_v57 = vpop.permute.xlu0 %1407  ;;  %v1443_v41 = vmul.f32 %v7802_v58, %v1429_v22 }
 0x483   :  { %v1425_v49 = vsel %vm766_vm2, %v1400_v35, %v1408_v57 }
 0x484   :  { %v1416_v14 = vpop.permute.xlu1 %1415  ;;  %v1444_v35 = vmul.f32 %v7803_v55, %v1425_v49  ;;  %v1459_v5 = vadd.f32 %v1443_v41, %v1379_v28 }
 0x485   :  { %v1433_v50 = vsel %vm766_vm2, %v1416_v14, %v1392_v61  ;;  %v1421_v61 = vsel %vm766_vm2, %v1408_v57, %v1416_v14 }
 0x486   :  { %v1314_v1 = vpop.permute.xlu0 %1313  ;;  %v1445_v10 = vmul.f32 %v7806_v6, %v1421_v61  ;;  %v1460_v34 = vadd.f32 %v1444_v35, %v1380_v44  ;;  %v5970_v41 = vmul.f32 0.11111111, %v1459_v5 }
 0x488   :  { %v1322_v47 = vpop.permute.xlu1 %1321 }
 0x489   :  { %v1350_v17 = vsel %vm685_vm15, %v1314_v1, %v1322_v47 }
 0x48a   :  { %v1330_v27 = vpop.permute.xlu0 %1329  ;;  %v1368_v60 = vmul.f32 %v7801_v45, %v1350_v17  ;;  %v7855_v45 = vld [vmem:[#allocation27_spill] sm:$0xff] }
 0x48b   :  { %v1346_v16 = vsel %vm685_vm15, %v1322_v47, %v1330_v27  ;;  %v1446_v47 = vmul.f32 %v7807_v25, %v1433_v50 }
 0x48c   :  { %v1338_v52 = vpop.permute.xlu1 %1337  ;;  %v1369_v63 = vmul.f32 %v7804_v13, %v1346_v16  ;;  %v1384_v37 = vadd.f32 %v1368_v60, %v5806_v7  ;;  %v5962_v16 = vmul.f32 0.11111111, %v1457_v46  ;;  %v5976_v46 = vmul.f32 0.11111111, %v1458_v36 }
 0x48d   :  { %v1354_v26 = vsel %vm685_vm15, %v1338_v52, %v1314_v1  ;;  %v1342_v23 = vsel %vm685_vm15, %v1330_v27, %v1338_v52  ;;  %v1382_v27 = vadd.f32 %v1366_v4, %v5748_v3 }
 0x48e   :  { %v1367_v40 = vmul.f32 %v7800_v24, %v1354_v26  ;;  %v1394_v19 = vpop.permute.xlu0 %1393  ;;  %v1370_v8 = vmul.f32 %v7805_v42, %v1342_v23  ;;  %v7853_v42 = vld [vmem:[#allocation26_spill] sm:$0xff] }
 0x48f   :  { %v1462_v22 = vadd.f32 %v1446_v47, %v1382_v27 }
 0x490   :  { %v1402_v1 = vpop.permute.xlu1 %1401  ;;  %v1383_v2 = vadd.f32 %v1367_v40, %v5800_v15  ;;  %v1385_v15 = vadd.f32 %v1369_v63, %v5812_v59  ;;  %v1386_v17 = vadd.f32 %v1370_v8, %v5816_v33  ;;  %v1461_v40 = vadd.f32 %v1445_v10, %v1381_v11 }
 0x491   :  { %v1430_v48 = vsel %vm766_vm2, %v1394_v19, %v1402_v1  ;;  %v5966_v59 = vmul.f32 0.11111111, %v1460_v34  ;;  %v1488_v33 = vsub.f32 %v5486_v12, %v5915_v38  ;;  %v5974_v60 = vmul.f32 0.11111111, %v1462_v22 }
 0x492   :  { %v1447_v57 = vmul.f32 %v7802_v58, %v1430_v48  ;;  %v1410_v14 = vpop.permute.xlu0 %1409  ;;  %v1477_v28 = vmul.f32 0.11111111, %v1461_v40 }
 0x493   :  { %v1426_v39 = vsel %vm766_vm2, %v1402_v1, %v1410_v14 }
 0x494   :  { %v1463_v49 = vadd.f32 %v1447_v57, %v1383_v2  ;;  %v1448_v32 = vmul.f32 %v7803_v55, %v1426_v39  ;;  %v1418_v52 = vpop.permute.xlu1 %1417  ;;  %v1492_v57 = vsub.f32 %v5510_v0, %v5966_v59 }
 0x495   :  { %v1422_v62 = vsel %vm766_vm2, %v1410_v14, %v1418_v52  ;;  %v1434_v3 = vsel %vm766_vm2, %v1418_v52, %v1394_v19 }
 0x496   :  { %v1449_v26 = vmul.f32 %v7806_v6, %v1422_v62  ;;  %v1450_v21 = vmul.f32 %v7807_v25, %v1434_v3  ;;  %v1388_v7 = vpop.permute.xlu0 %1387  ;;  %v1464_v50 = vadd.f32 %v1448_v32, %v1384_v37  ;;  %v5964_v4 = vmul.f32 0.11111111, %v1463_v49  ;;  %v7809_v3 = vld [vmem:[#allocation39_spill] sm:$0xff] }
 0x497   :  { %v1491_v37 = vsub.f32 %v5506_v18, %v5970_v41  ;;  %v1487_v22 = vsub.f32 %v7809_v3, %v5905_v51 }
 0x498   :  { %v1465_v35 = vadd.f32 %v1449_v26, %v1385_v15  ;;  %v1396_v23 = vpop.permute.xlu1 %1395  ;;  %v1480_v44 = vmul.f32 0.11111111, %v1464_v50  ;;  %v1466_v19 = vadd.f32 %v1450_v21, %v1386_v17  ;;  %v1495_v2 = vsub.f32 %v5530_v9, %v5964_v4  ;;  %v7810_v17 = vld [vmem:[#allocation45_spill] sm:$0xff] }
 0x499   :  { %v1427_v61 = vsel %vm766_vm2, %v1388_v7, %v1396_v23  ;;  %v1493_v26 = vsub.f32 %v7810_v17, %v1477_v28 }
 0x49a   :  { %v1481_v1 = vmul.f32 0.11111111, %v1465_v35  ;;  %v1435_v11 = vmul.f32 %v7802_v58, %v1427_v61  ;;  %v1404_v47 = vpop.permute.xlu0 %1403  ;;  %v1496_v63 = vsub.f32 %v5534_v53, %v1480_v44  ;;  %v1482_v48 = vmul.f32 0.11111111, %v1466_v19  ;;  %v7813_v61 = vld [vmem:[#allocation36_spill] sm:$0xff]  ;;  %v7854_v58 = vld [vmem:[#allocation25_spill] sm:$0xff] }
 0x49b   :  { %v1423_v8 = vsel %vm766_vm2, %v1396_v23, %v1404_v47 }
 0x49c   :  { %v1451_v36 = vadd.f32 %v1435_v11, %v5897_v56  ;;  %v1436_v14 = vmul.f32 %v7803_v55, %v1423_v8  ;;  %v1412_v27 = vpop.permute.xlu1 %1411  ;;  %1565 = vmatprep.subr.mxu0 %v1496_v63  ;;  %v1498_v10 = vsub.f32 %v7799_v30, %v1482_v48  ;;  %v1497_v39 = vsub.f32 %v7798_v31, %v1481_v1  ;;  %v7808_v56 = vld [vmem:[#allocation46_spill] sm:$0xff]  ;;  %v4152_v63 = vld [vmem:[%s7585_s2 + $0x60] sm:$0xff] }
 0x49d   :  { %v1419_v34 = vsel %vm766_vm2, %v1404_v47, %v1412_v27  ;;  %v1431_v5 = vsel %vm766_vm2, %v1412_v27, %v1388_v7  ;;  %1566 = vmatpush1.msra.mxu0 %v1495_v2  ;;  %v1494_v49 = vsub.f32 %v7808_v56, %v5974_v60  ;;  %v7811_v7 = vld [vmem:[#allocation42_spill] sm:$0xff]  ;;  %v7816_v2 = vld [vmem:[#allocation37_spill] sm:$0xff] }
 0x49e   :  { %v1437_v32 = vmul.f32 %v7806_v6, %v1419_v34  ;;  %v1438_v52 = vmul.f32 %v7807_v25, %v1431_v5  ;;  %1567 = vmatprep.subr.mxu0 %v1492_v57  ;;  %1654 = vmatprep.subr.mxu1 %v1498_v10  ;;  %v1452_v15 = vadd.f32 %v1436_v14, %v5888_v54  ;;  %v1467_v62 = vmul.f32 0.11111111, %v1451_v36  ;;  %v7812_v54 = vld [vmem:[#allocation41_spill] sm:$0xff]  ;;  %v7815_v8 = vld [vmem:[#allocation38_spill] sm:$0xff]  ;;  %v4153_v36 = vld [vmem:[%s7585_s2 + $0x68] sm:$0xff] }
 0x49f   :  { %1568 = vmatpush1.msra.mxu0 %v1491_v37  ;;  %1655 = vmatpush1.msra.mxu1 %v1497_v39  ;;  %v1490_v50 = vsub.f32 %v7811_v7, %v5976_v46  ;;  %v1489_v23 = vsub.f32 %v7812_v54, %v5962_v16  ;;  %v7817_v14 = vmov 0.0  }
 0x4a0   :  { %v1453_v21 = vadd.f32 %v1437_v32, %v5891_v20  ;;  %1569 = vmatprep.subr.mxu0 %v1488_v33  ;;  %1656 = vmatprep.subr.mxu1 %v1494_v49  ;;  %v1468_v40 = vmul.f32 0.11111111, %v1452_v15  ;;  %v1454_v35 = vadd.f32 %v1438_v52, %v5900_v43  ;;  %v7814_v20 = vld [vmem:[#allocation35_spill] sm:$0xff] }
 0x4a1   :  { %1570 = vmatpush1.msra.mxu0 %v1487_v22  ;;  %1657 = vmatpush1.msra.mxu1 %v1493_v26  ;;  %v1483_v33 = vsub.f32 %v7814_v20, %v1467_v62 }
 0x4a2   :  { %v1469_v19 = vmul.f32 0.11111111, %v1453_v21  ;;  %1658 = vmatprep.subr.mxu1 %v1490_v50  ;;  %v1484_v11 = vsub.f32 %v7813_v61, %v1468_v40  ;;  %v1470_v47 = vmul.f32 0.11111111, %v1454_v35 }
 0x4a3   :  { %1659 = vmatpush1.msra.mxu1 %v1489_v23 }
 0x4a4   :  { %1571 = vmatprep.subr.mxu0 %v1484_v11  ;;  %v1486_v43 = vsub.f32 %v7815_v8, %v1470_v47  ;;  %v1485_v57 = vsub.f32 %v7816_v2, %v1469_v19 }
 0x4a5   :  { %1572 = vmatpush1.msra.mxu0 %v1483_v33 }
 0x4a6   :  { %4160 = vmatmul.mubr.msk.f32.vlgmr.msra.gmra.mxu0 %vm860_vm7, %v4152_v63  ;;  %1660 = vmatprep.subr.mxu1 %v1486_v43 }
 0x4a7   :  { %1913 = vmatprep.subr.mxu0 %v1480_v44  ;;  %1661 = vmatpush1.msra.mxu1 %v1485_v57  ;;  %v4171_v44 = vld [vmem:[%s7585_s2 + $0x38] sm:$0xff]  ;;  %v6104_v52 = vpop.permute.xlu0 %1874 }
 0x4a8   :  { %1914 = vmatpush1.msra.mxu0 %v5964_v4  ;;  %4164 = vmatmul.mubr.msk.f32.vlgmr.msra.gmra.mxu1 %vm860_vm7, %v4152_v63  ;;  %v4154_v4 = vld [vmem:[%s7585_s2 + $0x70] sm:$0xff] }
 0x4a9   :  { %1915 = vmatprep.subr.mxu0 %v5966_v59  ;;  %2002 = vmatprep.subr.mxu1 %v1482_v48  ;;  %v4170_v59 = vld [vmem:[%s7585_s2 + $0x30] sm:$0xff]  ;;  %v1870_v34 = vpop.permute.xlu1 %1869 }
 0x4aa   :  { %1611 = vmatprep.mubr.f32.mxu0 %v7817_v14  ;;  %1916 = vmatpush1.msra.mxu0 %v5970_v41 }
 0x4ab   :  { %2003 = vmatpush1.msra.mxu1 %v1481_v1  ;;  %4161 = vmatmul.mubr.msk.f32.gmra.mxu0 %vm860_vm7, %v4153_v36  ;;  %v1865_v11 = vpop.permute.xlu0 %1864 }
 0x4ac   :  { %1917 = vmatprep.subr.mxu0 %v5915_v38  ;;  %2004 = vmatprep.subr.mxu1 %v5974_v60  ;;  %v4168_v38 = vld [vmem:[%s7585_s2 + $0x20] sm:$0xff] }
 0x4ad   :  { %1700 = vmatprep.mubr.f32.mxu1 %v7817_v14  ;;  %1918 = vmatpush1.msra.mxu0 %v5905_v51  ;;  %v4155_v51 = vld [vmem:[%s7585_s2 + $0x78] sm:$0xff]  ;;  %v1860_v22 = vpop.permute.xlu1 %1859 }
 0x4ae   :  { %2005 = vmatpush1.msra.mxu1 %v1477_v28  ;;  %1919 = vmatprep.subr.mxu0 %v1468_v40 }
 0x4af   :  { %4165 = vmatmul.mubr.msk.f32.gmra.mxu1 %vm860_vm7, %v4153_v36  ;;  %2006 = vmatprep.subr.mxu1 %v5976_v46 }
 0x4b0   :  { %1617 = vmatprep.mubr.f32.mxu0 %v7817_v14  ;;  %1920 = vmatpush1.msra.mxu0 %v1467_v62 }
 0x4b1   :  { %2007 = vmatpush1.msra.mxu1 %v5962_v16  ;;  %4162 = vmatmul.mubr.msk.f32.gmra.mxu0 %vm860_vm7, %v4154_v4  ;;  %v4169_v16 = vld [vmem:[%s7585_s2 + $0x28] sm:$0xff] }
 0x4b2   :  { %2008 = vmatprep.subr.mxu1 %v1470_v47  ;;  %1706 = vmatprep.mubr.f32.mxu1 %v7817_v14 }
 0x4b3   :  { %2009 = vmatpush1.msra.mxu1 %v1469_v19  ;;  %1623 = vmatprep.mubr.f32.mxu0 %v7817_v14 }
 0x4b4   :  { %4166 = vmatmul.mubr.msk.f32.gmra.mxu1 %vm860_vm7, %v4154_v4 }
 0x4b5   :  { %4163 = vmatmul.mubr.msk.f32.gmra.mxu0 %vm860_vm7, %v4155_v51  ;;  %1712 = vmatprep.mubr.f32.mxu1 %v7817_v14 }
 0x4b6   :  { %1953 = vmatprep.mubr.f32.mxu0 %v7817_v14 }
 0x4b8   :  { %4167 = vmatmul.mubr.msk.f32.gmra.mxu1 %vm860_vm7, %v4155_v51 }
 0x4b9   :  { %4176 = vmatmul.mubr.msk.f32.vlgmr.msra.gmra.mxu0 %vm860_vm7, %v4168_v38  ;;  %2042 = vmatprep.mubr.f32.mxu1 %v7817_v14 }
 0x4ba   :  { %1959 = vmatprep.mubr.f32.mxu0 %v7817_v14 }
 0x4bc   :  { %4180 = vmatmul.mubr.msk.f32.vlgmr.msra.gmra.mxu1 %vm860_vm7, %v4168_v38 }
 0x4bd   :  { %4177 = vmatmul.mubr.msk.f32.gmra.mxu0 %vm860_vm7, %v4169_v16  ;;  %2048 = vmatprep.mubr.f32.mxu1 %v7817_v14 }
 0x4be   :  { %1965 = vmatprep.mubr.f32.mxu0 %v7817_v14 }
 0x4c0   :  { %4181 = vmatmul.mubr.msk.f32.gmra.mxu1 %vm860_vm7, %v4169_v16 }
 0x4c1   :  { %4178 = vmatmul.mubr.msk.f32.gmra.mxu0 %vm860_vm7, %v4170_v59  ;;  %2054 = vmatprep.mubr.f32.mxu1 %v7817_v14 }
 0x4c2   :  { %1971 = vmatprep.mubr.f32.mxu0 %v7817_v14 }
 0x4c4   :  { %4182 = vmatmul.mubr.msk.f32.gmra.mxu1 %vm860_vm7, %v4170_v59 }
 0x4c5   :  { %4179 = vmatmul.mubr.msk.f32.gmra.mxu0 %vm860_vm7, %v4171_v44  ;;  %2060 = vmatprep.mubr.f32.mxu1 %v7817_v14 }
 0x4c6   :  { %2621 = vmatprep.mubr.f32.mxu0 %v7817_v14 }
 0x4c8   :  { %4183 = vmatmul.mubr.msk.f32.gmra.mxu1 %vm860_vm7, %v4171_v44 }
 0x4c9   :  { %2710 = vmatprep.mubr.f32.mxu1 %v7817_v14 }
 0x566   :  { %v6078_v41 = vpop.f32.mrf.mxu0 }
 0x567   :  { %7818 = vst [vmem:[#allocation51_spill] sm:$0xff] %v6078_v41 }
 0x568   :  { %v6080_v60 = vpop.f32.mrf.mxu0  ;;  %v6082_v46 = vpop.f32.mrf.mxu1 }
 0x569   :  { %7819 = vst [vmem:[#allocation52_spill] sm:$0xff] %v6080_v60  ;;  %7820 = vst [vmem:[#allocation53_spill] sm:$0xff] %v6082_v46 }
 0x56a   :  { %v6086_v48 = vpop.f32.mrf.mxu1 }
 0x56b   :  { %v6084_v1 = vpop.f32.mrf.mxu0  ;;  %7822 = vst [vmem:[#allocation55_spill] sm:$0xff] %v6086_v48 }
 0x56c   :  { %7821 = vst [vmem:[#allocation54_spill] sm:$0xff] %v6084_v1 }
 0x56d   :  { %v6088_v28 = vpop.f32.mrf.mxu0 }
 0x56e   :  { %7823 = vst [vmem:[#allocation56_spill] sm:$0xff] %v6088_v28 }
 0x56f   :  { %v6090_v27 = vpop.f32.mrf.mxu1 }
 0x570   :  { %7824 = vst [vmem:[#allocation57_spill] sm:$0xff] %v6090_v27 }
 0x571   :  { %v6092_v10 = vpop.f32.mrf.mxu0  ;;  %v6094_v39 = vpop.f32.mrf.mxu1 }
 0x572   :  { %7825 = vst [vmem:[#allocation58_spill] sm:$0xff] %v6092_v10  ;;  %7826 = vst [vmem:[#allocation59_spill] sm:$0xff] %v6094_v39 }
 0x573   :  { %v6096_v5 = vpop.f32.mrf.mxu0 }
 0x574   :  { %7827 = vst [vmem:[#allocation60_spill] sm:$0xff] %v6096_v5  ;;  %v6098_v37 = vpop.f32.mrf.mxu1 }
 0x575   :  { %7828 = vst [vmem:[#allocation61_spill] sm:$0xff] %v6098_v37  ;;  %v6100_v49 = vpop.f32.mrf.mxu0  ;;  %v7850_v37 = vld [vmem:[#allocation22_spill] sm:$0xff] }
 0x576   :  { %7829 = vst [vmem:[#allocation62_spill] sm:$0xff] %v6100_v49  ;;  %v6102_v32 = vpop.f32.mrf.mxu1 }
 0x577   :  { %7830 = vst [vmem:[#allocation63_spill] sm:$0xff] %v6102_v32  ;;  %v6106_v15 = vpop.f32.mrf.mxu0 }
 0x578   :  { %7831 = vst [vmem:[#allocation64_spill] sm:$0xff] %v6106_v15  ;;  %v6108_v62 = vpop.f32.mrf.mxu1  ;;  %v7852_v15 = vld [vmem:[#allocation24_spill] sm:$0xff] }
 0x579   :  { %7832 = vst [vmem:[#allocation65_spill] sm:$0xff] %v6108_v62  ;;  %v1955_v26 = vpop.f32.mrf.mxu0 }
 0x57a   :  { %v6110_v21 = vpop.f32.mrf.mxu1  ;;  %v1956_v50 = vadd.f32 %v1955_v26, %v1860_v22 }
 0x57b   :  { %7833 = vst [vmem:[#allocation66_spill] sm:$0xff] %v6110_v21  ;;  %v1957_v40 = vpop.f32.mrf.mxu0  ;;  %v7851_v21 = vld [vmem:[#allocation23_spill] sm:$0xff] }
 0x57c   :  { %v2067_v35 = vsub.f32 0.0, %v1956_v50  ;;  %v1958_v23 = vadd.f32 %v1957_v40, %v1860_v22  ;;  %v2044_v19 = vpop.f32.mrf.mxu1 }
 0x57d   :  { %v2045_v47 = vadd.f32 %v2044_v19, %v1860_v22  ;;  %v1961_v33 = vpop.f32.mrf.mxu0 }
 0x57e   :  { %v2083_v63 = vmul.f32 1.442695, %v2067_v35  ;;  %v2068_v43 = vsub.f32 0.0, %v1958_v23  ;;  %v1962_v57 = vadd.f32 %v1961_v33, %v1865_v11  ;;  %v2046_v36 = vpop.f32.mrf.mxu1 }
 0x57f   :  { %v2069_v4 = vsub.f32 0.0, %v2045_v47  ;;  %v2047_v51 = vadd.f32 %v2046_v36, %v1860_v22  ;;  %v1963_v38 = vpop.f32.mrf.mxu0 }
 0x580   :  { %4371 = vpow2.f32 %v2083_v63  ;;  %v2085_v16 = vmul.f32 1.442695, %v2068_v43  ;;  %v2071_v59 = vsub.f32 0.0, %v1962_v57  ;;  %v1964_v44 = vadd.f32 %v1963_v38, %v1865_v11  ;;  %v2050_v2 = vpop.f32.mrf.mxu1 }
 0x581   :  { %v2087_v26 = vmul.f32 1.442695, %v2069_v4  ;;  %v2070_v8 = vsub.f32 0.0, %v2047_v51  ;;  %v2051_v50 = vadd.f32 %v2050_v2, %v1865_v11  ;;  %v1967_v19 = vpop.f32.mrf.mxu0 }
 0x582   :  { %4373 = vpow2.f32 %v2085_v16  ;;  %v2091_v40 = vmul.f32 1.442695, %v2071_v59  ;;  %v2072_v54 = vsub.f32 0.0, %v1964_v44  ;;  %v2052_v7 = vpop.f32.mrf.mxu1  ;;  %v1968_v36 = vadd.f32 %v1967_v19, %v1870_v34 }
 0x583   :  { %4375 = vpow2.f32 %v2087_v26  ;;  %v2089_v35 = vmul.f32 1.442695, %v2070_v8  ;;  %v2073_v23 = vsub.f32 0.0, %v2051_v50  ;;  %v2053_v33 = vadd.f32 %v2052_v7, %v1865_v11  ;;  %v1969_v43 = vpop.f32.mrf.mxu0 }
 0x584   :  { %4377 = vpow2.f32 %v2091_v40  ;;  %v2093_v22 = vmul.f32 1.442695, %v2072_v54  ;;  %v2056_v57 = vpop.f32.mrf.mxu1  ;;  %v1970_v2 = vadd.f32 %v1969_v43, %v1870_v34  ;;  %v2075_v38 = vsub.f32 0.0, %v1968_v36 }
 0x585   :  { %4379 = vpow2.f32 %v2089_v35  ;;  %v2095_v47 = vmul.f32 1.442695, %v2073_v23  ;;  %v2074_v63 = vsub.f32 0.0, %v2053_v33  ;;  %v2057_v16 = vadd.f32 %v2056_v57, %v1870_v34  ;;  %v1973_v57 = vpop.f32.mrf.mxu0 }
 0x586   :  { %4381 = vpow2.f32 %v2093_v22  ;;  %v2058_v51 = vpop.f32.mrf.mxu1  ;;  %v2076_v8 = vsub.f32 0.0, %v1970_v2  ;;  %v2099_v54 = vmul.f32 1.442695, %v2075_v38 }
 0x587   :  { %v2097_v4 = vmul.f32 1.442695, %v2074_v63  ;;  %4383 = vpow2.f32 %v2095_v47  ;;  %v2059_v44 = vadd.f32 %v2058_v51, %v1870_v34  ;;  %v2077_v26 = vsub.f32 0.0, %v2057_v16  ;;  %v1975_v16 = vpop.f32.mrf.mxu0 }
 0x588   :  { %v2101_v19 = vmul.f32 1.442695, %v2076_v8  ;;  %v2062_v51 = vpop.f32.mrf.mxu1  ;;  %v1974_v8 = vadd.f32 %v1973_v57, %v6104_v52 }
 0x589   :  { %4385 = vpow2.f32 %v2097_v4  ;;  %v2078_v33 = vsub.f32 0.0, %v2059_v44  ;;  %v2103_v43 = vmul.f32 1.442695, %v2077_v26 }
 0x58a   :  { %v2079_v26 = vsub.f32 0.0, %v1974_v8 }
 0x58b   :  { %v2105_v4 = vmul.f32 1.442695, %v2078_v33 }
 0x58d   :  { %v4372_v59 = vpop.eup %4371 }
 0x58e   :  { %v2115_v7 = vadd.f32 1.0, %v4372_v59 }
 0x58f   :  { %v4374_v11 = vpop.eup %4373 }
 0x590   :  { %v4376_v50 = vpop.eup %4375  ;;  %4387 = vrcp.f32 %v2115_v7  ;;  %v2116_v40 = vadd.f32 1.0, %v4374_v11  ;;  %v1976_v7 = vadd.f32 %v1975_v16, %v6104_v52  ;;  %v2064_v11 = vpop.f32.mrf.mxu1 }
 0x591   :  { %v4378_v35 = vpop.eup %4377  ;;  %v2117_v23 = vadd.f32 1.0, %v4376_v50 }
 0x592   :  { %v4380_v22 = vpop.eup %4379  ;;  %4389 = vrcp.f32 %v2116_v40  ;;  %v2119_v34 = vadd.f32 1.0, %v4378_v35  ;;  %v2065_v40 = vadd.f32 %v2064_v11, %v6104_v52  ;;  %v2080_v35 = vsub.f32 0.0, %v1976_v7 }
 0x593   :  { %v4382_v47 = vpop.eup %4381  ;;  %v2118_v63 = vadd.f32 1.0, %v4380_v22  ;;  %4391 = vpow2.f32 %v2099_v54  ;;  %v2063_v54 = vadd.f32 %v2062_v51, %v6104_v52  ;;  %v2107_v22 = vmul.f32 1.442695, %v2079_v26 }
 0x594   :  { %4393 = vrcp.f32 %v2117_v23  ;;  %v4384_v36 = vpop.eup %4383  ;;  %v2120_v2 = vadd.f32 1.0, %v4382_v47  ;;  %v2109_v57 = vmul.f32 1.442695, %v2080_v35 }
 0x595   :  { %4395 = vpow2.f32 %v2101_v19  ;;  %v2121_v59 = vadd.f32 1.0, %v4384_v36  ;;  %v2081_v19 = vsub.f32 0.0, %v2063_v54 }
 0x596   :  { %4397 = vrcp.f32 %v2118_v63  ;;  %v4386_v38 = vpop.eup %4385  ;;  %v2082_v63 = vsub.f32 0.0, %v2065_v40 }
 0x597   :  { %4399 = vpow2.f32 %v2103_v43  ;;  %v2122_v44 = vadd.f32 1.0, %v4386_v38 }
 0x598   :  { %4401 = vrcp.f32 %v2119_v34  ;;  %v2111_v34 = vmul.f32 1.442695, %v2081_v19  ;;  %v2113_v51 = vmul.f32 1.442695, %v2082_v63 }
 0x599   :  { %4403 = vpow2.f32 %v2105_v4 }
 0x59a   :  { %4405 = vrcp.f32 %v2120_v2 }
 0x59b   :  { %4407 = vrcp.f32 %v2121_v59 }
 0x59c   :  { %4409 = vrcp.f32 %v2122_v44 }
 0x59d   :  { %v6115_v50 = vpop.eup %4387  ;;  %4411 = vpow2.f32 %v2107_v22 }
 0x59e   :  { %7834 = vst [vmem:[#allocation67_spill] sm:$0xff] %v6115_v50  ;;  %2163 = vrot.lane.b32.xlu0 %v6115_v50, %s4693_s1  ;;  %4413 = vpow2.f32 %v2109_v57 }
 0x59f   :  { %v6120_v23 = vpop.eup %4389  ;;  %4415 = vpow2.f32 %v2111_v34 }
 0x5a0   :  { %7835 = vst [vmem:[#allocation68_spill] sm:$0xff] %v6120_v23  ;;  %v4392_v33 = vpop.eup %4391  ;;  %2171 = vrot.lane.b32.xlu1 %v6120_v23, %s4693_s1 }
 0x5a1   :  { %v6124_v47 = vpop.eup %4393  ;;  %v2123_v4 = vadd.f32 1.0, %v4392_v33 }
 0x5a2   :  { %7836 = vst [vmem:[#allocation69_spill] sm:$0xff] %v6124_v47  ;;  %v4396_v43 = vpop.eup %4395  ;;  %2179 = vrot.lane.b32.xlu0 %v6124_v47, %s4693_s1 }
 0x5a3   :  { %v6128_v52 = vpop.eup %4397  ;;  %v2124_v16 = vadd.f32 1.0, %v4396_v43  ;;  %4417 = vrcp.f32 %v2123_v4 }
 0x5a4   :  { %7837 = vst [vmem:[#allocation70_spill] sm:$0xff] %v6128_v52  ;;  %v4400_v36 = vpop.eup %4399  ;;  %2187 = vrot.lane.b32.xlu1 %v6128_v52, %s4693_s1  ;;  %4419 = vpow2.f32 %v2113_v51 }
 0x5a5   :  { %v6132_v2 = vpop.eup %4401  ;;  %v2125_v8 = vadd.f32 1.0, %v4400_v36  ;;  %4421 = vrcp.f32 %v2124_v16 }
 0x5a6   :  { %7838 = vst [vmem:[#allocation71_spill] sm:$0xff] %v6132_v2  ;;  %v4404_v38 = vpop.eup %4403  ;;  %2165 = vrot.lane.b32.xlu0 %v6132_v2, %s4693_s1 }
 0x5a7   :  { %v6136_v59 = vpop.eup %4405  ;;  %v2126_v7 = vadd.f32 1.0, %v4404_v38  ;;  %4423 = vrcp.f32 %v2125_v8 }
 0x5a8   :  { %7839 = vst [vmem:[#allocation72_spill] sm:$0xff] %v6136_v59  ;;  %2173 = vrot.lane.b32.xlu1 %v6136_v59, %s4693_s1  ;;  %v6140_v44 = vpop.eup %4407 }
 0x5a9   :  { %7840 = vst [vmem:[#allocation73_spill] sm:$0xff] %v6140_v44  ;;  %v6144_v11 = vpop.eup %4409  ;;  %4425 = vrcp.f32 %v2126_v7 }
 0x5aa   :  { %2181 = vrot.lane.b32.xlu0 %v6140_v44, %s4693_s1  ;;  %7841 = vst [vmem:[#allocation74_spill] sm:$0xff] %v6144_v11  ;;  %v4412_v54 = vpop.eup %4411 }
 0x5ab   :  { %v4414_v26 = vpop.eup %4413  ;;  %v2127_v35 = vadd.f32 1.0, %v4412_v54 }
 0x5ac   :  { %2189 = vrot.lane.b32.xlu1 %v6144_v11, %s4693_s1  ;;  %v4416_v40 = vpop.eup %4415  ;;  %v2128_v22 = vadd.f32 1.0, %v4414_v26 }
 0x5ad   :  { %4427 = vrcp.f32 %v2127_v35  ;;  %v2129_v43 = vadd.f32 1.0, %v4416_v40 }
 0x5ae   :  { %2245 = vrot.lane.b32.xlu0 %v6132_v2, %s4694_s16  ;;  %4429 = vrcp.f32 %v2128_v22 }
 0x5af   :  { %4431 = vrcp.f32 %v2129_v43 }
 0x5b0   :  { %2253 = vrot.lane.b32.xlu1 %v6136_v59, %s4694_s16  ;;  %v6156_v19 = vpop.eup %4417 }
 0x5b1   :  { %7842 = vst [vmem:[#allocation75_spill] sm:$0xff] %v6156_v19  ;;  %v4420_v33 = vpop.eup %4419 }
 0x5b2   :  { %2261 = vrot.lane.b32.xlu0 %v6140_v44, %s4694_s16  ;;  %v6160_v63 = vpop.eup %4421  ;;  %v2130_v34 = vadd.f32 1.0, %v4420_v33 }
 0x5b3   :  { %7843 = vst [vmem:[#allocation76_spill] sm:$0xff] %v6160_v63 }
 0x5b4   :  { %2269 = vrot.lane.b32.xlu1 %v6144_v11, %s4694_s16  ;;  %v6164_v57 = vpop.eup %4423  ;;  %4433 = vrcp.f32 %v2130_v34 }
 0x5b5   :  { %7844 = vst [vmem:[#allocation77_spill] sm:$0xff] %v6164_v57 }
 0x5b6   :  { %2167 = vrot.lane.b32.xlu0 %v6156_v19, %s4693_s1  ;;  %v6168_v36 = vpop.eup %4425 }
 0x5b7   :  { %7845 = vst [vmem:[#allocation78_spill] sm:$0xff] %v6168_v36 }
 0x5b8   :  { %2175 = vrot.lane.b32.xlu1 %v6160_v63, %s4693_s1 }
 0x5ba   :  { %2183 = vrot.lane.b32.xlu0 %v6164_v57, %s4693_s1  ;;  %v6180_v4 = vpop.eup %4427 }
 0x5bb   :  { %7846 = vst [vmem:[#allocation79_spill] sm:$0xff] %v6180_v4  ;;  %v6184_v51 = vpop.eup %4429 }
 0x5bc   :  { %2191 = vrot.lane.b32.xlu1 %v6168_v36, %s4693_s1  ;;  %7847 = vst [vmem:[#allocation80_spill] sm:$0xff] %v6184_v51  ;;  %v6188_v38 = vpop.eup %4431 }
 0x5bd   :  { %7848 = vst [vmem:[#allocation81_spill] sm:$0xff] %v6188_v38 }
 0x5be   :  { %2247 = vrot.lane.b32.xlu0 %v6156_v19, %s4694_s16 }
 0x5c0   :  { %2255 = vrot.lane.b32.xlu1 %v6160_v63, %s4694_s16 }
 0x5c1   :  { %v6192_v16 = vpop.eup %4433 }
 0x5c2   :  { %2263 = vrot.lane.b32.xlu0 %v6164_v57, %s4694_s16  ;;  %7849 = vst [vmem:[#allocation82_spill] sm:$0xff] %v6192_v16 }
 0x5c4   :  { %2271 = vrot.lane.b32.xlu1 %v6168_v36, %s4694_s16 }
 0x5c6   :  { %2169 = vrot.lane.b32.xlu0 %v6180_v4, %s4693_s1 }
 0x5c8   :  { %2177 = vrot.lane.b32.xlu1 %v6184_v51, %s4693_s1 }
 0x5ca   :  { %2185 = vrot.lane.b32.xlu0 %v6188_v38, %s4693_s1 }
 0x5cc   :  { %2193 = vrot.lane.b32.xlu1 %v6192_v16, %s4693_s1 }
 0x5ce   :  { %2249 = vrot.lane.b32.xlu0 %v6180_v4, %s4694_s16 }
 0x5d0   :  { %2257 = vrot.lane.b32.xlu1 %v6184_v51, %s4694_s16 }
 0x5d2   :  { %2265 = vrot.lane.b32.xlu0 %v6188_v38, %s4694_s16 }
 0x5d4   :  { %2273 = vrot.lane.b32.xlu1 %v6192_v16, %s4694_s16 }
 0x5d6   :  { %2243 = vrot.lane.b32.xlu0 %v6115_v50, %s4694_s16 }
 0x5d8   :  { %2251 = vrot.lane.b32.xlu1 %v6120_v23, %s4694_s16 }
 0x5da   :  { %2259 = vrot.lane.b32.xlu0 %v6124_v47, %s4694_s16 }
 0x5dc   :  { %2267 = vrot.lane.b32.xlu1 %v6128_v52, %s4694_s16 }
 0x610   :  { %v2164_v8 = vpop.permute.xlu0 %2163 }
 0x612   :  { %v2172_v7 = vpop.permute.xlu1 %2171 }
 0x613   :  { %v2203_v28 = vsel %vm523_vm4, %v2164_v8, %v2172_v7 }
 0x614   :  { %v2180_v54 = vpop.permute.xlu0 %2179  ;;  %v2212_v62 = vmul.f32 %v7851_v21, %v2203_v28 }
 0x615   :  { %v2199_v32 = vsel %vm523_vm4, %v2172_v7, %v2180_v54 }
 0x616   :  { %v2188_v26 = vpop.permute.xlu1 %2187  ;;  %v2213_v49 = vmul.f32 %v7852_v15, %v2199_v32  ;;  %v2228_v7 = vadd.f32 %v6120_v23, %v2212_v62 }
 0x617   :  { %v2207_v27 = vsel %vm523_vm4, %v2188_v26, %v2164_v8  ;;  %v2195_v25 = vsel %vm523_vm4, %v2180_v54, %v2188_v26 }
 0x618   :  { %v2166_v40 = vpop.permute.xlu0 %2165  ;;  %v2211_v5 = vmul.f32 %v7850_v37, %v2207_v27  ;;  %v2229_v32 = vadd.f32 %v6124_v47, %v2213_v49  ;;  %v2214_v54 = vmul.f32 %v7854_v58, %v2195_v25  ;;  %v7856_v49 = vld [vmem:[#allocation28_spill] sm:$0xff] }
 0x61a   :  { %v2174_v35 = vpop.permute.xlu1 %2173  ;;  %v2227_v8 = vadd.f32 %v6115_v50, %v2211_v5  ;;  %v2230_v23 = vadd.f32 %v6128_v52, %v2214_v54  ;;  %v7862_v52 = vld [vmem:[#allocation20_spill] sm:$0xff] }
 0x61c   :  { %v2182_v33 = vpop.permute.xlu0 %2181 }
 0x61e   :  { %v2190_v22 = vpop.permute.xlu1 %2189 }
 0x61f   :  { %v2208_v27 = vsel %vm523_vm4, %v2190_v22, %v2166_v40 }
 0x620   :  { %v6212_v43 = vpop.permute.xlu0 %2245  ;;  %v2215_v25 = vmul.f32 %v7850_v37, %v2208_v27 }
 0x622   :  { %v2254_v34 = vpop.permute.xlu1 %2253 }
 0x623   :  { %v2284_v62 = vsel %vm604_vm10, %v6212_v43, %v2254_v34 }
 0x624   :  { %v2262_v17 = vpop.permute.xlu0 %2261 }
 0x626   :  { %v2270_v56 = vpop.permute.xlu1 %2269 }
 0x628   :  { %v6214_v31 = vpop.permute.xlu0 %2167 }
 0x62a   :  { %v6216_v20 = vpop.permute.xlu1 %2175 }
 0x62c   :  { %v6218_v30 = vpop.permute.xlu0 %2183 }
 0x62e   :  { %v6220_v61 = vpop.permute.xlu1 %2191 }
 0x630   :  { %v6222_v3 = vpop.permute.xlu0 %2247 }
 0x632   :  { %v6224_v12 = vpop.permute.xlu1 %2255 }
 0x634   :  { %v6226_v18 = vpop.permute.xlu0 %2263 }
 0x636   :  { %v6228_v0 = vpop.permute.xlu1 %2271 }
 0x638   :  { %v6230_v9 = vpop.permute.xlu0 %2169 }
 0x63a   :  { %v6232_v53 = vpop.permute.xlu1 %2177 }
 0x63c   :  { %v6234_v48 = vpop.permute.xlu0 %2185 }
 0x63e   :  { %v6236_v46 = vpop.permute.xlu1 %2193 }
 0x640   :  { %v6238_v60 = vpop.permute.xlu0 %2249 }
 0x642   :  { %v6240_v41 = vpop.permute.xlu1 %2257 }
 0x644   :  { %v6242_v39 = vpop.permute.xlu0 %2265 }
 0x646   :  { %v6248_v1 = vpop.permute.xlu1 %2273 }
 0x648   :  { %v2244_v10 = vpop.permute.xlu0 %2243 }
 0x64a   :  { %v2252_v14 = vpop.permute.xlu1 %2251 }
 0x64b   :  { %v2283_v6 = vsel %vm604_vm10, %v2244_v10, %v2252_v14 }
 0x64c   :  { %v2291_v13 = vmul.f32 %v7853_v42, %v2283_v6  ;;  %v2260_v55 = vpop.permute.xlu0 %2259  ;;  %v2204_v6 = vsel %vm523_vm4, %v2166_v40, %v2174_v35  ;;  %v2200_v40 = vsel %vm523_vm4, %v2174_v35, %v2182_v33  ;;  %v2276_v35 = vsel %vm604_vm10, %v2262_v17, %v2270_v56 }
 0x64d   :  { %v2279_v28 = vsel %vm604_vm10, %v2252_v14, %v2260_v55  ;;  %v2217_v27 = vmul.f32 %v7852_v15, %v2200_v40  ;;  %v2285_v40 = vsel %vm604_vm10, %v6222_v3, %v6224_v12 }
 0x64e   :  { %v6268_v26 = vadd.f32 %v2291_v13, %v2227_v8  ;;  %v2292_v24 = vmul.f32 %v7855_v45, %v2279_v28  ;;  %v2268_v5 = vpop.permute.xlu1 %2267  ;;  %v7857_v28 = vld [vmem:[#allocation29_spill] sm:$0xff] }
 0x64f   :  { %v2275_v50 = vsel %vm604_vm10, %v2260_v55, %v2268_v5  ;;  %v2287_v14 = vsel %vm604_vm10, %v2268_v5, %v2244_v10  ;;  %v2280_v55 = vsel %vm604_vm10, %v2254_v34, %v2262_v17  ;;  %v2216_v10 = vmul.f32 %v7851_v21, %v2204_v6 }
 0x650   :  { %v6281_v13 = vadd.f32 %v2292_v24, %v2228_v7  ;;  %v2293_v8 = vmul.f32 %v7856_v49, %v2275_v50  ;;  %v2294_v47 = vmul.f32 %v7857_v28, %v2287_v14  ;;  %2323 = vrot.lane.b32.xlu0 %v6268_v26, %s4695_s17  ;;  %v2295_v24 = vmul.f32 %v7853_v42, %v2284_v62 }
 0x651   :  { %v2196_v50 = vsel %vm523_vm4, %v2182_v33, %v2190_v22  ;;  %v2231_v34 = vadd.f32 %v6132_v2, %v2215_v25  ;;  %v2296_v54 = vmul.f32 %v7855_v45, %v2280_v55  ;;  %v2232_v33 = vadd.f32 %v6136_v59, %v2216_v10 }
 0x652   :  { %v6294_v7 = vadd.f32 %v2293_v8, %v2229_v32  ;;  %2331 = vrot.lane.b32.xlu1 %v6281_v13, %s4695_s17  ;;  %v6305_v5 = vadd.f32 %v2294_v47, %v2230_v23  ;;  %v2288_v32 = vsel %vm604_vm10, %v2270_v56, %v6212_v43  ;;  %v2218_v22 = vmul.f32 %v7854_v58, %v2196_v50 }
 0x653   :  { %v6314_v17 = vadd.f32 %v2295_v24, %v2231_v34  ;;  %v2297_v6 = vmul.f32 %v7856_v49, %v2276_v35  ;;  %v2233_v23 = vadd.f32 %v6140_v44, %v2217_v27  ;;  %v6320_v47 = vadd.f32 %v2296_v54, %v2232_v33 }
 0x654   :  { %2339 = vrot.lane.b32.xlu0 %v6294_v7, %s4695_s17  ;;  %v2298_v62 = vmul.f32 %v7857_v28, %v2288_v32  ;;  %v2234_v56 = vadd.f32 %v6144_v11, %v2218_v22  ;;  %v2209_v25 = vsel %vm523_vm4, %v6220_v61, %v6214_v31  ;;  %v2205_v8 = vsel %vm523_vm4, %v6214_v31, %v6216_v20 }
 0x655   :  { %v6326_v43 = vadd.f32 %v2297_v6, %v2233_v23  ;;  %v2219_v55 = vmul.f32 %v7850_v37, %v2209_v25  ;;  %v2201_v10 = vsel %vm523_vm4, %v6216_v20, %v6218_v30  ;;  %v2281_v31 = vsel %vm604_vm10, %v6224_v12, %v6226_v18 }
 0x656   :  { %2347 = vrot.lane.b32.xlu1 %v6305_v5, %s4695_s17  ;;  %v6330_v14 = vadd.f32 %v2298_v62, %v2234_v56  ;;  %v2220_v24 = vmul.f32 %v7851_v21, %v2205_v8  ;;  %v2299_v50 = vmul.f32 %v7853_v42, %v2285_v40  ;;  %v2197_v35 = vsel %vm523_vm4, %v6218_v30, %v6220_v61 }
 0x657   :  { %v2277_v20 = vsel %vm604_vm10, %v6226_v18, %v6228_v0  ;;  %v2221_v27 = vmul.f32 %v7852_v15, %v2201_v10  ;;  %v2235_v12 = vadd.f32 %v6156_v19, %v2219_v55  ;;  %v2300_v34 = vmul.f32 %v7855_v45, %v2281_v31 }
 0x658   :  { %2325 = vrot.lane.b32.xlu0 %v6314_v17, %s4695_s17  ;;  %v2289_v54 = vsel %vm604_vm10, %v6228_v0, %v6222_v3  ;;  %v2236_v30 = vadd.f32 %v6160_v63, %v2220_v24  ;;  %v2222_v61 = vmul.f32 %v7854_v58, %v2197_v35  ;;  %v2301_v18 = vmul.f32 %v7856_v49, %v2277_v20 }
 0x659   :  { %v6382_v32 = vadd.f32 %v2299_v50, %v2235_v12  ;;  %v2237_v33 = vadd.f32 %v6164_v57, %v2221_v27  ;;  %v2302_v6 = vmul.f32 %v7857_v28, %v2289_v54  ;;  %v2210_v62 = vsel %vm523_vm4, %v6236_v46, %v6230_v9 }
 0x65a   :  { %2333 = vrot.lane.b32.xlu1 %v6320_v47, %s4695_s17  ;;  %v6388_v22 = vadd.f32 %v2300_v34, %v2236_v30  ;;  %v2238_v0 = vadd.f32 %v6168_v36, %v2222_v61  ;;  %v2206_v56 = vsel %vm523_vm4, %v6230_v9, %v6232_v53  ;;  %v2286_v25 = vsel %vm604_vm10, %v6238_v60, %v6240_v41  ;;  %v4207_v30 = vld [vmem:[%s7584_s4 + $0x78] sm:$0xff]  ;;  %v4206_v61 = vld [vmem:[%s7584_s4 + $0x70] sm:$0xff] }
 0x65b   :  { %v6394_v3 = vadd.f32 %v2301_v18, %v2237_v33  ;;  %v2223_v8 = vmul.f32 %v7850_v37, %v2210_v62  ;;  %v2202_v40 = vsel %vm523_vm4, %v6232_v53, %v6234_v48  ;;  %v2282_v9 = vsel %vm604_vm10, %v6240_v41, %v6242_v39  ;;  %v4205_v18 = vld [vmem:[%s7584_s4 + $0x68] sm:$0xff]  ;;  %v4204_v33 = vld [vmem:[%s7584_s4 + $0x60] sm:$0xff] }
 0x65c   :  { %2341 = vrot.lane.b32.xlu0 %v6326_v43, %s4695_s17  ;;  %v6398_v23 = vadd.f32 %v2302_v6, %v2238_v0  ;;  %v2224_v55 = vmul.f32 %v7851_v21, %v2206_v56  ;;  %v2303_v10 = vmul.f32 %v7853_v42, %v2286_v25  ;;  %v2198_v31 = vsel %vm523_vm4, %v6234_v48, %v6236_v46  ;;  %v7860_v42 = vld [vmem:[#allocation31_spill] sm:$0xff]  ;;  %v7861_v21 = vld [vmem:[#allocation32_spill] sm:$0xff] }
 0x65d   :  { %v2278_v53 = vsel %vm604_vm10, %v6242_v39, %v6248_v1  ;;  %v2225_v24 = vmul.f32 %v7852_v15, %v2202_v40  ;;  %v2239_v41 = vadd.f32 %v6180_v4, %v2223_v8  ;;  %v2304_v50 = vmul.f32 %v7855_v45, %v2282_v9 }
 0x65e   :  { %2349 = vrot.lane.b32.xlu1 %v6330_v14, %s4695_s17  ;;  %v2290_v35 = vsel %vm604_vm10, %v6248_v1, %v6238_v60  ;;  %v2240_v46 = vadd.f32 %v6184_v51, %v2224_v55  ;;  %v2226_v48 = vmul.f32 %v7854_v58, %v2198_v31  ;;  %v2305_v39 = vmul.f32 %v7856_v49, %v2278_v53 }
 0x65f   :  { %v6450_v20 = vadd.f32 %v2303_v10, %v2239_v41  ;;  %v2241_v27 = vadd.f32 %v6188_v38, %v2225_v24  ;;  %v2306_v34 = vmul.f32 %v7857_v28, %v2290_v35  ;;  %v7859_v28 = vld [vmem:[#allocation19_spill] sm:$0xff] }
 0x660   :  { %2405 = vrot.lane.b32.xlu0 %v6314_v17, %s4696_s18  ;;  %v6456_v12 = vadd.f32 %v2304_v50, %v2240_v46  ;;  %v2242_v60 = vadd.f32 %v6192_v16, %v2226_v48 }
 0x661   :  { %v6462_v1 = vadd.f32 %v2305_v39, %v2241_v27 }
 0x662   :  { %2413 = vrot.lane.b32.xlu1 %v6320_v47, %s4696_s18  ;;  %v6466_v54 = vadd.f32 %v2306_v34, %v2242_v60  ;;  %v7858_v60 = vld [vmem:[#allocation21_spill] sm:$0xff] }
 0x664   :  { %2421 = vrot.lane.b32.xlu0 %v6326_v43, %s4696_s18 }
 0x666   :  { %2429 = vrot.lane.b32.xlu1 %v6330_v14, %s4696_s18 }
 0x668   :  { %2327 = vrot.lane.b32.xlu0 %v6382_v32, %s4695_s17 }
 0x66a   :  { %2335 = vrot.lane.b32.xlu1 %v6388_v22, %s4695_s17 }
 0x66c   :  { %2343 = vrot.lane.b32.xlu0 %v6394_v3, %s4695_s17 }
 0x66e   :  { %2351 = vrot.lane.b32.xlu1 %v6398_v23, %s4695_s17 }
 0x670   :  { %2407 = vrot.lane.b32.xlu0 %v6382_v32, %s4696_s18 }
 0x672   :  { %2415 = vrot.lane.b32.xlu1 %v6388_v22, %s4696_s18 }
 0x674   :  { %2423 = vrot.lane.b32.xlu0 %v6394_v3, %s4696_s18 }
 0x676   :  { %2431 = vrot.lane.b32.xlu1 %v6398_v23, %s4696_s18 }
 0x678   :  { %2329 = vrot.lane.b32.xlu0 %v6450_v20, %s4695_s17 }
 0x67a   :  { %2337 = vrot.lane.b32.xlu1 %v6456_v12, %s4695_s17 }
 0x67c   :  { %2345 = vrot.lane.b32.xlu0 %v6462_v1, %s4695_s17 }
 0x67e   :  { %2353 = vrot.lane.b32.xlu1 %v6466_v54, %s4695_s17 }
 0x680   :  { %2409 = vrot.lane.b32.xlu0 %v6450_v20, %s4696_s18 }
 0x682   :  { %2417 = vrot.lane.b32.xlu1 %v6456_v12, %s4696_s18 }
 0x684   :  { %2425 = vrot.lane.b32.xlu0 %v6462_v1, %s4696_s18 }
 0x686   :  { %2433 = vrot.lane.b32.xlu1 %v6466_v54, %s4696_s18 }
 0x688   :  { %2403 = vrot.lane.b32.xlu0 %v6268_v26, %s4696_s18 }
 0x68a   :  { %2411 = vrot.lane.b32.xlu1 %v6281_v13, %s4696_s18 }
 0x68c   :  { %2419 = vrot.lane.b32.xlu0 %v6294_v7, %s4696_s18 }
 0x68e   :  { %2427 = vrot.lane.b32.xlu1 %v6305_v5, %s4696_s18 }
 0x690   :  { %2890 = vperm.xlu0 %4239, %v4207_v30  }
 0x692   :  { %2885 = vperm.xlu1 %4240, %v4206_v61  }
 0x694   :  { %2880 = vperm.xlu0 %4239, %v4205_v18  }
 0x696   :  { %2875 = vperm.xlu1 %4240, %v4204_v33  }
 0x6c2   :  { %v2324_v6 = vpop.permute.xlu0 %2323 }
 0x6c4   :  { %v2332_v0 = vpop.permute.xlu1 %2331 }
 0x6c5   :  { %v2363_v18 = vsel %vm685_vm15, %v2324_v6, %v2332_v0 }
 0x6c6   :  { %v2340_v62 = vpop.permute.xlu0 %2339 }
 0x6c7   :  { %v2359_v33 = vsel %vm685_vm15, %v2332_v0, %v2340_v62 }
 0x6c8   :  { %v2348_v56 = vpop.permute.xlu1 %2347  ;;  %v2373_v44 = vmul.f32 %v7862_v52, %v2359_v33 }
 0x6c9   :  { %v2355_v58 = vsel %vm685_vm15, %v2340_v62, %v2348_v56 }
 0x6ca   :  { %v2326_v25 = vpop.permute.xlu0 %2325 }
 0x6cc   :  { %v2334_v8 = vpop.permute.xlu1 %2333 }
 0x6cd   :  { %v2364_v39 = vsel %vm685_vm15, %v2326_v25, %v2334_v8 }
 0x6ce   :  { %v2342_v40 = vpop.permute.xlu0 %2341  ;;  %v2376_v49 = vmul.f32 %v7859_v28, %v2364_v39 }
 0x6d0   :  { %v2350_v9 = vpop.permute.xlu1 %2349 }
 0x6d1   :  { %v2368_v46 = vsel %vm685_vm15, %v2350_v9, %v2326_v25  ;;  %v2360_v25 = vsel %vm685_vm15, %v2334_v8, %v2342_v40  ;;  %v2372_v8 = vmul.f32 %v7859_v28, %v2363_v18 }
 0x6d2   :  { %v2406_v55 = vpop.permute.xlu0 %2405  ;;  %v2375_v30 = vmul.f32 %v7858_v60, %v2368_v46  ;;  %v2367_v46 = vsel %vm685_vm15, %v2348_v56, %v2324_v6  ;;  %v2377_v62 = vmul.f32 %v7862_v52, %v2360_v25  ;;  %v7863_v56 = vld [vmem:[#allocation30_spill] sm:$0xff] }
 0x6d3   :  { %v2371_v6 = vmul.f32 %v7858_v60, %v2367_v46  ;;  %v6538_v25 = vadd.f32 %v2372_v8, %v6281_v13 }
 0x6d4   :  { %v2414_v10 = vpop.permute.xlu1 %2413  ;;  %v2391_v11 = vadd.f32 %v2375_v30, %v6314_v17  ;;  %v6541_v17 = vadd.f32 %v2373_v44, %v6294_v7  ;;  %v7865_v44 = vld [vmem:[#allocation34_spill] sm:$0xff] }
 0x6d5   :  { %v2444_v27 = vsel %vm766_vm2, %v2406_v55, %v2414_v10 }
 0x6d6   :  { %v2422_v31 = vpop.permute.xlu0 %2421  ;;  %v2455_v15 = vmul.f32 %v7860_v42, %v2444_v27 }
 0x6d7   :  { %v2440_v61 = vsel %vm766_vm2, %v2414_v10, %v2422_v31  ;;  %v2356_v10 = vsel %vm685_vm15, %v2342_v40, %v2350_v9  ;;  %v2374_v40 = vmul.f32 %v7863_v56, %v2355_v58  ;;  %v2392_v9 = vadd.f32 %v2376_v49, %v6320_v47 }
 0x6d8   :  { %v2430_v53 = vpop.permute.xlu1 %2429  ;;  %v2456_v37 = vmul.f32 %v7861_v21, %v2440_v61  ;;  %v2378_v27 = vmul.f32 %v7863_v56, %v2356_v10  ;;  %v2471_v2 = vadd.f32 %v2455_v15, %v2391_v11  ;;  %v2393_v58 = vadd.f32 %v2377_v62, %v6326_v43 }
 0x6d9   :  { %v2436_v0 = vsel %vm766_vm2, %v2422_v31, %v2430_v53  ;;  %v7864_v31 = vld [vmem:[#allocation33_spill] sm:$0xff]  ;;  %v2448_v18 = vsel %vm766_vm2, %v2430_v53, %v2406_v55  ;;  %v6547_v15 = vadd.f32 %v2371_v6, %v6268_v26  ;;  %v6550_v11 = vadd.f32 %v2374_v40, %v6305_v5 }
 0x6da   :  { %v2328_v24 = vpop.permute.xlu0 %2327  ;;  %v2457_v57 = vmul.f32 %v7864_v31, %v2436_v0  ;;  %v2472_v36 = vadd.f32 %v2456_v37, %v2392_v9  ;;  %v2394_v47 = vadd.f32 %v2378_v27, %v6330_v14  ;;  %v6555_v55 = vmul.f32 0.11111111, %v2471_v2 }
 0x6db   :  { %v2458_v7 = vmul.f32 %v7865_v44, %v2448_v18 }
 0x6dc   :  { %v2336_v41 = vpop.permute.xlu1 %2335  ;;  %v2473_v43 = vadd.f32 %v2457_v57, %v2393_v58  ;;  %v6565_v46 = vmul.f32 0.11111111, %v2472_v36 }
 0x6dd   :  { %v2365_v49 = vsel %vm685_vm15, %v2328_v24, %v2336_v41  ;;  %v2474_v6 = vadd.f32 %v2458_v7, %v2394_v47 }
 0x6de   :  { %v2344_v50 = vpop.permute.xlu0 %2343  ;;  %v2380_v26 = vmul.f32 %v7859_v28, %v2365_v49 }
 0x6df   :  { %v2361_v37 = vsel %vm685_vm15, %v2336_v41, %v2344_v50 }
 0x6e0   :  { %v2352_v35 = vpop.permute.xlu1 %2351  ;;  %v2381_v2 = vmul.f32 %v7862_v52, %v2361_v37  ;;  %v2396_v40 = vadd.f32 %v2380_v26, %v6388_v22 }
 0x6e1   :  { %v2369_v53 = vsel %vm685_vm15, %v2352_v35, %v2328_v24  ;;  %v2357_v5 = vsel %vm685_vm15, %v2344_v50, %v2352_v35 }
 0x6e2   :  { %v2408_v48 = vpop.permute.xlu0 %2407  ;;  %v2379_v10 = vmul.f32 %v7858_v60, %v2369_v53  ;;  %v2382_v8 = vmul.f32 %v7863_v56, %v2357_v5  ;;  %v2397_v18 = vadd.f32 %v2381_v2, %v6394_v3 }
 0x6e4   :  { %v2416_v34 = vpop.permute.xlu1 %2415  ;;  %v2395_v47 = vadd.f32 %v2379_v10, %v6382_v32 }
 0x6e5   :  { %v2445_v41 = vsel %vm766_vm2, %v2408_v48, %v2416_v34 }
 0x6e6   :  { %v2424_v45 = vpop.permute.xlu0 %2423  ;;  %v2459_v9 = vmul.f32 %v7860_v42, %v2445_v41 }
 0x6e7   :  { %v2441_v14 = vsel %vm766_vm2, %v2416_v34, %v2424_v45 }
 0x6e8   :  { %v2432_v39 = vpop.permute.xlu1 %2431  ;;  %v2460_v34 = vmul.f32 %v7861_v21, %v2441_v14  ;;  %v2475_v26 = vadd.f32 %v2459_v9, %v2395_v47 }
 0x6e9   :  { %v2449_v50 = vsel %vm766_vm2, %v2432_v39, %v2408_v48  ;;  %v2437_v48 = vsel %vm766_vm2, %v2424_v45, %v2432_v39 }
 0x6ea   :  { %v2330_v61 = vpop.permute.xlu0 %2329  ;;  %v2476_v7 = vadd.f32 %v2460_v34, %v2396_v40  ;;  %v2461_v3 = vmul.f32 %v7864_v31, %v2437_v48 }
 0x6ec   :  { %v2338_v33 = vpop.permute.xlu1 %2337 }
 0x6ed   :  { %v2366_v57 = vsel %vm685_vm15, %v2330_v61, %v2338_v33 }
 0x6ee   :  { %v2346_v13 = vpop.permute.xlu0 %2345  ;;  %v2384_v27 = vmul.f32 %v7859_v28, %v2366_v57 }
 0x6ef   :  { %v2362_v36 = vsel %vm685_vm15, %v2338_v33, %v2346_v13  ;;  %v2462_v33 = vmul.f32 %v7865_v44, %v2449_v50 }
 0x6f0   :  { %v2354_v30 = vpop.permute.xlu1 %2353  ;;  %v2385_v58 = vmul.f32 %v7862_v52, %v2362_v36  ;;  %v2400_v5 = vadd.f32 %v2384_v27, %v6456_v12  ;;  %v6612_v36 = vmul.f32 0.11111111, %v2473_v43  ;;  %v6626_v27 = vmul.f32 0.11111111, %v2474_v6 }
 0x6f1   :  { %v2370_v24 = vsel %vm685_vm15, %v2354_v30, %v2330_v61  ;;  %v2358_v62 = vsel %vm685_vm15, %v2346_v13, %v2354_v30  ;;  %v2398_v13 = vadd.f32 %v2382_v8, %v6398_v23  ;;  %v2477_v8 = vadd.f32 %v2461_v3, %v2397_v18 }
 0x6f2   :  { %v2383_v35 = vmul.f32 %v7858_v60, %v2370_v24  ;;  %v2410_v0 = vpop.permute.xlu0 %2409  ;;  %v2386_v22 = vmul.f32 %v7863_v56, %v2358_v62  ;;  %v7903_v56 = vld [vmem:[#allocation26_spill] sm:$0xff]  ;;  %v7905_v60 = vld [vmem:[#allocation27_spill] sm:$0xff] }
 0x6f3   :  { %v2478_v2 = vadd.f32 %v2462_v33, %v2398_v13  ;;  %v2493_v47 = vmul.f32 0.11111111, %v2477_v8 }
 0x6f4   :  { %v2418_v61 = vpop.permute.xlu1 %2417  ;;  %v2399_v37 = vadd.f32 %v2383_v35, %v6450_v20  ;;  %v2401_v20 = vadd.f32 %v2385_v58, %v6462_v1  ;;  %v2402_v57 = vadd.f32 %v2386_v22, %v6466_v54  ;;  %v6614_v35 = vmul.f32 0.11111111, %v2476_v7 }
 0x6f5   :  { %v2446_v49 = vsel %vm766_vm2, %v2410_v0, %v2418_v61  ;;  %v2504_v54 = vsub.f32 %v6136_v59, %v6565_v46  ;;  %v6622_v48 = vmul.f32 0.11111111, %v2478_v2 }
 0x6f6   :  { %v2463_v45 = vmul.f32 %v7860_v42, %v2446_v49  ;;  %v2426_v39 = vpop.permute.xlu0 %2425 }
 0x6f7   :  { %v2442_v53 = vsel %vm766_vm2, %v2418_v61, %v2426_v39 }
 0x6f8   :  { %v2479_v14 = vadd.f32 %v2463_v45, %v2399_v37  ;;  %v2464_v32 = vmul.f32 %v7861_v21, %v2442_v53  ;;  %v2434_v30 = vpop.permute.xlu1 %2433  ;;  %v2508_v45 = vsub.f32 %v6160_v63, %v6614_v35 }
 0x6f9   :  { %v2438_v41 = vsel %vm766_vm2, %v2426_v39, %v2434_v30  ;;  %v2450_v23 = vsel %vm766_vm2, %v2434_v30, %v2410_v0  ;;  %v6620_v0 = vmul.f32 0.11111111, %v2475_v26 }
 0x6fa   :  { %v2480_v24 = vadd.f32 %v2464_v32, %v2400_v5  ;;  %v2465_v10 = vmul.f32 %v7864_v31, %v2438_v41  ;;  %v2466_v12 = vmul.f32 %v7865_v44, %v2450_v23  ;;  %v2404_v50 = vpop.permute.xlu0 %2403  ;;  %v6616_v1 = vmul.f32 0.11111111, %v2479_v14  ;;  %v7866_v14 = vld [vmem:[#allocation78_spill] sm:$0xff] }
 0x6fb   :  { %v2507_v53 = vsub.f32 %v6156_v19, %v6620_v0  ;;  %v2510_v32 = vsub.f32 %v7866_v14, %v6622_v48 }
 0x6fc   :  { %v2496_v34 = vmul.f32 0.11111111, %v2480_v24  ;;  %v2481_v62 = vadd.f32 %v2465_v10, %v2401_v20  ;;  %v2482_v40 = vadd.f32 %v2466_v12, %v2402_v57  ;;  %v2412_v9 = vpop.permute.xlu1 %2411  ;;  %v2511_v22 = vsub.f32 %v6180_v4, %v6616_v1  ;;  %v7867_v20 = vld [vmem:[#allocation77_spill] sm:$0xff]  ;;  %v7868_v57 = vld [vmem:[#allocation71_spill] sm:$0xff] }
 0x6fd   :  { %v2443_v43 = vsel %vm766_vm2, %v2404_v50, %v2412_v9  ;;  %v2509_v41 = vsub.f32 %v7867_v20, %v2493_v47  ;;  %v2503_v24 = vsub.f32 %v7868_v57, %v6555_v55 }
 0x6fe   :  { %v2497_v61 = vmul.f32 0.11111111, %v2481_v62  ;;  %v2498_v18 = vmul.f32 0.11111111, %v2482_v40  ;;  %v2451_v33 = vmul.f32 %v7860_v42, %v2443_v43  ;;  %v2420_v58 = vpop.permute.xlu0 %2419  ;;  %v2512_v49 = vsub.f32 %v6184_v51, %v2496_v34  ;;  %v7870_v62 = vld [vmem:[#allocation73_spill] sm:$0xff] }
 0x6ff   :  { %v2439_v37 = vsel %vm766_vm2, %v2412_v9, %v2420_v58  ;;  %v2505_v40 = vsub.f32 %v7870_v62, %v6612_v36  ;;  %v7904_v42 = vld [vmem:[#allocation25_spill] sm:$0xff] }
 0x700   :  { %v2513_v6 = vsub.f32 %v6188_v38, %v2497_v61  ;;  %v2467_v39 = vadd.f32 %v2451_v33, %v6547_v15  ;;  %v2452_v13 = vmul.f32 %v7861_v21, %v2439_v37  ;;  %v2428_v7 = vpop.permute.xlu1 %2427  ;;  %2581 = vmatprep.subr.mxu0 %v2512_v49  ;;  %v2514_v3 = vsub.f32 %v6192_v16, %v2498_v18  ;;  %v7871_v33 = vld [vmem:[#allocation68_spill] sm:$0xff]  ;;  %v7872_v49 = vld [vmem:[#allocation67_spill] sm:$0xff]  ;;  %v7874_v37 = vld [vmem:[#allocation70_spill] sm:$0xff] }
 0x701   :  { %v2435_v26 = vsel %vm766_vm2, %v2420_v58, %v2428_v7  ;;  %v2447_v5 = vsel %vm766_vm2, %v2428_v7, %v2404_v50  ;;  %2582 = vmatpush1.msra.mxu0 %v2511_v22 }
 0x702   :  { %v2468_v15 = vadd.f32 %v2452_v13, %v6538_v25  ;;  %v2453_v30 = vmul.f32 %v7864_v31, %v2435_v26  ;;  %v2454_v2 = vmul.f32 %v7865_v44, %v2447_v5  ;;  %2583 = vmatprep.subr.mxu0 %v2508_v45  ;;  %2670 = vmatprep.subr.mxu1 %v2514_v3  ;;  %v2483_v23 = vmul.f32 0.11111111, %v2467_v39  ;;  %v7869_v25 = vld [vmem:[#allocation74_spill] sm:$0xff] }
 0x703   :  { %2584 = vmatpush1.msra.mxu0 %v2507_v53  ;;  %2671 = vmatpush1.msra.mxu1 %v2513_v6  ;;  %v2506_v8 = vsub.f32 %v7869_v25, %v6626_v27  ;;  %v4185_v6 = vld [vmem:[%s7585_s2 + $0x88] sm:$0xff]  ;;  %v7875_v39 = vmov 0.0  }
 0x704   :  { %v2484_v10 = vmul.f32 0.11111111, %v2468_v15  ;;  %v2469_v12 = vadd.f32 %v2453_v30, %v6541_v17  ;;  %v2470_v50 = vadd.f32 %v2454_v2, %v6550_v11  ;;  %2585 = vmatprep.subr.mxu0 %v2504_v54  ;;  %2672 = vmatprep.subr.mxu1 %v2510_v32  ;;  %v2499_v22 = vsub.f32 %v7872_v49, %v2483_v23  ;;  %v4184_v17 = vld [vmem:[%s7585_s2 + $0x80] sm:$0xff]  ;;  %v7873_v11 = vld [vmem:[#allocation69_spill] sm:$0xff] }
 0x705   :  { %2586 = vmatpush1.msra.mxu0 %v2503_v24  ;;  %2673 = vmatpush1.msra.mxu1 %v2509_v41 }
 0x706   :  { %v2485_v9 = vmul.f32 0.11111111, %v2469_v12  ;;  %v2486_v43 = vmul.f32 0.11111111, %v2470_v50  ;;  %2674 = vmatprep.subr.mxu1 %v2506_v8  ;;  %v2500_v58 = vsub.f32 %v7871_v33, %v2484_v10 }
 0x707   :  { %2675 = vmatpush1.msra.mxu1 %v2505_v40 }
 0x708   :  { %v2501_v54 = vsub.f32 %v7873_v11, %v2485_v9  ;;  %2587 = vmatprep.subr.mxu0 %v2500_v58  ;;  %v2502_v45 = vsub.f32 %v7874_v37, %v2486_v43 }
 0x709   :  { %2588 = vmatpush1.msra.mxu0 %v2499_v22 }
 0x70a   :  { %4192 = vmatmul.mubr.msk.f32.vlgmr.msra.gmra.mxu0 %vm860_vm7, %v4184_v17  ;;  %2676 = vmatprep.subr.mxu1 %v2502_v45 }
 0x70b   :  { %2929 = vmatprep.subr.mxu0 %v2496_v34  ;;  %2677 = vmatpush1.msra.mxu1 %v2501_v54  ;;  %v4203_v34 = vld [vmem:[%s7585_s2 + $0x58] sm:$0xff]  ;;  %v6754_v30 = vpop.permute.xlu0 %2890 }
 0x70c   :  { %2930 = vmatpush1.msra.mxu0 %v6616_v1  ;;  %4196 = vmatmul.mubr.msk.f32.vlgmr.msra.gmra.mxu1 %vm860_vm7, %v4184_v17  ;;  %v4202_v1 = vld [vmem:[%s7585_s2 + $0x50] sm:$0xff] }
 0x70d   :  { %2931 = vmatprep.subr.mxu0 %v6614_v35  ;;  %3018 = vmatprep.subr.mxu1 %v2498_v18  ;;  %v4186_v35 = vld [vmem:[%s7585_s2 + $0x90] sm:$0xff]  ;;  %v2886_v53 = vpop.permute.xlu1 %2885 }
 0x70e   :  { %2627 = vmatprep.mubr.f32.mxu0 %v7875_v39  ;;  %2932 = vmatpush1.msra.mxu0 %v6620_v0 }
 0x70f   :  { %3019 = vmatpush1.msra.mxu1 %v2497_v61  ;;  %4193 = vmatmul.mubr.msk.f32.gmra.mxu0 %vm860_vm7, %v4185_v6 }
 0x710   :  { %2933 = vmatprep.subr.mxu0 %v6565_v46  ;;  %3020 = vmatprep.subr.mxu1 %v6622_v48  ;;  %v4200_v46 = vld [vmem:[%s7585_s2 + $0x40] sm:$0xff] }
 0x711   :  { %2716 = vmatprep.mubr.f32.mxu1 %v7875_v39  ;;  %2934 = vmatpush1.msra.mxu0 %v6555_v55  ;;  %v4187_v55 = vld [vmem:[%s7585_s2 + $0x98] sm:$0xff] }
 0x712   :  { %3021 = vmatpush1.msra.mxu1 %v2493_v47  ;;  %2935 = vmatprep.subr.mxu0 %v2484_v10 }
 0x713   :  { %4197 = vmatmul.mubr.msk.f32.gmra.mxu1 %vm860_vm7, %v4185_v6  ;;  %3022 = vmatprep.subr.mxu1 %v6626_v27 }
 0x714   :  { %2633 = vmatprep.mubr.f32.mxu0 %v7875_v39  ;;  %2936 = vmatpush1.msra.mxu0 %v2483_v23  ;;  %v2876_v23 = vpop.permute.xlu1 %2875 }
 0x715   :  { %3023 = vmatpush1.msra.mxu1 %v6612_v36  ;;  %4194 = vmatmul.mubr.msk.f32.gmra.mxu0 %vm860_vm7, %v4186_v35  ;;  %v4201_v36 = vld [vmem:[%s7585_s2 + $0x48] sm:$0xff] }
 0x716   :  { %3024 = vmatprep.subr.mxu1 %v2486_v43  ;;  %2722 = vmatprep.mubr.f32.mxu1 %v7875_v39  ;;  %v2881_v43 = vpop.permute.xlu0 %2880 }
 0x717   :  { %3025 = vmatpush1.msra.mxu1 %v2485_v9  ;;  %2639 = vmatprep.mubr.f32.mxu0 %v7875_v39 }
 0x718   :  { %4198 = vmatmul.mubr.msk.f32.gmra.mxu1 %vm860_vm7, %v4186_v35 }
 0x719   :  { %4195 = vmatmul.mubr.msk.f32.gmra.mxu0 %vm860_vm7, %v4187_v55  ;;  %2728 = vmatprep.mubr.f32.mxu1 %v7875_v39 }
 0x71a   :  { %2969 = vmatprep.mubr.f32.mxu0 %v7875_v39 }
 0x71c   :  { %4199 = vmatmul.mubr.msk.f32.gmra.mxu1 %vm860_vm7, %v4187_v55 }
 0x71d   :  { %4208 = vmatmul.mubr.msk.f32.vlgmr.msra.gmra.mxu0 %vm860_vm7, %v4200_v46  ;;  %3058 = vmatprep.mubr.f32.mxu1 %v7875_v39 }
 0x71e   :  { %2975 = vmatprep.mubr.f32.mxu0 %v7875_v39 }
 0x720   :  { %4212 = vmatmul.mubr.msk.f32.vlgmr.msra.gmra.mxu1 %vm860_vm7, %v4200_v46 }
 0x721   :  { %4209 = vmatmul.mubr.msk.f32.gmra.mxu0 %vm860_vm7, %v4201_v36  ;;  %3064 = vmatprep.mubr.f32.mxu1 %v7875_v39 }
 0x722   :  { %2981 = vmatprep.mubr.f32.mxu0 %v7875_v39 }
 0x724   :  { %4213 = vmatmul.mubr.msk.f32.gmra.mxu1 %vm860_vm7, %v4201_v36 }
 0x725   :  { %4210 = vmatmul.mubr.msk.f32.gmra.mxu0 %vm860_vm7, %v4202_v1  ;;  %3070 = vmatprep.mubr.f32.mxu1 %v7875_v39 }
 0x726   :  { %2987 = vmatprep.mubr.f32.mxu0 %v7875_v39 }
 0x728   :  { %4214 = vmatmul.mubr.msk.f32.gmra.mxu1 %vm860_vm7, %v4202_v1 }
 0x729   :  { %4211 = vmatmul.mubr.msk.f32.gmra.mxu0 %vm860_vm7, %v4203_v34  ;;  %3076 = vmatprep.mubr.f32.mxu1 %v7875_v39 }
 0x72a   :  { %3637 = vmatprep.mubr.f32.mxu0 %v7875_v39 }
 0x72c   :  { %4215 = vmatmul.mubr.msk.f32.gmra.mxu1 %vm860_vm7, %v4203_v34 }
 0x72d   :  { %3726 = vmatprep.mubr.f32.mxu1 %v7875_v39 }
 0x7ca   :  { %v6728_v0 = vpop.f32.mrf.mxu0 }
 0x7cb   :  { %7876 = vst [vmem:[#allocation83_spill] sm:$0xff] %v6728_v0 }
 0x7cc   :  { %v6730_v48 = vpop.f32.mrf.mxu0  ;;  %v6732_v27 = vpop.f32.mrf.mxu1 }
 0x7cd   :  { %7877 = vst [vmem:[#allocation84_spill] sm:$0xff] %v6730_v48  ;;  %7878 = vst [vmem:[#allocation85_spill] sm:$0xff] %v6732_v27 }
 0x7ce   :  { %v6736_v18 = vpop.f32.mrf.mxu1 }
 0x7cf   :  { %v6734_v61 = vpop.f32.mrf.mxu0  ;;  %7880 = vst [vmem:[#allocation87_spill] sm:$0xff] %v6736_v18 }
 0x7d0   :  { %7879 = vst [vmem:[#allocation86_spill] sm:$0xff] %v6734_v61 }
 0x7d1   :  { %v6738_v47 = vpop.f32.mrf.mxu0 }
 0x7d2   :  { %7881 = vst [vmem:[#allocation88_spill] sm:$0xff] %v6738_v47 }
 0x7d3   :  { %v6740_v13 = vpop.f32.mrf.mxu1 }
 0x7d4   :  { %7882 = vst [vmem:[#allocation89_spill] sm:$0xff] %v6740_v13 }
 0x7d5   :  { %v6742_v7 = vpop.f32.mrf.mxu0  ;;  %v6744_v3 = vpop.f32.mrf.mxu1 }
 0x7d6   :  { %7883 = vst [vmem:[#allocation90_spill] sm:$0xff] %v6742_v7  ;;  %7884 = vst [vmem:[#allocation91_spill] sm:$0xff] %v6744_v3 }
 0x7d7   :  { %v6746_v26 = vpop.f32.mrf.mxu0 }
 0x7d8   :  { %7885 = vst [vmem:[#allocation92_spill] sm:$0xff] %v6746_v26  ;;  %v6748_v5 = vpop.f32.mrf.mxu1 }
 0x7d9   :  { %7886 = vst [vmem:[#allocation93_spill] sm:$0xff] %v6748_v5  ;;  %v6750_v32 = vpop.f32.mrf.mxu0  ;;  %v7900_v5 = vld [vmem:[#allocation22_spill] sm:$0xff] }
 0x7da   :  { %7887 = vst [vmem:[#allocation94_spill] sm:$0xff] %v6750_v32  ;;  %v6752_v15 = vpop.f32.mrf.mxu1 }
 0x7db   :  { %7888 = vst [vmem:[#allocation95_spill] sm:$0xff] %v6752_v15  ;;  %v6756_v2 = vpop.f32.mrf.mxu0 }
 0x7dc   :  { %7889 = vst [vmem:[#allocation96_spill] sm:$0xff] %v6756_v2  ;;  %v6758_v41 = vpop.f32.mrf.mxu1  ;;  %v7902_v2 = vld [vmem:[#allocation24_spill] sm:$0xff] }
 0x7dd   :  { %7890 = vst [vmem:[#allocation97_spill] sm:$0xff] %v6758_v41  ;;  %v2971_v24 = vpop.f32.mrf.mxu0 }
 0x7de   :  { %v6760_v10 = vpop.f32.mrf.mxu1  ;;  %v2972_v12 = vadd.f32 %v2971_v24, %v2876_v23 }
 0x7df   :  { %7891 = vst [vmem:[#allocation98_spill] sm:$0xff] %v6760_v10  ;;  %v2973_v50 = vpop.f32.mrf.mxu0  ;;  %v7901_v10 = vld [vmem:[#allocation23_spill] sm:$0xff] }
 0x7e0   :  { %v3083_v8 = vsub.f32 0.0, %v2972_v12  ;;  %v2974_v40 = vadd.f32 %v2973_v50, %v2876_v23  ;;  %v3060_v9 = vpop.f32.mrf.mxu1 }
 0x7e1   :  { %v3061_v58 = vadd.f32 %v3060_v9, %v2876_v23  ;;  %v2977_v22 = vpop.f32.mrf.mxu0 }
 0x7e2   :  { %v3099_v17 = vmul.f32 1.442695, %v3083_v8  ;;  %v3084_v54 = vsub.f32 0.0, %v2974_v40  ;;  %v2978_v45 = vadd.f32 %v2977_v22, %v2881_v43  ;;  %v3062_v6 = vpop.f32.mrf.mxu1 }
 0x7e3   :  { %v3085_v35 = vsub.f32 0.0, %v3061_v58  ;;  %v3063_v55 = vadd.f32 %v3062_v6, %v2876_v23  ;;  %v2979_v46 = vpop.f32.mrf.mxu0 }
 0x7e4   :  { %4435 = vpow2.f32 %v3099_v17  ;;  %v3101_v36 = vmul.f32 1.442695, %v3084_v54  ;;  %v3087_v1 = vsub.f32 0.0, %v2978_v45  ;;  %v2980_v34 = vadd.f32 %v2979_v46, %v2881_v43  ;;  %v3066_v11 = vpop.f32.mrf.mxu1 }
 0x7e5   :  { %v3103_v24 = vmul.f32 1.442695, %v3085_v35  ;;  %v3086_v37 = vsub.f32 0.0, %v3063_v55  ;;  %v3067_v12 = vadd.f32 %v3066_v11, %v2881_v43  ;;  %v2983_v9 = vpop.f32.mrf.mxu0 }
 0x7e6   :  { %4437 = vpow2.f32 %v3101_v36  ;;  %v3107_v50 = vmul.f32 1.442695, %v3087_v1  ;;  %v3088_v62 = vsub.f32 0.0, %v2980_v34  ;;  %v3068_v25 = vpop.f32.mrf.mxu1  ;;  %v2984_v6 = vadd.f32 %v2983_v9, %v2886_v53 }
 0x7e7   :  { %4439 = vpow2.f32 %v3103_v24  ;;  %v3105_v8 = vmul.f32 1.442695, %v3086_v37  ;;  %v3089_v40 = vsub.f32 0.0, %v3067_v12  ;;  %v3069_v22 = vadd.f32 %v3068_v25, %v2881_v43  ;;  %v2985_v54 = vpop.f32.mrf.mxu0 }
 0x7e8   :  { %4441 = vpow2.f32 %v3107_v50  ;;  %v3109_v23 = vmul.f32 1.442695, %v3088_v62  ;;  %v3072_v45 = vpop.f32.mrf.mxu1  ;;  %v2986_v11 = vadd.f32 %v2985_v54, %v2886_v53  ;;  %v3091_v46 = vsub.f32 0.0, %v2984_v6 }
 0x7e9   :  { %4443 = vpow2.f32 %v3105_v8  ;;  %v3111_v58 = vmul.f32 1.442695, %v3089_v40  ;;  %v3090_v17 = vsub.f32 0.0, %v3069_v22  ;;  %v3073_v36 = vadd.f32 %v3072_v45, %v2886_v53  ;;  %v2989_v45 = vpop.f32.mrf.mxu0 }
 0x7ea   :  { %4445 = vpow2.f32 %v3109_v23  ;;  %v3074_v55 = vpop.f32.mrf.mxu1  ;;  %v3092_v37 = vsub.f32 0.0, %v2986_v11  ;;  %v3115_v62 = vmul.f32 1.442695, %v3091_v46 }
 0x7eb   :  { %v3113_v35 = vmul.f32 1.442695, %v3090_v17  ;;  %4447 = vpow2.f32 %v3111_v58  ;;  %v3075_v34 = vadd.f32 %v3074_v55, %v2886_v53  ;;  %v3093_v24 = vsub.f32 0.0, %v3073_v36  ;;  %v2991_v36 = vpop.f32.mrf.mxu0 }
 0x7ec   :  { %v3117_v9 = vmul.f32 1.442695, %v3092_v37  ;;  %v3078_v55 = vpop.f32.mrf.mxu1  ;;  %v2990_v37 = vadd.f32 %v2989_v45, %v6754_v30 }
 0x7ed   :  { %4449 = vpow2.f32 %v3113_v35  ;;  %v3094_v22 = vsub.f32 0.0, %v3075_v34  ;;  %v3119_v54 = vmul.f32 1.442695, %v3093_v24 }
 0x7ee   :  { %v3095_v24 = vsub.f32 0.0, %v2990_v37 }
 0x7ef   :  { %v3121_v35 = vmul.f32 1.442695, %v3094_v22 }
 0x7f1   :  { %v4436_v1 = vpop.eup %4435 }
 0x7f2   :  { %v3131_v25 = vadd.f32 1.0, %v4436_v1 }
 0x7f3   :  { %v4438_v43 = vpop.eup %4437 }
 0x7f4   :  { %v4440_v12 = vpop.eup %4439  ;;  %4451 = vrcp.f32 %v3131_v25  ;;  %v3132_v50 = vadd.f32 1.0, %v4438_v43  ;;  %v2992_v25 = vadd.f32 %v2991_v36, %v6754_v30  ;;  %v3080_v43 = vpop.f32.mrf.mxu1 }
 0x7f5   :  { %v4442_v8 = vpop.eup %4441  ;;  %v3133_v40 = vadd.f32 1.0, %v4440_v12 }
 0x7f6   :  { %v4444_v23 = vpop.eup %4443  ;;  %4453 = vrcp.f32 %v3132_v50  ;;  %v3135_v53 = vadd.f32 1.0, %v4442_v8  ;;  %v3081_v50 = vadd.f32 %v3080_v43, %v6754_v30  ;;  %v3096_v8 = vsub.f32 0.0, %v2992_v25 }
 0x7f7   :  { %v4446_v58 = vpop.eup %4445  ;;  %v3134_v17 = vadd.f32 1.0, %v4444_v23  ;;  %4455 = vpow2.f32 %v3115_v62  ;;  %v3079_v62 = vadd.f32 %v3078_v55, %v6754_v30  ;;  %v3123_v23 = vmul.f32 1.442695, %v3095_v24 }
 0x7f8   :  { %4457 = vrcp.f32 %v3133_v40  ;;  %v4448_v6 = vpop.eup %4447  ;;  %v3136_v11 = vadd.f32 1.0, %v4446_v58  ;;  %v3125_v45 = vmul.f32 1.442695, %v3096_v8 }
 0x7f9   :  { %4459 = vpow2.f32 %v3117_v9  ;;  %v3137_v1 = vadd.f32 1.0, %v4448_v6  ;;  %v3097_v9 = vsub.f32 0.0, %v3079_v62 }
 0x7fa   :  { %4461 = vrcp.f32 %v3134_v17  ;;  %v4450_v46 = vpop.eup %4449  ;;  %v3098_v17 = vsub.f32 0.0, %v3081_v50 }
 0x7fb   :  { %4463 = vpow2.f32 %v3119_v54  ;;  %v3138_v34 = vadd.f32 1.0, %v4450_v46 }
 0x7fc   :  { %4465 = vrcp.f32 %v3135_v53  ;;  %v3127_v53 = vmul.f32 1.442695, %v3097_v9  ;;  %v3129_v55 = vmul.f32 1.442695, %v3098_v17 }
 0x7fd   :  { %4467 = vpow2.f32 %v3121_v35 }
 0x7fe   :  { %4469 = vrcp.f32 %v3136_v11 }
 0x7ff   :  { %4471 = vrcp.f32 %v3137_v1 }
 0x800   :  { %4473 = vrcp.f32 %v3138_v34 }
 0x801   :  { %v6765_v12 = vpop.eup %4451  ;;  %4475 = vpow2.f32 %v3123_v23 }
 0x802   :  { %7892 = vst [vmem:[#allocation99_spill] sm:$0xff] %v6765_v12  ;;  %3179 = vrot.lane.b32.xlu0 %v6765_v12, %s4693_s1  ;;  %4477 = vpow2.f32 %v3125_v45 }
 0x803   :  { %v6770_v40 = vpop.eup %4453  ;;  %4479 = vpow2.f32 %v3127_v53 }
 0x804   :  { %7893 = vst [vmem:[#allocation100_spill] sm:$0xff] %v6770_v40  ;;  %v4456_v22 = vpop.eup %4455  ;;  %3187 = vrot.lane.b32.xlu1 %v6770_v40, %s4693_s1 }
 0x805   :  { %v6774_v58 = vpop.eup %4457  ;;  %v3139_v35 = vadd.f32 1.0, %v4456_v22 }
 0x806   :  { %7894 = vst [vmem:[#allocation101_spill] sm:$0xff] %v6774_v58  ;;  %v4460_v54 = vpop.eup %4459  ;;  %3195 = vrot.lane.b32.xlu0 %v6774_v58, %s4693_s1 }
 0x807   :  { %v6778_v30 = vpop.eup %4461  ;;  %v3140_v36 = vadd.f32 1.0, %v4460_v54  ;;  %4481 = vrcp.f32 %v3139_v35 }
 0x808   :  { %7895 = vst [vmem:[#allocation102_spill] sm:$0xff] %v6778_v30  ;;  %v4464_v6 = vpop.eup %4463  ;;  %3203 = vrot.lane.b32.xlu1 %v6778_v30, %s4693_s1  ;;  %4483 = vpow2.f32 %v3129_v55 }
 0x809   :  { %v6782_v11 = vpop.eup %4465  ;;  %v3141_v37 = vadd.f32 1.0, %v4464_v6  ;;  %4485 = vrcp.f32 %v3140_v36 }
 0x80a   :  { %7896 = vst [vmem:[#allocation103_spill] sm:$0xff] %v6782_v11  ;;  %v4468_v46 = vpop.eup %4467  ;;  %3181 = vrot.lane.b32.xlu0 %v6782_v11, %s4693_s1 }
 0x80b   :  { %v6786_v1 = vpop.eup %4469  ;;  %v3142_v25 = vadd.f32 1.0, %v4468_v46  ;;  %4487 = vrcp.f32 %v3141_v37 }
 0x80c   :  { %3189 = vrot.lane.b32.xlu1 %v6786_v1, %s4693_s1  ;;  %v6790_v34 = vpop.eup %4471 }
 0x80d   :  { %7897 = vst [vmem:[#allocation104_spill] sm:$0xff] %v6790_v34  ;;  %v6794_v43 = vpop.eup %4473  ;;  %4489 = vrcp.f32 %v3142_v25 }
 0x80e   :  { %3197 = vrot.lane.b32.xlu0 %v6790_v34, %s4693_s1  ;;  %7898 = vst [vmem:[#allocation105_spill] sm:$0xff] %v6794_v43  ;;  %v4476_v62 = vpop.eup %4475 }
 0x80f   :  { %v4478_v24 = vpop.eup %4477  ;;  %v3143_v8 = vadd.f32 1.0, %v4476_v62 }
 0x810   :  { %3205 = vrot.lane.b32.xlu1 %v6794_v43, %s4693_s1  ;;  %v4480_v50 = vpop.eup %4479  ;;  %v3144_v23 = vadd.f32 1.0, %v4478_v24 }
 0x811   :  { %4491 = vrcp.f32 %v3143_v8  ;;  %v3145_v54 = vadd.f32 1.0, %v4480_v50 }
 0x812   :  { %3261 = vrot.lane.b32.xlu0 %v6782_v11, %s4694_s16  ;;  %4493 = vrcp.f32 %v3144_v23 }
 0x813   :  { %4495 = vrcp.f32 %v3145_v54 }
 0x814   :  { %3269 = vrot.lane.b32.xlu1 %v6786_v1, %s4694_s16  ;;  %v6806_v9 = vpop.eup %4481 }
 0x815   :  { %v4484_v22 = vpop.eup %4483 }
 0x816   :  { %3277 = vrot.lane.b32.xlu0 %v6790_v34, %s4694_s16  ;;  %v6810_v17 = vpop.eup %4485  ;;  %v3146_v53 = vadd.f32 1.0, %v4484_v22 }
 0x818   :  { %3285 = vrot.lane.b32.xlu1 %v6794_v43, %s4694_s16  ;;  %v6814_v45 = vpop.eup %4487  ;;  %4497 = vrcp.f32 %v3146_v53 }
 0x819   :  { %7899 = vst [vmem:[#allocation106_spill] sm:$0xff] %v6814_v45 }
 0x81a   :  { %3183 = vrot.lane.b32.xlu0 %v6806_v9, %s4693_s1  ;;  %v6818_v6 = vpop.eup %4489 }
 0x81c   :  { %3191 = vrot.lane.b32.xlu1 %v6810_v17, %s4693_s1 }
 0x81e   :  { %3199 = vrot.lane.b32.xlu0 %v6814_v45, %s4693_s1  ;;  %v6830_v35 = vpop.eup %4491 }
 0x81f   :  { %v6834_v55 = vpop.eup %4493 }
 0x820   :  { %3207 = vrot.lane.b32.xlu1 %v6818_v6, %s4693_s1  ;;  %v6838_v46 = vpop.eup %4495 }
 0x822   :  { %3263 = vrot.lane.b32.xlu0 %v6806_v9, %s4694_s16 }
 0x824   :  { %3271 = vrot.lane.b32.xlu1 %v6810_v17, %s4694_s16 }
 0x825   :  { %v6842_v36 = vpop.eup %4497 }
 0x826   :  { %3279 = vrot.lane.b32.xlu0 %v6814_v45, %s4694_s16 }
 0x828   :  { %3287 = vrot.lane.b32.xlu1 %v6818_v6, %s4694_s16 }
 0x82a   :  { %3185 = vrot.lane.b32.xlu0 %v6830_v35, %s4693_s1 }
 0x82c   :  { %3193 = vrot.lane.b32.xlu1 %v6834_v55, %s4693_s1 }
 0x82e   :  { %3201 = vrot.lane.b32.xlu0 %v6838_v46, %s4693_s1 }
 0x830   :  { %3209 = vrot.lane.b32.xlu1 %v6842_v36, %s4693_s1 }
 0x832   :  { %3265 = vrot.lane.b32.xlu0 %v6830_v35, %s4694_s16 }
 0x834   :  { %3273 = vrot.lane.b32.xlu1 %v6834_v55, %s4694_s16 }
 0x836   :  { %3281 = vrot.lane.b32.xlu0 %v6838_v46, %s4694_s16 }
 0x838   :  { %3289 = vrot.lane.b32.xlu1 %v6842_v36, %s4694_s16 }
 0x83a   :  { %3259 = vrot.lane.b32.xlu0 %v6765_v12, %s4694_s16 }
 0x83c   :  { %3267 = vrot.lane.b32.xlu1 %v6770_v40, %s4694_s16 }
 0x83e   :  { %3275 = vrot.lane.b32.xlu0 %v6774_v58, %s4694_s16 }
 0x840   :  { %3283 = vrot.lane.b32.xlu1 %v6778_v30, %s4694_s16 }
 0x874   :  { %v3180_v37 = vpop.permute.xlu0 %3179 }
 0x876   :  { %v3188_v25 = vpop.permute.xlu1 %3187 }
 0x877   :  { %v3219_v47 = vsel %vm523_vm4, %v3180_v37, %v3188_v25 }
 0x878   :  { %v3196_v62 = vpop.permute.xlu0 %3195  ;;  %v3228_v41 = vmul.f32 %v7901_v10, %v3219_v47 }
 0x879   :  { %v3215_v15 = vsel %vm523_vm4, %v3188_v25, %v3196_v62 }
 0x87a   :  { %v3204_v24 = vpop.permute.xlu1 %3203  ;;  %v3229_v32 = vmul.f32 %v7902_v2, %v3215_v15  ;;  %v3244_v25 = vadd.f32 %v6770_v40, %v3228_v41 }
 0x87b   :  { %v3223_v13 = vsel %vm523_vm4, %v3204_v24, %v3180_v37  ;;  %v3211_v44 = vsel %vm523_vm4, %v3196_v62, %v3204_v24 }
 0x87c   :  { %v3182_v50 = vpop.permute.xlu0 %3181  ;;  %v3227_v26 = vmul.f32 %v7900_v5, %v3223_v13  ;;  %v3245_v15 = vadd.f32 %v6774_v58, %v3229_v32  ;;  %v3230_v62 = vmul.f32 %v7904_v42, %v3211_v44  ;;  %v7906_v32 = vld [vmem:[#allocation28_spill] sm:$0xff] }
 0x87e   :  { %v3190_v8 = vpop.permute.xlu1 %3189  ;;  %v3243_v37 = vadd.f32 %v6765_v12, %v3227_v26  ;;  %v3246_v40 = vadd.f32 %v6778_v30, %v3230_v62 }
 0x880   :  { %v3198_v22 = vpop.permute.xlu0 %3197 }
 0x882   :  { %v3206_v23 = vpop.permute.xlu1 %3205 }
 0x883   :  { %v3224_v13 = vsel %vm523_vm4, %v3206_v23, %v3182_v50 }
 0x884   :  { %v6862_v54 = vpop.permute.xlu0 %3261  ;;  %v3231_v44 = vmul.f32 %v7900_v5, %v3224_v13 }
 0x886   :  { %v3270_v53 = vpop.permute.xlu1 %3269 }
 0x887   :  { %v3300_v41 = vsel %vm604_vm10, %v6862_v54, %v3270_v53 }
 0x888   :  { %v3278_v20 = vpop.permute.xlu0 %3277 }
 0x88a   :  { %v3286_v14 = vpop.permute.xlu1 %3285 }
 0x88c   :  { %v6864_v38 = vpop.permute.xlu0 %3183 }
 0x88e   :  { %v6866_v49 = vpop.permute.xlu1 %3191 }
 0x890   :  { %v6868_v16 = vpop.permute.xlu0 %3199 }
 0x892   :  { %v6870_v33 = vpop.permute.xlu1 %3207 }
 0x894   :  { %v6872_v57 = vpop.permute.xlu0 %3263 }
 0x896   :  { %v6874_v59 = vpop.permute.xlu1 %3271 }
 0x898   :  { %v6876_v19 = vpop.permute.xlu0 %3279 }
 0x89a   :  { %v6878_v63 = vpop.permute.xlu1 %3287 }
 0x89c   :  { %v6880_v4 = vpop.permute.xlu0 %3185 }
 0x89e   :  { %v6882_v51 = vpop.permute.xlu1 %3193 }
 0x8a0   :  { %v6884_v18 = vpop.permute.xlu0 %3201 }
 0x8a2   :  { %v6886_v27 = vpop.permute.xlu1 %3209 }
 0x8a4   :  { %v6888_v48 = vpop.permute.xlu0 %3265 }
 0x8a6   :  { %v6890_v0 = vpop.permute.xlu1 %3273 }
 0x8a8   :  { %v6892_v3 = vpop.permute.xlu0 %3281 }
 0x8aa   :  { %v6898_v61 = vpop.permute.xlu1 %3289 }
 0x8ac   :  { %v3260_v7 = vpop.permute.xlu0 %3259 }
 0x8ae   :  { %v3268_v39 = vpop.permute.xlu1 %3267 }
 0x8af   :  { %v3299_v31 = vsel %vm604_vm10, %v3260_v7, %v3268_v39 }
 0x8b0   :  { %v3307_v52 = vmul.f32 %v7903_v56, %v3299_v31  ;;  %v3276_v21 = vpop.permute.xlu0 %3275  ;;  %v3220_v31 = vsel %vm523_vm4, %v3182_v50, %v3190_v8  ;;  %v3216_v50 = vsel %vm523_vm4, %v3190_v8, %v3198_v22  ;;  %v3292_v8 = vsel %vm604_vm10, %v3278_v20, %v3286_v14 }
 0x8b1   :  { %v3295_v47 = vsel %vm604_vm10, %v3268_v39, %v3276_v21  ;;  %v3233_v13 = vmul.f32 %v7902_v2, %v3216_v50  ;;  %v3301_v50 = vsel %vm604_vm10, %v6872_v57, %v6874_v59 }
 0x8b2   :  { %v6918_v24 = vadd.f32 %v3307_v52, %v3243_v37  ;;  %v3308_v28 = vmul.f32 %v7905_v60, %v3295_v47  ;;  %v3284_v26 = vpop.permute.xlu1 %3283  ;;  %v7907_v47 = vld [vmem:[#allocation29_spill] sm:$0xff] }
 0x8b3   :  { %v3291_v12 = vsel %vm604_vm10, %v3276_v21, %v3284_v26  ;;  %v3303_v39 = vsel %vm604_vm10, %v3284_v26, %v3260_v7  ;;  %v3296_v21 = vsel %vm604_vm10, %v3270_v53, %v3278_v20  ;;  %v3232_v7 = vmul.f32 %v7901_v10, %v3220_v31 }
 0x8b4   :  { %v6931_v52 = vadd.f32 %v3308_v28, %v3244_v25  ;;  %v3309_v37 = vmul.f32 %v7906_v32, %v3291_v12  ;;  %v3310_v58 = vmul.f32 %v7907_v47, %v3303_v39  ;;  %3339 = vrot.lane.b32.xlu0 %v6918_v24, %s4695_s17  ;;  %v3311_v28 = vmul.f32 %v7903_v56, %v3300_v41 }
 0x8b5   :  { %v3212_v12 = vsel %vm523_vm4, %v3198_v22, %v3206_v23  ;;  %v3247_v53 = vadd.f32 %v6782_v11, %v3231_v44  ;;  %v3312_v62 = vmul.f32 %v7905_v60, %v3296_v21  ;;  %v3248_v22 = vadd.f32 %v6786_v1, %v3232_v7 }
 0x8b6   :  { %v6944_v25 = vadd.f32 %v3309_v37, %v3245_v15  ;;  %3347 = vrot.lane.b32.xlu1 %v6931_v52, %s4695_s17  ;;  %v6955_v26 = vadd.f32 %v3310_v58, %v3246_v40  ;;  %v3304_v15 = vsel %vm604_vm10, %v3286_v14, %v6862_v54  ;;  %v3234_v23 = vmul.f32 %v7904_v42, %v3212_v12 }
 0x8b7   :  { %v6964_v20 = vadd.f32 %v3311_v28, %v3247_v53  ;;  %v3313_v31 = vmul.f32 %v7906_v32, %v3292_v8  ;;  %v3249_v40 = vadd.f32 %v6790_v34, %v3233_v13  ;;  %v6970_v58 = vadd.f32 %v3312_v62, %v3248_v22 }
 0x8b8   :  { %3355 = vrot.lane.b32.xlu0 %v6944_v25, %s4695_s17  ;;  %v3314_v41 = vmul.f32 %v7907_v47, %v3304_v15  ;;  %v3250_v14 = vadd.f32 %v6794_v43, %v3234_v23  ;;  %v3225_v44 = vsel %vm523_vm4, %v6870_v33, %v6864_v38  ;;  %v3221_v37 = vsel %vm523_vm4, %v6864_v38, %v6866_v49  ;;  %v7913_v43 = vld [vmem:[#allocation30_spill] sm:$0xff] }
 0x8b9   :  { %v6976_v54 = vadd.f32 %v3313_v31, %v3249_v40  ;;  %v3235_v21 = vmul.f32 %v7900_v5, %v3225_v44  ;;  %v3217_v7 = vsel %vm523_vm4, %v6866_v49, %v6868_v16  ;;  %v3297_v38 = vsel %vm604_vm10, %v6874_v59, %v6876_v19 }
 0x8ba   :  { %3363 = vrot.lane.b32.xlu1 %v6955_v26, %s4695_s17  ;;  %v6980_v39 = vadd.f32 %v3314_v41, %v3250_v14  ;;  %v3236_v28 = vmul.f32 %v7901_v10, %v3221_v37  ;;  %v3315_v12 = vmul.f32 %v7903_v56, %v3301_v50  ;;  %v3213_v8 = vsel %vm523_vm4, %v6868_v16, %v6870_v33 }
 0x8bb   :  { %v3293_v49 = vsel %vm604_vm10, %v6876_v19, %v6878_v63  ;;  %v3237_v13 = vmul.f32 %v7902_v2, %v3217_v7  ;;  %v3251_v59 = vadd.f32 %v6806_v9, %v3235_v21  ;;  %v3316_v53 = vmul.f32 %v7905_v60, %v3297_v38 }
 0x8bc   :  { %3341 = vrot.lane.b32.xlu0 %v6964_v20, %s4695_s17  ;;  %v3305_v62 = vsel %vm604_vm10, %v6878_v63, %v6872_v57  ;;  %v3252_v16 = vadd.f32 %v6810_v17, %v3236_v28  ;;  %v3238_v33 = vmul.f32 %v7904_v42, %v3213_v8  ;;  %v3317_v19 = vmul.f32 %v7906_v32, %v3293_v49  ;;  %v4221_v8 = vld [vmem:[%s7584_s4 + $0xc8] sm:$0xff]  ;;  %v4220_v49 = vld [vmem:[%s7584_s4 + $0xc0] sm:$0xff] }
 0x8bd   :  { %v7032_v15 = vadd.f32 %v3315_v12, %v3251_v59  ;;  %v3253_v22 = vadd.f32 %v6814_v45, %v3237_v13  ;;  %v3318_v31 = vmul.f32 %v7907_v47, %v3305_v62  ;;  %v3226_v41 = vsel %vm523_vm4, %v6886_v27, %v6880_v4  ;;  %v4191_v13 = vld [vmem:[%s7584_s4 + $0xb8] sm:$0xff]  ;;  %v4190_v59 = vld [vmem:[%s7584_s4 + $0xb0] sm:$0xff]  ;;  %v4188_v62 = vld [vmem:[%s7584_s4 + $0xa0] sm:$0xff] }
 0x8be   :  { %3349 = vrot.lane.b32.xlu1 %v6970_v58, %s4695_s17  ;;  %v7038_v23 = vadd.f32 %v3316_v53, %v3252_v16  ;;  %v3254_v63 = vadd.f32 %v6818_v6, %v3238_v33  ;;  %v3222_v14 = vsel %vm523_vm4, %v6880_v4, %v6882_v51  ;;  %v3302_v44 = vsel %vm604_vm10, %v6888_v48, %v6890_v0  ;;  %v4189_v53 = vld [vmem:[%s7584_s4 + $0xa8] sm:$0xff]  ;;  %v4159_v16 = vld [vmem:[%s7584_s4 + $0x98] sm:$0xff]  ;;  %v4158_v33 = vld [vmem:[%s7584_s4 + $0x90] sm:$0xff] }
 0x8bf   :  { %v7044_v57 = vadd.f32 %v3317_v19, %v3253_v22  ;;  %v3239_v37 = vmul.f32 %v7900_v5, %v3226_v41  ;;  %v3218_v50 = vsel %vm523_vm4, %v6882_v51, %v6884_v18  ;;  %v3298_v4 = vsel %vm604_vm10, %v6890_v0, %v6892_v3  ;;  %v4157_v19 = vld [vmem:[%s7584_s4 + $0x88] sm:$0xff]  ;;  %v4156_v22 = vld [vmem:[%s7584_s4 + $0x80] sm:$0xff] }
 0x8c0   :  { %3357 = vrot.lane.b32.xlu0 %v6976_v54, %s4695_s17  ;;  %v7048_v40 = vadd.f32 %v3318_v31, %v3254_v63  ;;  %v3240_v21 = vmul.f32 %v7901_v10, %v3222_v14  ;;  %v3319_v7 = vmul.f32 %v7903_v56, %v3302_v44  ;;  %v3214_v5 = vsel %vm523_vm4, %v6884_v18, %v6886_v27  ;;  %v3944_v31 = vld [vmem:[%s7586_s5] sm:$0xf] }
 0x8c1   :  { %v3294_v51 = vsel %vm604_vm10, %v6892_v3, %v6898_v61  ;;  %v3241_v38 = vmul.f32 %v7902_v2, %v3218_v50  ;;  %v3255_v0 = vadd.f32 %v6830_v35, %v3239_v37  ;;  %v3320_v10 = vmul.f32 %v7905_v60, %v3298_v4 }
 0x8c2   :  { %3365 = vrot.lane.b32.xlu1 %v6980_v39, %s4695_s17  ;;  %v3306_v56 = vsel %vm604_vm10, %v6898_v61, %v6888_v48  ;;  %v3256_v27 = vadd.f32 %v6834_v55, %v3240_v21  ;;  %v3242_v18 = vmul.f32 %v7904_v42, %v3214_v5  ;;  %v3321_v3 = vmul.f32 %v7906_v32, %v3294_v51  ;;  %v4223_v32 = vld [vmem:[%s7584_s4 + $0xd8] sm:$0xff] }
 0x8c3   :  { %v7100_v28 = vadd.f32 %v3319_v7, %v3255_v0  ;;  %v3257_v60 = vadd.f32 %v6838_v46, %v3241_v38  ;;  %v3322_v12 = vmul.f32 %v7907_v47, %v3306_v56  ;;  %v4222_v47 = vld [vmem:[%s7584_s4 + $0xd0] sm:$0xff] }
 0x8c4   :  { %3421 = vrot.lane.b32.xlu0 %v6964_v20, %s4696_s18  ;;  %v7106_v2 = vadd.f32 %v3320_v10, %v3256_v27  ;;  %v3258_v48 = vadd.f32 %v6842_v36, %v3242_v18 }
 0x8c5   :  { %v7112_v61 = vadd.f32 %v3321_v3, %v3257_v60 }
 0x8c6   :  { %3429 = vrot.lane.b32.xlu1 %v6970_v58, %s4696_s18  ;;  %v7116_v42 = vadd.f32 %v3322_v12, %v3258_v48 }
 0x8c8   :  { %3437 = vrot.lane.b32.xlu0 %v6976_v54, %s4696_s18 }
 0x8ca   :  { %3445 = vrot.lane.b32.xlu1 %v6980_v39, %s4696_s18 }
 0x8cc   :  { %3343 = vrot.lane.b32.xlu0 %v7032_v15, %s4695_s17 }
 0x8ce   :  { %3351 = vrot.lane.b32.xlu1 %v7038_v23, %s4695_s17 }
 0x8d0   :  { %3359 = vrot.lane.b32.xlu0 %v7044_v57, %s4695_s17 }
 0x8d2   :  { %3367 = vrot.lane.b32.xlu1 %v7048_v40, %s4695_s17 }
 0x8d4   :  { %3423 = vrot.lane.b32.xlu0 %v7032_v15, %s4696_s18 }
 0x8d6   :  { %3431 = vrot.lane.b32.xlu1 %v7038_v23, %s4696_s18 }
 0x8d8   :  { %3439 = vrot.lane.b32.xlu0 %v7044_v57, %s4696_s18 }
 0x8da   :  { %3447 = vrot.lane.b32.xlu1 %v7048_v40, %s4696_s18 }
 0x8dc   :  { %3345 = vrot.lane.b32.xlu0 %v7100_v28, %s4695_s17 }
 0x8de   :  { %3353 = vrot.lane.b32.xlu1 %v7106_v2, %s4695_s17 }
 0x8e0   :  { %3361 = vrot.lane.b32.xlu0 %v7112_v61, %s4695_s17 }
 0x8e2   :  { %3369 = vrot.lane.b32.xlu1 %v7116_v42, %s4695_s17 }
 0x8e4   :  { %3425 = vrot.lane.b32.xlu0 %v7100_v28, %s4696_s18 }
 0x8e6   :  { %3433 = vrot.lane.b32.xlu1 %v7106_v2, %s4696_s18 }
 0x8e8   :  { %3441 = vrot.lane.b32.xlu0 %v7112_v61, %s4696_s18 }
 0x8ea   :  { %3449 = vrot.lane.b32.xlu1 %v7116_v42, %s4696_s18 }
 0x8ec   :  { %3419 = vrot.lane.b32.xlu0 %v6918_v24, %s4696_s18 }
 0x8ee   :  { %3427 = vrot.lane.b32.xlu1 %v6931_v52, %s4696_s18 }
 0x8f0   :  { %3435 = vrot.lane.b32.xlu0 %v6944_v25, %s4696_s18 }
 0x8f2   :  { %3443 = vrot.lane.b32.xlu1 %v6955_v26, %s4696_s18 }
 0x8f4   :  { %3558 = vperm.xlu0 %4239, %v4223_v32  }
 0x8f6   :  { %3553 = vperm.xlu1 %4240, %v4222_v47  }
 0x8f8   :  { %3548 = vperm.xlu0 %4239, %v4221_v8  }
 0x8fa   :  { %3543 = vperm.xlu1 %4240, %v4220_v49   ;;  %v7908_v49 = vld [vmem:[#allocation19_spill] sm:$0xff] }
 0x8fc   :  { %2542 = vperm.xlu0 %4239, %v4191_v13  }
 0x8fe   :  { %2537 = vperm.xlu1 %4240, %v4190_v59   ;;  %v7909_v59 = vld [vmem:[#allocation21_spill] sm:$0xff] }
 0x900   :  { %2532 = vperm.xlu0 %4239, %v4189_v53  }
 0x902   :  { %2527 = vperm.xlu1 %4240, %v4188_v62  }
 0x904   :  { %1526 = vperm.xlu0 %4239, %v4159_v16  }
 0x906   :  { %1521 = vperm.xlu1 %4240, %v4158_v33  }
 0x908   :  { %1516 = vperm.xlu0 %4239, %v4157_v19  }
 0x90a   :  { %1511 = vperm.xlu1 %4240, %v4156_v22  }
 0x90c   :  { %3947 = vperm.xlu0 %4239, %v3944_v31   ;;  %v7910_v31 = vld [vmem:[#allocation31_spill] sm:$0xff] }
 0x926   :  { %v3340_v63 = vpop.permute.xlu0 %3339 }
 0x928   :  { %v3348_v41 = vpop.permute.xlu1 %3347 }
 0x929   :  { %v3379_v47 = vsel %vm685_vm15, %v3340_v63, %v3348_v41 }
 0x92a   :  { %v3356_v14 = vpop.permute.xlu0 %3355 }
 0x92b   :  { %v3375_v8 = vsel %vm685_vm15, %v3348_v41, %v3356_v14  ;;  %v7911_v41 = vld [vmem:[#allocation32_spill] sm:$0xff] }
 0x92c   :  { %v3364_v44 = vpop.permute.xlu1 %3363 }
 0x92d   :  { %v3371_v62 = vsel %vm685_vm15, %v3356_v14, %v3364_v44  ;;  %v3383_v16 = vsel %vm685_vm15, %v3364_v44, %v3340_v63 }
 0x92e   :  { %v3342_v37 = vpop.permute.xlu0 %3341  ;;  %v3387_v14 = vmul.f32 %v7909_v59, %v3383_v16  ;;  %v7914_v16 = vld [vmem:[#allocation33_spill] sm:$0xff] }
 0x930   :  { %v3350_v50 = vpop.permute.xlu1 %3349 }
 0x931   :  { %v3380_v18 = vsel %vm685_vm15, %v3342_v37, %v3350_v50 }
 0x932   :  { %v3358_v4 = vpop.permute.xlu0 %3357  ;;  %v3392_v13 = vmul.f32 %v7908_v49, %v3380_v18  ;;  %v3388_v18 = vmul.f32 %v7908_v49, %v3379_v47 }
 0x933   :  { %v3376_v19 = vsel %vm685_vm15, %v3350_v50, %v3358_v4 }
 0x934   :  { %v3366_v21 = vpop.permute.xlu1 %3365  ;;  %v3408_v63 = vadd.f32 %v3392_v13, %v6970_v58  ;;  %v7221_v13 = vadd.f32 %v3387_v14, %v6918_v24  ;;  %v7915_v24 = vld [vmem:[#allocation34_spill] sm:$0xff] }
 0x935   :  { %v3384_v3 = vsel %vm685_vm15, %v3366_v21, %v3342_v37  ;;  %v3372_v22 = vsel %vm685_vm15, %v3358_v4, %v3366_v21  ;;  %v3390_v4 = vmul.f32 %v7913_v43, %v3371_v62 }
 0x936   :  { %v3422_v7 = vpop.permute.xlu0 %3421  ;;  %v3391_v53 = vmul.f32 %v7909_v59, %v3384_v3  ;;  %v7912_v3 = vld [vmem:[#allocation20_spill] sm:$0xff] }
 0x937   :  { %v3389_v30 = vmul.f32 %v7912_v3, %v3375_v8  ;;  %v3393_v21 = vmul.f32 %v7912_v3, %v3376_v19  ;;  %v7226_v62 = vadd.f32 %v3390_v4, %v6955_v26 }
 0x938   :  { %v3430_v5 = vpop.permute.xlu1 %3429  ;;  %v3407_v44 = vadd.f32 %v3391_v53, %v6964_v20  ;;  %v7215_v20 = vadd.f32 %v3388_v18, %v6931_v52 }
 0x939   :  { %v3460_v12 = vsel %vm766_vm2, %v3422_v7, %v3430_v5 }
 0x93a   :  { %v3438_v51 = vpop.permute.xlu0 %3437  ;;  %v3471_v37 = vmul.f32 %v7910_v31, %v3460_v12  ;;  %v3394_v12 = vmul.f32 %v7913_v43, %v3372_v22 }
 0x93b   :  { %v3456_v48 = vsel %vm766_vm2, %v3430_v5, %v3438_v51 }
 0x93c   :  { %v3446_v38 = vpop.permute.xlu1 %3445  ;;  %v3472_v5 = vmul.f32 %v7911_v41, %v3456_v48  ;;  %v3487_v47 = vadd.f32 %v3471_v37, %v3407_v44 }
 0x93d   :  { %v3452_v50 = vsel %vm766_vm2, %v3438_v51, %v3446_v38  ;;  %v3464_v8 = vsel %vm766_vm2, %v3446_v38, %v3422_v7  ;;  %v7218_v51 = vadd.f32 %v3389_v30, %v6944_v25  ;;  %v3409_v7 = vadd.f32 %v3393_v21, %v6976_v54 }
 0x93e   :  { %v3344_v0 = vpop.permute.xlu0 %3343  ;;  %v3488_v45 = vadd.f32 %v3472_v5, %v3408_v63  ;;  %v3473_v11 = vmul.f32 %v7914_v16, %v3452_v50  ;;  %v3410_v38 = vadd.f32 %v3394_v12, %v6980_v39  ;;  %v7232_v22 = vmul.f32 0.11111111, %v3487_v47 }
 0x93f   :  { %v3474_v25 = vmul.f32 %v7915_v24, %v3464_v8 }
 0x940   :  { %v3352_v10 = vpop.permute.xlu1 %3351  ;;  %v7234_v30 = vmul.f32 0.11111111, %v3488_v45  ;;  %v3489_v5 = vadd.f32 %v3473_v11, %v3409_v7 }
 0x941   :  { %v3381_v53 = vsel %vm685_vm15, %v3344_v0, %v3352_v10  ;;  %v3490_v50 = vadd.f32 %v3474_v25, %v3410_v38 }
 0x942   :  { %v3360_v56 = vpop.permute.xlu0 %3359  ;;  %v3396_v26 = vmul.f32 %v7908_v49, %v3381_v53 }
 0x943   :  { %v3377_v52 = vsel %vm685_vm15, %v3352_v10, %v3360_v56 }
 0x944   :  { %v3368_v27 = vpop.permute.xlu1 %3367  ;;  %v3397_v18 = vmul.f32 %v7912_v3, %v3377_v52  ;;  %v3412_v12 = vadd.f32 %v3396_v26, %v7038_v23 }
 0x945   :  { %v3385_v37 = vsel %vm685_vm15, %v3368_v27, %v3344_v0  ;;  %v3373_v54 = vsel %vm685_vm15, %v3360_v56, %v3368_v27 }
 0x946   :  { %v3424_v60 = vpop.permute.xlu0 %3423  ;;  %v3395_v0 = vmul.f32 %v7909_v59, %v3385_v37 }
 0x948   :  { %v3432_v32 = vpop.permute.xlu1 %3431  ;;  %v3411_v38 = vadd.f32 %v3395_v0, %v7032_v15 }
 0x949   :  { %v3461_v45 = vsel %vm766_vm2, %v3424_v60, %v3432_v32 }
 0x94a   :  { %v3440_v33 = vpop.permute.xlu0 %3439 }
 0x94b   :  { %v3457_v39 = vsel %vm766_vm2, %v3432_v32, %v3440_v33  ;;  %v3398_v32 = vmul.f32 %v7913_v43, %v3373_v54 }
 0x94c   :  { %v3448_v34 = vpop.permute.xlu1 %3447  ;;  %v3476_v4 = vmul.f32 %v7911_v41, %v3457_v39 }
 0x94d   :  { %v3465_v56 = vsel %vm766_vm2, %v3448_v34, %v3424_v60  ;;  %v3453_v60 = vsel %vm766_vm2, %v3440_v33, %v3448_v34 }
 0x94e   :  { %v3346_v48 = vpop.permute.xlu0 %3345 }
 0x950   :  { %v3354_v58 = vpop.permute.xlu1 %3353 }
 0x951   :  { %v3382_v14 = vsel %vm685_vm15, %v3346_v48, %v3354_v58 }
 0x952   :  { %v3362_v19 = vpop.permute.xlu0 %3361  ;;  %v3400_v47 = vmul.f32 %v7908_v49, %v3382_v14  ;;  %v3414_v49 = vadd.f32 %v3398_v32, %v7048_v40 }
 0x953   :  { %v3378_v27 = vsel %vm685_vm15, %v3354_v58, %v3362_v19  ;;  %v3478_v58 = vmul.f32 %v7915_v24, %v3465_v56 }
 0x954   :  { %v3370_v10 = vpop.permute.xlu1 %3369  ;;  %v3401_v53 = vmul.f32 %v7912_v3, %v3378_v27  ;;  %v3416_v37 = vadd.f32 %v3400_v47, %v7106_v2 }
 0x955   :  { %v3386_v11 = vsel %vm685_vm15, %v3370_v10, %v3346_v48  ;;  %v3374_v21 = vsel %vm685_vm15, %v3362_v19, %v3370_v10  ;;  %v3475_v48 = vmul.f32 %v7910_v31, %v3461_v45  ;;  %v3492_v19 = vadd.f32 %v3476_v4, %v3412_v12 }
 0x956   :  { %v3399_v63 = vmul.f32 %v7909_v59, %v3386_v11  ;;  %v3426_v44 = vpop.permute.xlu0 %3425  ;;  %v3413_v59 = vadd.f32 %v3397_v18, %v7044_v57  ;;  %v3402_v23 = vmul.f32 %v7913_v43, %v3374_v21  ;;  %v3477_v57 = vmul.f32 %v7914_v16, %v3453_v60 }
 0x957   :  { %v3491_v25 = vadd.f32 %v3475_v48, %v3411_v38  ;;  %v3494_v54 = vadd.f32 %v3478_v58, %v3414_v49  ;;  %v3505_v11 = vmul.f32 0.11111111, %v3489_v5  ;;  %v3508_v0 = vmul.f32 0.11111111, %v3492_v19 }
 0x958   :  { %v3434_v8 = vpop.permute.xlu1 %3433  ;;  %v3415_v52 = vadd.f32 %v3399_v63, %v7100_v28  ;;  %v3417_v28 = vadd.f32 %v3401_v53, %v7112_v61  ;;  %v3418_v10 = vadd.f32 %v3402_v23, %v7116_v42  ;;  %v3493_v56 = vadd.f32 %v3477_v57, %v3413_v59 }
 0x959   :  { %v3462_v7 = vsel %vm766_vm2, %v3426_v44, %v3434_v8  ;;  %v3506_v63 = vmul.f32 0.11111111, %v3490_v50  ;;  %v3507_v12 = vmul.f32 0.11111111, %v3491_v25  ;;  %v3510_v48 = vmul.f32 0.11111111, %v3494_v54 }
 0x95a   :  { %v3479_v34 = vmul.f32 %v7910_v31, %v3462_v7  ;;  %v3442_v33 = vpop.permute.xlu0 %3441  ;;  %v3509_v50 = vmul.f32 0.11111111, %v3493_v56  ;;  %v3524_v7 = vsub.f32 %v6810_v17, %v3508_v0  ;;  %v4217_v56 = vld [vmem:[%s7585_s2 + $0xa8] sm:$0xff] }
 0x95b   :  { %v3458_v3 = vsel %vm766_vm2, %v3434_v8, %v3442_v33  ;;  %v3526_v19 = vsub.f32 %v6818_v6, %v3510_v48  ;;  %v7925_v48 = vld [vmem:[#allocation94_spill] sm:$0xff] }
 0x95c   :  { %v3495_v26 = vadd.f32 %v3479_v34, %v3415_v52  ;;  %v3480_v15 = vmul.f32 %v7911_v41, %v3458_v3  ;;  %v3450_v43 = vpop.permute.xlu1 %3449  ;;  %v3523_v34 = vsub.f32 %v6806_v9, %v3507_v12  ;;  %v7916_v3 = vld [vmem:[#allocation103_spill] sm:$0xff] }
 0x95d   :  { %v3454_v39 = vsel %vm766_vm2, %v3442_v33, %v3450_v43  ;;  %v3466_v40 = vsel %vm766_vm2, %v3450_v43, %v3426_v44  ;;  %v3520_v44 = vsub.f32 %v6786_v1, %v7234_v30  ;;  %v3519_v25 = vsub.f32 %v7916_v3, %v7232_v22 }
 0x95e   :  { %v3496_v18 = vadd.f32 %v3480_v15, %v3416_v37  ;;  %v3481_v45 = vmul.f32 %v7914_v16, %v3454_v39  ;;  %v3482_v2 = vmul.f32 %v7915_v24, %v3466_v40  ;;  %v3420_v14 = vpop.permute.xlu0 %3419  ;;  %v3511_v27 = vmul.f32 0.11111111, %v3495_v26  ;;  %v7917_v37 = vld [vmem:[#allocation106_spill] sm:$0xff]  ;;  %v7920_v40 = vld [vmem:[#allocation100_spill] sm:$0xff] }
 0x95f   :  { %v3525_v26 = vsub.f32 %v7917_v37, %v3509_v50 }
 0x960   :  { %v3512_v61 = vmul.f32 0.11111111, %v3496_v18  ;;  %v3497_v32 = vadd.f32 %v3481_v45, %v3417_v28  ;;  %v3498_v4 = vadd.f32 %v3482_v2, %v3418_v10  ;;  %v3428_v21 = vpop.permute.xlu1 %3427  ;;  %v3527_v58 = vsub.f32 %v6830_v35, %v3511_v27  ;;  %v7921_v18 = vld [vmem:[#allocation99_spill] sm:$0xff]  ;;  %v4218_v27 = vld [vmem:[%s7585_s2 + $0xb0] sm:$0xff] }
 0x961   :  { %v3459_v42 = vsel %vm766_vm2, %v3420_v14, %v3428_v21 }
 0x962   :  { %v3513_v60 = vmul.f32 0.11111111, %v3497_v32  ;;  %v3514_v47 = vmul.f32 0.11111111, %v3498_v4  ;;  %v3467_v5 = vmul.f32 %v7910_v31, %v3459_v42  ;;  %v3436_v8 = vpop.permute.xlu0 %3435  ;;  %v3528_v59 = vsub.f32 %v6834_v55, %v3512_v61 }
 0x963   :  { %v3455_v53 = vsel %vm766_vm2, %v3428_v21, %v3436_v8 }
 0x964   :  { %v3529_v38 = vsub.f32 %v6838_v46, %v3513_v60  ;;  %v3483_v23 = vadd.f32 %v3467_v5, %v7221_v13  ;;  %v3468_v30 = vmul.f32 %v7911_v41, %v3455_v53  ;;  %v3444_v52 = vpop.permute.xlu1 %3443  ;;  %3597 = vmatprep.subr.mxu0 %v3528_v59  ;;  %v3530_v31 = vsub.f32 %v6842_v36, %v3514_v47  ;;  %v7927_v5 = vld [vmem:[#allocation97_spill] sm:$0xff]  ;;  %v7928_v59 = vld [vmem:[#allocation98_spill] sm:$0xff] }
 0x965   :  { %v3451_v33 = vsel %vm766_vm2, %v3436_v8, %v3444_v52  ;;  %v3463_v49 = vsel %vm766_vm2, %v3444_v52, %v3420_v14  ;;  %3598 = vmatpush1.msra.mxu0 %v3527_v58  ;;  %v7923_v14 = vld [vmem:[#allocation102_spill] sm:$0xff] }
 0x966   :  { %v3484_v57 = vadd.f32 %v3468_v30, %v7215_v20  ;;  %v3469_v13 = vmul.f32 %v7914_v16, %v3451_v33  ;;  %v3470_v41 = vmul.f32 %v7915_v24, %v3463_v49  ;;  %3599 = vmatprep.subr.mxu0 %v3524_v7  ;;  %3686 = vmatprep.subr.mxu1 %v3530_v31  ;;  %v3499_v15 = vmul.f32 0.11111111, %v3483_v23  ;;  %v7918_v16 = vld [vmem:[#allocation105_spill] sm:$0xff]  ;;  %v7919_v24 = vld [vmem:[#allocation104_spill] sm:$0xff]  ;;  %v7929_v53 = vld [vmem:[#allocation90_spill] sm:$0xff] }
 0x967   :  { %3600 = vmatpush1.msra.mxu0 %v3523_v34  ;;  %3687 = vmatpush1.msra.mxu1 %v3529_v38  ;;  %v3522_v20 = vsub.f32 %v7918_v16, %v3506_v63  ;;  %v3521_v28 = vsub.f32 %v7919_v24, %v3505_v11  ;;  %v7924_v11 = vmov 0.0   ;;  %v4219_v63 = vld [vmem:[%s7585_s2 + $0xb8] sm:$0xff]  ;;  %v7930_v23 = vld [vmem:[#allocation92_spill] sm:$0xff]  ;;  %v7931_v34 = vld [vmem:[#allocation93_spill] sm:$0xff] }
 0x968   :  { %v3500_v29 = vmul.f32 0.11111111, %v3484_v57  ;;  %v3485_v43 = vadd.f32 %v3469_v13, %v7218_v51  ;;  %v3486_v54 = vadd.f32 %v3470_v41, %v7226_v62  ;;  %3601 = vmatprep.subr.mxu0 %v3520_v44  ;;  %3688 = vmatprep.subr.mxu1 %v3526_v19  ;;  %v3515_v45 = vsub.f32 %v7921_v18, %v3499_v15  ;;  %v4216_v51 = vld [vmem:[%s7585_s2 + $0xa0] sm:$0xff]  ;;  %v7922_v62 = vld [vmem:[#allocation101_spill] sm:$0xff]  ;;  %v7926_v44 = vld [vmem:[#allocation96_spill] sm:$0xff] }
 0x969   :  { %3602 = vmatpush1.msra.mxu0 %v3519_v25  ;;  %3689 = vmatpush1.msra.mxu1 %v3525_v26  ;;  %v7932_v19 = vld [vmem:[#allocation95_spill] sm:$0xff]  ;;  %v7933_v25 = vld [vmem:[#allocation86_spill] sm:$0xff] }
 0x96a   :  { %v3501_v39 = vmul.f32 0.11111111, %v3485_v43  ;;  %v3502_v22 = vmul.f32 0.11111111, %v3486_v54  ;;  %3690 = vmatprep.subr.mxu1 %v3522_v20  ;;  %v3516_v10 = vsub.f32 %v7920_v40, %v3500_v29  ;;  %v7934_v43 = vld [vmem:[#allocation88_spill] sm:$0xff] }
 0x96b   :  { %3691 = vmatpush1.msra.mxu1 %v3521_v28 }
 0x96c   :  { %v3517_v2 = vsub.f32 %v7922_v62, %v3501_v39  ;;  %3603 = vmatprep.subr.mxu0 %v3516_v10  ;;  %v3518_v0 = vsub.f32 %v7923_v14, %v3502_v22  ;;  %v7935_v22 = vld [vmem:[#allocation89_spill] sm:$0xff] }
 0x96d   :  { %3604 = vmatpush1.msra.mxu0 %v3515_v45 }
 0x96e   :  { %4224 = vmatmul.mubr.msk.f32.vlgmr.msra.gmra.mxu0 %vm860_vm7, %v4216_v51  ;;  %3692 = vmatprep.subr.mxu1 %v3518_v0 }
 0x96f   :  { %3693 = vmatpush1.msra.mxu1 %v3517_v2  ;;  %3643 = vmatprep.mubr.f32.mxu0 %v7924_v11  ;;  %v7351_v61 = vpop.permute.xlu0 %3558  ;;  %v7936_v2 = vld [vmem:[#allocation91_spill] sm:$0xff] }
 0x970   :  { %4228 = vmatmul.mubr.msk.f32.vlgmr.msra.gmra.mxu1 %vm860_vm7, %v4216_v51 }
 0x971   :  { %3732 = vmatprep.mubr.f32.mxu1 %v7924_v11  ;;  %v7353_v32 = vpop.permute.xlu1 %3553 }
 0x972   :  { %4225 = vmatmul.mubr.msk.f32.gmra.mxu0 %vm860_vm7, %v4217_v56 }
 0x973   :  { %3649 = vmatprep.mubr.f32.mxu0 %v7924_v11  ;;  %v7355_v4 = vpop.permute.xlu0 %3548 }
 0x974   :  { %4229 = vmatmul.mubr.msk.f32.gmra.mxu1 %vm860_vm7, %v4217_v56 }
 0x975   :  { %3738 = vmatprep.mubr.f32.mxu1 %v7924_v11  ;;  %v7357_v21 = vpop.permute.xlu1 %3543 }
 0x976   :  { %4226 = vmatmul.mubr.msk.f32.gmra.mxu0 %vm860_vm7, %v4218_v27 }
 0x977   :  { %3655 = vmatprep.mubr.f32.mxu0 %v7924_v11  ;;  %v2543_v12 = vpop.permute.xlu0 %2542 }
 0x978   :  { %4230 = vmatmul.mubr.msk.f32.gmra.mxu1 %vm860_vm7, %v4218_v27  ;;  %v2642_v42 = vadd.f32 %v7925_v48, %v2543_v12  ;;  %v2644_v60 = vadd.f32 %v7926_v44, %v2543_v12  ;;  %v2731_v8 = vadd.f32 %v7927_v5, %v2543_v12  ;;  %v2733_v50 = vadd.f32 %v7928_v59, %v2543_v12  ;;  %v7937_v27 = vld [vmem:[#allocation83_spill] sm:$0xff]  ;;  %v7939_v5 = vld [vmem:[#allocation85_spill] sm:$0xff] }
 0x979   :  { %3744 = vmatprep.mubr.f32.mxu1 %v7924_v11  ;;  %v2538_v47 = vpop.permute.xlu1 %2537 }
 0x97a   :  { %4227 = vmatmul.mubr.msk.f32.gmra.mxu0 %vm860_vm7, %v4219_v63  ;;  %v2747_v58 = vsub.f32 0.0, %v2642_v42  ;;  %v2636_v7 = vadd.f32 %v7929_v53, %v2538_v47  ;;  %v2748_v38 = vsub.f32 0.0, %v2644_v60  ;;  %v2638_v30 = vadd.f32 %v7930_v23, %v2538_v47  ;;  %v7938_v42 = vld [vmem:[#allocation84_spill] sm:$0xff] }
 0x97b   :  { %4014 = vmatprep.mubr.f32.mxu0 %v7924_v11  ;;  %v2533_v52 = vpop.permute.xlu0 %2532  ;;  %v2749_v31 = vsub.f32 0.0, %v2731_v8  ;;  %v2725_v33 = vadd.f32 %v7931_v34, %v2538_v47  ;;  %v2750_v49 = vsub.f32 0.0, %v2733_v50  ;;  %v2727_v57 = vadd.f32 %v7932_v19, %v2538_v47 }
 0x97c   :  { %4231 = vmatmul.mubr.msk.f32.gmra.mxu1 %vm860_vm7, %v4219_v63  ;;  %v2775_v13 = vmul.f32 1.442695, %v2747_v58  ;;  %v2743_v41 = vsub.f32 0.0, %v2636_v7  ;;  %v2630_v26 = vadd.f32 %v7933_v25, %v2533_v52  ;;  %v2777_v15 = vmul.f32 1.442695, %v2748_v38  ;;  %v7940_v58 = vld [vmem:[#allocation87_spill] sm:$0xff] }
 0x97d   :  { %4085 = vmatprep.mubr.f32.mxu1 %v7924_v11  ;;  %v2744_v29 = vsub.f32 0.0, %v2638_v30  ;;  %v2632_v54 = vadd.f32 %v7934_v43, %v2533_v52  ;;  %v2528_v20 = vpop.permute.xlu1 %2527  ;;  %v2779_v28 = vmul.f32 1.442695, %v2749_v31  ;;  %v2745_v39 = vsub.f32 0.0, %v2725_v33 }
 0x97e   :  { %v2719_v10 = vadd.f32 %v7935_v22, %v2533_v52  ;;  %v2781_v45 = vmul.f32 1.442695, %v2750_v49  ;;  %v2746_v51 = vsub.f32 0.0, %v2727_v57  ;;  %v2721_v0 = vadd.f32 %v7936_v2, %v2533_v52 }
 0x97f   :  { %4499 = vpow2.f32 %v2775_v13  ;;  %v2767_v11 = vmul.f32 1.442695, %v2743_v41  ;;  %v2739_v56 = vsub.f32 0.0, %v2630_v26  ;;  %v2624_v63 = vadd.f32 %v7937_v27, %v2528_v20 }
 0x980   :  { %4501 = vpow2.f32 %v2777_v15  ;;  %v2769_v12 = vmul.f32 1.442695, %v2744_v29  ;;  %v2740_v48 = vsub.f32 0.0, %v2632_v54  ;;  %v2626_v44 = vadd.f32 %v7938_v42, %v2528_v20  ;;  %v7941_v42 = vld [vmem:[#allocation62_spill] sm:$0xff] }
 0x981   :  { %4503 = vpow2.f32 %v2779_v28  ;;  %v2771_v60 = vmul.f32 1.442695, %v2745_v39  ;;  %v2741_v47 = vsub.f32 0.0, %v2719_v10  ;;  %v2713_v8 = vadd.f32 %v7939_v5, %v2528_v20  ;;  %v7942_v5 = vld [vmem:[#allocation64_spill] sm:$0xff] }
 0x982   :  { %4505 = vpow2.f32 %v2781_v45  ;;  %v2773_v59 = vmul.f32 1.442695, %v2746_v51  ;;  %v2742_v50 = vsub.f32 0.0, %v2721_v0  ;;  %v2715_v53 = vadd.f32 %v7940_v58, %v2528_v20  ;;  %v1527_v0 = vpop.permute.xlu0 %1526 }
 0x983   :  { %4507 = vpow2.f32 %v2767_v11  ;;  %v2759_v7 = vmul.f32 1.442695, %v2739_v56  ;;  %v2735_v38 = vsub.f32 0.0, %v2624_v63  ;;  %v2761_v23 = vmul.f32 1.442695, %v2740_v48 }
 0x984   :  { %4509 = vpow2.f32 %v2769_v12  ;;  %v2736_v30 = vsub.f32 0.0, %v2626_v44  ;;  %v2763_v52 = vmul.f32 1.442695, %v2741_v47  ;;  %v2737_v31 = vsub.f32 0.0, %v2713_v8 }
 0x985   :  { %4511 = vpow2.f32 %v2771_v60  ;;  %v2765_v34 = vmul.f32 1.442695, %v2742_v50  ;;  %v2738_v33 = vsub.f32 0.0, %v2715_v53  ;;  %v2751_v49 = vmul.f32 1.442695, %v2735_v38  ;;  %v7943_v53 = vld [vmem:[#allocation65_spill] sm:$0xff] }
 0x986   :  { %4513 = vpow2.f32 %v2773_v59  ;;  %v2753_v19 = vmul.f32 1.442695, %v2736_v30  ;;  %v2755_v57 = vmul.f32 1.442695, %v2737_v31  ;;  %v1626_v44 = vadd.f32 %v7941_v42, %v1527_v0  ;;  %v1522_v59 = vpop.permute.xlu1 %1521  ;;  %v7944_v30 = vld [vmem:[#allocation66_spill] sm:$0xff] }
 0x987   :  { %4515 = vpow2.f32 %v2759_v7  ;;  %v2757_v13 = vmul.f32 1.442695, %v2738_v33  ;;  %v1628_v8 = vadd.f32 %v7942_v5, %v1527_v0  ;;  %v1715_v7 = vadd.f32 %v7943_v53, %v1527_v0  ;;  %v7951_v5 = vld [vmem:[#allocation57_spill] sm:$0xff] }
 0x988   :  { %4517 = vpow2.f32 %v2761_v23  ;;  %v1731_v33 = vsub.f32 0.0, %v1626_v44 }
 0x989   :  { %4519 = vpow2.f32 %v2763_v52  ;;  %v1717_v52 = vadd.f32 %v7944_v30, %v1527_v0 }
 0x98a   :  { %4521 = vpow2.f32 %v2765_v34 }
 0x98b   :  { %4523 = vpow2.f32 %v2751_v49  ;;  %v7945_v49 = vld [vmem:[#allocation58_spill] sm:$0xff] }
 0x98c   :  { %v4500_v41 = vpop.eup %4499  ;;  %4525 = vpow2.f32 %v2753_v19  ;;  %v1620_v19 = vadd.f32 %v7945_v49, %v1522_v59 }
 0x98d   :  { %v4502_v25 = vpop.eup %4501  ;;  %4527 = vpow2.f32 %v2755_v57  ;;  %v2795_v29 = vadd.f32 1.0, %v4500_v41  ;;  %v7946_v41 = vld [vmem:[#allocation60_spill] sm:$0xff] }
 0x98e   :  { %v4504_v26 = vpop.eup %4503  ;;  %4529 = vpow2.f32 %v2757_v13  ;;  %v2796_v54 = vadd.f32 1.0, %v4502_v25  ;;  %v1732_v13 = vsub.f32 0.0, %v1628_v8  ;;  %v1622_v25 = vadd.f32 %v7946_v41, %v1522_v59 }
 0x98f   :  { %v4506_v15 = vpop.eup %4505  ;;  %v2797_v28 = vadd.f32 1.0, %v4504_v26  ;;  %4531 = vrcp.f32 %v2795_v29  ;;  %v1517_v26 = vpop.permute.xlu0 %1516  ;;  %v1733_v29 = vsub.f32 0.0, %v1715_v7 }
 0x990   :  { %v4508_v43 = vpop.eup %4507  ;;  %v2798_v22 = vadd.f32 1.0, %v4506_v15  ;;  %4533 = vrcp.f32 %v2796_v54  ;;  %v1703_v8 = vadd.f32 %v7951_v5, %v1517_v26 }
 0x991   :  { %v4510_v20 = vpop.eup %4509  ;;  %v2791_v45 = vadd.f32 1.0, %v4508_v43  ;;  %4535 = vrcp.f32 %v2797_v28  ;;  %v7947_v43 = vld [vmem:[#allocation61_spill] sm:$0xff]  ;;  %v1734_v28 = vsub.f32 0.0, %v1717_v52 }
 0x992   :  { %v4512_v39 = vpop.eup %4511  ;;  %v2792_v2 = vadd.f32 1.0, %v4510_v20  ;;  %4537 = vrcp.f32 %v2798_v22  ;;  %v1709_v54 = vadd.f32 %v7947_v43, %v1522_v59 }
 0x993   :  { %v4514_v10 = vpop.eup %4513  ;;  %v2793_v56 = vadd.f32 1.0, %v4512_v39  ;;  %4539 = vrcp.f32 %v2791_v45  ;;  %v7948_v39 = vld [vmem:[#allocation63_spill] sm:$0xff]  ;;  %v1727_v45 = vsub.f32 0.0, %v1620_v19 }
 0x994   :  { %v4516_v51 = vpop.eup %4515  ;;  %v2794_v63 = vadd.f32 1.0, %v4514_v10  ;;  %4541 = vrcp.f32 %v2792_v2  ;;  %v1711_v22 = vadd.f32 %v7948_v39, %v1522_v59  ;;  %v1759_v10 = vmul.f32 1.442695, %v1731_v33 }
 0x995   :  { %v4518_v11 = vpop.eup %4517  ;;  %v2787_v48 = vadd.f32 1.0, %v4516_v51  ;;  %4543 = vrcp.f32 %v2793_v56  ;;  %v7949_v51 = vld [vmem:[#allocation54_spill] sm:$0xff]  ;;  %v1728_v56 = vsub.f32 0.0, %v1622_v25 }
 0x996   :  { %v4520_v27 = vpop.eup %4519  ;;  %v2788_v47 = vadd.f32 1.0, %v4518_v11  ;;  %4545 = vrcp.f32 %v2794_v63  ;;  %v1614_v2 = vadd.f32 %v7949_v51, %v1517_v26  ;;  %v1761_v11 = vmul.f32 1.442695, %v1732_v13 }
 0x997   :  { %v4522_v12 = vpop.eup %4521  ;;  %v2789_v58 = vadd.f32 1.0, %v4520_v27  ;;  %4547 = vrcp.f32 %v2787_v48  ;;  %v1763_v63 = vmul.f32 1.442695, %v1733_v29  ;;  %v7950_v48 = vld [vmem:[#allocation56_spill] sm:$0xff] }
 0x998   :  { %v4524_v60 = vpop.eup %4523  ;;  %v2790_v23 = vadd.f32 1.0, %v4522_v12  ;;  %4549 = vrcp.f32 %v2788_v47  ;;  %v1729_v12 = vsub.f32 0.0, %v1709_v54  ;;  %v1616_v42 = vadd.f32 %v7950_v48, %v1517_v26 }
 0x999   :  { %v4526_v50 = vpop.eup %4525  ;;  %v2783_v34 = vadd.f32 1.0, %v4524_v60  ;;  %4551 = vrcp.f32 %v2789_v58  ;;  %v1765_v60 = vmul.f32 1.442695, %v1734_v28  ;;  %v1730_v47 = vsub.f32 0.0, %v1711_v22  ;;  %v7952_v58 = vld [vmem:[#allocation59_spill] sm:$0xff] }
 0x99a   :  { %v4528_v38 = vpop.eup %4527  ;;  %v2784_v57 = vadd.f32 1.0, %v4526_v50  ;;  %4553 = vrcp.f32 %v2790_v23  ;;  %v1751_v50 = vmul.f32 1.442695, %v1727_v45  ;;  %v1705_v53 = vadd.f32 %v7952_v58, %v1517_v26 }
 0x99b   :  { %v4530_v31 = vpop.eup %4529  ;;  %v2785_v15 = vadd.f32 1.0, %v4528_v38  ;;  %4555 = vrcp.f32 %v2783_v34  ;;  %v1723_v7 = vsub.f32 0.0, %v1614_v2  ;;  %v1753_v23 = vmul.f32 1.442695, %v1728_v56 }
 0x99c   :  { %v2786_v20 = vadd.f32 1.0, %v4530_v31  ;;  %v7384_v0 = vpop.eup %4531  ;;  %4557 = vrcp.f32 %v2784_v57  ;;  %v1755_v31 = vmul.f32 1.442695, %v1729_v12  ;;  %v1724_v34 = vsub.f32 0.0, %v1616_v42 }
 0x99d   :  { %v7386_v27 = vpop.eup %4533  ;;  %4559 = vrcp.f32 %v2785_v15  ;;  %v1757_v19 = vmul.f32 1.442695, %v1730_v47  ;;  %v1725_v57 = vsub.f32 0.0, %v1703_v8  ;;  %v1726_v26 = vsub.f32 0.0, %v1705_v53 }
 0x99e   :  { %v7389_v44 = vpop.eup %4535  ;;  %4561 = vrcp.f32 %v2786_v20  ;;  %v1743_v15 = vmul.f32 1.442695, %v1723_v7  ;;  %v1745_v22 = vmul.f32 1.442695, %v1724_v34 }
 0x99f   :  { %v7392_v59 = vpop.eup %4537  ;;  %4563 = vpow2.f32 %v1759_v10  ;;  %v1747_v45 = vmul.f32 1.442695, %v1725_v57  ;;  %v1749_v56 = vmul.f32 1.442695, %v1726_v26 }
 0x9a0   :  { %v7395_v38 = vpop.eup %4539  ;;  %4565 = vpow2.f32 %v1761_v11 }
 0x9a1   :  { %v7397_v52 = vpop.eup %4541  ;;  %4567 = vpow2.f32 %v1763_v63 }
 0x9a2   :  { %v7400_v49 = vpop.eup %4543  ;;  %4569 = vpow2.f32 %v1765_v60 }
 0x9a3   :  { %7953 = vst [vmem:[#allocation22_spill] sm:$0xff] %v7400_v49  ;;  %v7404_v25 = vpop.eup %4545  ;;  %4571 = vpow2.f32 %v1751_v50  ;;  %v7421_v50 = vpop.permute.xlu1 %1511 }
 0x9a4   :  { %v7406_v29 = vpop.eup %4547  ;;  %4573 = vpow2.f32 %v1753_v23 }
 0x9a5   :  { %v7409_v39 = vpop.eup %4549  ;;  %4575 = vpow2.f32 %v1755_v31 }
 0x9a6   :  { %v7411_v10 = vpop.eup %4551  ;;  %4577 = vpow2.f32 %v1757_v19 }
 0x9a7   :  { %7954 = vst [vmem:[#allocation23_spill] sm:$0xff] %v7411_v10  ;;  %v7413_v11 = vpop.eup %4553  ;;  %4579 = vpow2.f32 %v1743_v15 }
 0x9a8   :  { %7955 = vst [vmem:[#allocation24_spill] sm:$0xff] %v7413_v11  ;;  %v7415_v63 = vpop.eup %4555  ;;  %4581 = vpow2.f32 %v1745_v22 }
 0x9a9   :  { %v7419_v8 = vpop.eup %4557  ;;  %4583 = vpow2.f32 %v1747_v45 }
 0x9aa   :  { %v7427_v7 = vpop.eup %4559  ;;  %4585 = vpow2.f32 %v1749_v56 }
 0x9ab   :  { %7956 = vst [vmem:[#allocation26_spill] sm:$0xff] %v7427_v7  ;;  %v7429_v34 = vpop.eup %4561 }
 0x9ac   :  { %7957 = vst [vmem:[#allocation25_spill] sm:$0xff] %v7429_v34  ;;  %v7432_v57 = vpop.eup %4563 }
 0xa2e   :  { %v3639_v30 = vpop.f32.mrf.mxu0 }
 0xa2f   :  { %v3640_v33 = vadd.f32 %v3639_v30, %v7357_v21 }
 0xa30   :  { %v3641_v13 = vpop.f32.mrf.mxu0  ;;  %v7402_v41 = vpop.f32.mrf.mxu1 }
 0xa31   :  { %v3751_v43 = vsub.f32 0.0, %v3640_v33  ;;  %v3642_v54 = vadd.f32 %v3641_v13, %v7357_v21  ;;  %v7958_v13 = vld [vmem:[#allocation51_spill] sm:$0xff] }
 0xa32   :  { %v3645_v20 = vpop.f32.mrf.mxu0  ;;  %v3730_v28 = vpop.f32.mrf.mxu1  ;;  %v7436_v26 = vadd.f32 %v7958_v13, %v7421_v50 }
 0xa33   :  { %v3767_v12 = vmul.f32 1.442695, %v3751_v43  ;;  %v3752_v48 = vsub.f32 0.0, %v3642_v54  ;;  %v3646_v42 = vadd.f32 %v3645_v20, %v7355_v4  ;;  %v7424_v58 = vadd.f32 %v3730_v28, %v7357_v21  ;;  %v7438_v28 = vpop.eup %4565 }
 0xa34   :  { %v3647_v51 = vpop.f32.mrf.mxu0  ;;  %v3734_v2 = vpop.f32.mrf.mxu1 }
 0xa35   :  { %v3648_v60 = vadd.f32 %v3647_v51, %v7355_v4  ;;  %4587 = vpow2.f32 %v3767_v12  ;;  %v3769_v15 = vmul.f32 1.442695, %v3752_v48  ;;  %v3755_v43 = vsub.f32 0.0, %v3646_v42 }
 0xa36   :  { %v3651_v47 = vpop.f32.mrf.mxu0  ;;  %v3736_v5 = vpop.f32.mrf.mxu1  ;;  %v3754_v22 = vsub.f32 0.0, %v7424_v58 }
 0xa37   :  { %v3652_v53 = vadd.f32 %v3651_v47, %v7353_v32  ;;  %v3756_v23 = vsub.f32 0.0, %v3648_v60  ;;  %v7442_v60 = vpop.eup %4567  ;;  %v3735_v47 = vadd.f32 %v3734_v2, %v7355_v4  ;;  %4589 = vpow2.f32 %v3769_v15 }
 0xa38   :  { %v3653_v30 = vpop.f32.mrf.mxu0  ;;  %v3740_v31 = vpop.f32.mrf.mxu1  ;;  %v3775_v34 = vmul.f32 1.442695, %v3755_v43 }
 0xa39   :  { %v3759_v33 = vsub.f32 0.0, %v3652_v53  ;;  %v3654_v19 = vadd.f32 %v3653_v30, %v7353_v32  ;;  %v3777_v45 = vmul.f32 1.442695, %v3756_v23  ;;  %v3737_v53 = vadd.f32 %v3736_v5, %v7355_v4  ;;  %v7448_v13 = vpop.eup %4569 }
 0xa3a   :  { %v3657_v54 = vpop.f32.mrf.mxu0  ;;  %v3742_v20 = vpop.f32.mrf.mxu1  ;;  %v3741_v12 = vadd.f32 %v3740_v31, %v7353_v32 }
 0xa3b   :  { %v3760_v51 = vsub.f32 0.0, %v3654_v19  ;;  %v3658_v56 = vadd.f32 %v3657_v54, %v7351_v61  ;;  %v3743_v48 = vadd.f32 %v3742_v20, %v7353_v32  ;;  %v3783_v7 = vmul.f32 1.442695, %v3759_v33  ;;  %v7451_v54 = vpop.eup %4571 }
 0xa3c   :  { %v3659_v42 = vpop.f32.mrf.mxu0  ;;  %v3746_v30 = vpop.f32.mrf.mxu1  ;;  %4591 = vpow2.f32 %v3777_v45  ;;  %v7959_v45 = vld [vmem:[#allocation52_spill] sm:$0xff] }
 0xa3d   :  { %v3785_v58 = vmul.f32 1.442695, %v3760_v51  ;;  %v3763_v23 = vsub.f32 0.0, %v3658_v56  ;;  %v3660_v19 = vadd.f32 %v3659_v42, %v7351_v61  ;;  %v3762_v2 = vsub.f32 0.0, %v3743_v48  ;;  %v7454_v31 = vpop.eup %4573 }
 0xa3e   :  { %v3747_v4 = vadd.f32 %v3746_v30, %v7351_v61  ;;  %v3748_v5 = vpop.f32.mrf.mxu1  ;;  %v7457_v33 = vpop.eup %4575  ;;  %v3729_v51 = vadd.f32 %v7402_v41, %v7357_v21  ;;  %v3761_v56 = vsub.f32 0.0, %v3741_v12  ;;  %v3758_v48 = vsub.f32 0.0, %v3737_v53 }
 0xa3f   :  { %v3791_v32 = vmul.f32 1.442695, %v3763_v23  ;;  %v3764_v20 = vsub.f32 0.0, %v3660_v19  ;;  %v3749_v10 = vadd.f32 %v3748_v5, %v7351_v61  ;;  %4593 = vpow2.f32 %v3785_v58  ;;  %v7461_v43 = vpop.eup %4577  ;;  %v7960_v5 = vld [vmem:[#allocation53_spill] sm:$0xff] }
 0xa40   :  { %v3765_v15 = vsub.f32 0.0, %v3747_v4  ;;  %4595 = vpow2.f32 %v3783_v7  ;;  %v3789_v42 = vmul.f32 1.442695, %v3762_v2  ;;  %v7463_v11 = vpop.eup %4579  ;;  %v1610_v23 = vadd.f32 %v7959_v45, %v7421_v50  ;;  %v7961_v7 = vld [vmem:[#allocation55_spill] sm:$0xff] }
 0xa41   :  { %v3793_v30 = vmul.f32 1.442695, %v3764_v20  ;;  %v3757_v61 = vsub.f32 0.0, %v3735_v47  ;;  %4597 = vpow2.f32 %v3791_v32  ;;  %v1697_v21 = vadd.f32 %v7960_v5, %v7421_v50  ;;  %v7469_v58 = vpop.eup %4581 }
 0xa42   :  { %v3795_v19 = vmul.f32 1.442695, %v3765_v15  ;;  %4599 = vpow2.f32 %v3775_v34  ;;  %v3773_v41 = vmul.f32 1.442695, %v3754_v22  ;;  %v3766_v12 = vsub.f32 0.0, %v3749_v10  ;;  %v7473_v20 = vpop.eup %4583 }
 0xa43   :  { %v1699_v53 = vadd.f32 %v7961_v7, %v7421_v50  ;;  %v3753_v2 = vsub.f32 0.0, %v3729_v51  ;;  %v3787_v4 = vmul.f32 1.442695, %v3761_v56  ;;  %4601 = vpow2.f32 %v3793_v30  ;;  %v7476_v15 = vpop.eup %4585 }
 0xa44   :  { %v1719_v47 = vsub.f32 0.0, %v7436_v26  ;;  %v3781_v32 = vmul.f32 1.442695, %v3758_v48  ;;  %4603 = vpow2.f32 %v3789_v42  ;;  %v1720_v45 = vsub.f32 0.0, %v1610_v23  ;;  %v4588_v10 = vpop.eup %4587 }
 0xa45   :  { %v3779_v34 = vmul.f32 1.442695, %v3757_v61  ;;  %4605 = vpow2.f32 %v3795_v19  ;;  %v1721_v22 = vsub.f32 0.0, %v1697_v21  ;;  %v3797_v5 = vmul.f32 1.442695, %v3766_v12  ;;  %v4590_v30 = vpop.eup %4589 }
 0xa46   :  { %4607 = vpow2.f32 %v3773_v41  ;;  %v1722_v49 = vsub.f32 0.0, %v1699_v53  ;;  %v3771_v50 = vmul.f32 1.442695, %v3753_v2  ;;  %v1735_v51 = vmul.f32 1.442695, %v1719_v47 }
 0xa47   :  { %4609 = vpow2.f32 %v3787_v4  ;;  %v1737_v56 = vmul.f32 1.442695, %v1720_v45  ;;  %v1739_v26 = vmul.f32 1.442695, %v1721_v22  ;;  %v3799_v61 = vadd.f32 1.0, %v4588_v10 }
 0xa48   :  { %4611 = vpow2.f32 %v3781_v32  ;;  %v1741_v42 = vmul.f32 1.442695, %v1722_v49  ;;  %v3800_v10 = vadd.f32 1.0, %v4590_v30 }
 0xa49   :  { %4613 = vpow2.f32 %v3779_v34  ;;  %v4592_v48 = vpop.eup %4591 }
 0xa4a   :  { %4615 = vpow2.f32 %v3797_v5  ;;  %v3804_v47 = vadd.f32 1.0, %v4592_v48 }
 0xa4b   :  { %4617 = vpow2.f32 %v3771_v50 }
 0xa4c   :  { %v4594_v23 = vpop.eup %4593  ;;  %4619 = vpow2.f32 %v1735_v51 }
 0xa4d   :  { %v4596_v19 = vpop.eup %4595  ;;  %4621 = vpow2.f32 %v1737_v56  ;;  %v3808_v21 = vadd.f32 1.0, %v4594_v23 }
 0xa4e   :  { %v4598_v41 = vpop.eup %4597  ;;  %4623 = vpow2.f32 %v1739_v26  ;;  %v3807_v2 = vadd.f32 1.0, %v4596_v19 }
 0xa4f   :  { %v4600_v12 = vpop.eup %4599  ;;  %4625 = vpow2.f32 %v1741_v42  ;;  %v3811_v7 = vadd.f32 1.0, %v4598_v41 }
 0xa50   :  { %v4602_v53 = vpop.eup %4601  ;;  %4627 = vrcp.f32 %v3799_v61  ;;  %v3803_v45 = vadd.f32 1.0, %v4600_v12 }
 0xa51   :  { %v4604_v4 = vpop.eup %4603  ;;  %4629 = vrcp.f32 %v3808_v21  ;;  %v3812_v32 = vadd.f32 1.0, %v4602_v53 }
 0xa52   :  { %v4606_v49 = vpop.eup %4605  ;;  %4631 = vrcp.f32 %v3811_v7  ;;  %v3810_v5 = vadd.f32 1.0, %v4604_v4 }
 0xa53   :  { %v4608_v34 = vpop.eup %4607  ;;  %4633 = vrcp.f32 %v3812_v32  ;;  %v3813_v51 = vadd.f32 1.0, %v4606_v49  ;;  %v1782_v49 = vadd.f32 1.0, %v7448_v13 }
 0xa54   :  { %v4610_v22 = vpop.eup %4609  ;;  %4635 = vrcp.f32 %v3807_v2  ;;  %v3802_v41 = vadd.f32 1.0, %v4608_v34  ;;  %v1779_v2 = vadd.f32 1.0, %v7432_v57  ;;  %v1776_v34 = vadd.f32 1.0, %v7454_v31 }
 0xa55   :  { %v4612_v50 = vpop.eup %4611  ;;  %4637 = vrcp.f32 %v3804_v47  ;;  %v3809_v42 = vadd.f32 1.0, %v4610_v22  ;;  %v1780_v47 = vadd.f32 1.0, %v7438_v28  ;;  %v1775_v22 = vadd.f32 1.0, %v7451_v54 }
 0xa56   :  { %v4614_v56 = vpop.eup %4613  ;;  %4639 = vrcp.f32 %v3803_v45  ;;  %v3806_v23 = vadd.f32 1.0, %v4612_v50  ;;  %v1772_v57 = vadd.f32 1.0, %v7469_v58 }
 0xa57   :  { %v4616_v26 = vpop.eup %4615  ;;  %4641 = vrcp.f32 %v3800_v10  ;;  %v3805_v21 = vadd.f32 1.0, %v4614_v56 }
 0xa58   :  { %v4618_v48 = vpop.eup %4617  ;;  %4643 = vrcp.f32 %v3810_v5  ;;  %v3814_v61 = vadd.f32 1.0, %v4616_v26 }
 0xa59   :  { %v4620_v19 = vpop.eup %4619  ;;  %4645 = vrcp.f32 %v3813_v51  ;;  %v3801_v7 = vadd.f32 1.0, %v4618_v48  ;;  %v1771_v51 = vadd.f32 1.0, %v7463_v11 }
 0xa5a   :  { %v4622_v30 = vpop.eup %4621  ;;  %4647 = vrcp.f32 %v3814_v61  ;;  %v1767_v54 = vadd.f32 1.0, %v4620_v19  ;;  %v1777_v19 = vadd.f32 1.0, %v7457_v33  ;;  %v7962_v33 = vld [vmem:[#allocation80_spill] sm:$0xff] }
 0xa5b   :  { %v7478_v12 = vpop.eup %4623  ;;  %4649 = vrcp.f32 %v3809_v42  ;;  %v1768_v31 = vadd.f32 1.0, %v4622_v30 }
 0xa5c   :  { %v4626_v53 = vpop.eup %4625  ;;  %4651 = vrcp.f32 %v3806_v23  ;;  %v1778_v23 = vadd.f32 1.0, %v7461_v43 }
 0xa5d   :  { %v4628_v4 = vpop.eup %4627  ;;  %4653 = vrcp.f32 %v3805_v21 }
 0xa5e   :  { %v4630_v32 = vpop.eup %4629  ;;  %4655 = vrcp.f32 %v3802_v41  ;;  %v3847_v43 = vadd.f32 %v4628_v4, %v7921_v18 }
 0xa5f   :  { %v4632_v45 = vpop.eup %4631  ;;  %4657 = vrcp.f32 %v3801_v7  ;;  %v3856_v26 = vadd.f32 %v4630_v32, %v6810_v17  ;;  %v2844_v7 = vadd.f32 %v7386_v27, %v7962_v33 }
 0xa60   :  { %v4634_v10 = vpop.eup %4633  ;;  %4659 = vrcp.f32 %v1779_v2  ;;  %v3859_v13 = vadd.f32 %v4632_v45, %v6830_v35  ;;  %v1770_v2 = vadd.f32 1.0, %v4626_v53  ;;  %v7965_v53 = vld [vmem:[#allocation75_spill] sm:$0xff] }
 0xa61   :  { %v4636_v5 = vpop.eup %4635  ;;  %4661 = vrcp.f32 %v1780_v47  ;;  %v3860_v50 = vadd.f32 %v4634_v10, %v6834_v55  ;;  %v1781_v55 = vadd.f32 1.0, %v7442_v60  ;;  %v1774_v60 = vadd.f32 1.0, %v7476_v15  ;;  %v7964_v47 = vld [vmem:[#allocation76_spill] sm:$0xff] }
 0xa62   :  { %v4638_v28 = vpop.eup %4637  ;;  %4663 = vrcp.f32 %v1782_v49  ;;  %v3855_v58 = vadd.f32 %v4636_v5, %v6806_v9  ;;  %v2840_v27 = vadd.f32 %v7397_v52, %v7964_v47  ;;  %v7990_v47 = vld [vmem:[#allocation50_spill] sm:$0xff] }
 0xa63   :  { %v4640_v56 = vpop.eup %4639  ;;  %4665 = vrcp.f32 %v1776_v34  ;;  %3950 = vmatprep.subr.mxu0 %v3860_v50  ;;  %v3852_v11 = vadd.f32 %v4638_v28, %v6786_v1 }
 0xa64   :  { %v4642_v42 = vpop.eup %4641  ;;  %4667 = vrcp.f32 %v1775_v22  ;;  %3951 = vmatpush1.msra.mxu0 %v3859_v13  ;;  %v3851_v17 = vadd.f32 %v4640_v56, %v7916_v3  ;;  %v1773_v3 = vadd.f32 1.0, %v7473_v20  ;;  %v1769_v20 = vadd.f32 1.0, %v7478_v12 }
 0xa65   :  { %v4644_v48 = vpop.eup %4643  ;;  %4669 = vrcp.f32 %v1772_v57  ;;  %3952 = vmatprep.subr.mxu0 %v3856_v26  ;;  %v3848_v9 = vadd.f32 %v4642_v42, %v7920_v40  ;;  %v7974_v42 = vld [vmem:[#allocation47_spill] sm:$0xff] }
 0xa66   :  { %v4646_v35 = vpop.eup %4645  ;;  %4671 = vrcp.f32 %v1771_v51  ;;  %3953 = vmatpush1.msra.mxu0 %v3855_v58  ;;  %v3858_v15 = vadd.f32 %v4644_v48, %v6818_v6  ;;  %v7975_v58 = vld [vmem:[#allocation77_spill] sm:$0xff] }
 0xa67   :  { %v4648_v61 = vpop.eup %4647  ;;  %4673 = vrcp.f32 %v1768_v31  ;;  %3954 = vmatprep.subr.mxu0 %v3852_v11  ;;  %v3861_v41 = vadd.f32 %v4646_v35, %v6838_v46  ;;  %v7978_v35 = vld [vmem:[#allocation74_spill] sm:$0xff] }
 0xa68   :  { %v4650_v21 = vpop.eup %4649  ;;  %4675 = vrcp.f32 %v1767_v54  ;;  %v3862_v1 = vadd.f32 %v4648_v61, %v6842_v36  ;;  %3955 = vmatpush1.msra.mxu0 %v3851_v17  ;;  %v7963_v36 = vld [vmem:[#allocation79_spill] sm:$0xff] }
 0xa69   :  { %v4652_v30 = vpop.eup %4651  ;;  %4677 = vrcp.f32 %v1781_v55  ;;  %3956 = vmatprep.subr.mxu0 %v3848_v9  ;;  %v2843_v18 = vadd.f32 %v7384_v0, %v7963_v36  ;;  %v3857_v46 = vadd.f32 %v4650_v21, %v7917_v37  ;;  %v2839_v0 = vadd.f32 %v7395_v38, %v7965_v53  ;;  %v7966_v37 = vld [vmem:[#allocation72_spill] sm:$0xff]  ;;  %v7980_v61 = vld [vmem:[#allocation43_spill] sm:$0xff]  ;;  %v7981_v9 = vld [vmem:[#allocation73_spill] sm:$0xff] }
 0xa6a   :  { %v4654_v40 = vpop.eup %4653  ;;  %4679 = vrcp.f32 %v1778_v23  ;;  %4021 = vmatprep.subr.mxu1 %v3862_v1  ;;  %3957 = vmatpush1.msra.mxu0 %v3847_v43  ;;  %v3854_v6 = vadd.f32 %v4652_v30, %v7918_v16  ;;  %v2836_v45 = vadd.f32 %v7409_v39, %v7966_v37  ;;  %v7967_v16 = vld [vmem:[#allocation71_spill] sm:$0xff]  ;;  %v7969_v39 = vld [vmem:[#allocation82_spill] sm:$0xff]  ;;  %v7977_v55 = vld [vmem:[#allocation44_spill] sm:$0xff] }
 0xa6b   :  { %v4656_v4 = vpop.eup %4655  ;;  %4681 = vrcp.f32 %v1777_v19  ;;  %4022 = vmatpush1.msra.mxu1 %v3861_v41  ;;  %3958 = vmatprep.subr.mxu0 %v2844_v7  ;;  %v3853_v12 = vadd.f32 %v4654_v40, %v7919_v24  ;;  %v2835_v10 = vadd.f32 %v7406_v29, %v7967_v16  ;;  %v7968_v24 = vld [vmem:[#allocation68_spill] sm:$0xff]  ;;  %v2846_v50 = vadd.f32 %v7392_v59, %v7969_v39  ;;  %v7971_v29 = vld [vmem:[#allocation81_spill] sm:$0xff]  ;;  %v7982_v21 = vld [vmem:[#allocation23_spill] sm:$0xff] }
 0xa6c   :  { %v4658_v32 = vpop.eup %4657  ;;  %4683 = vrcp.f32 %v1774_v60  ;;  %4023 = vmatprep.subr.mxu1 %v3858_v15  ;;  %3959 = vmatpush1.msra.mxu0 %v2843_v18  ;;  %v3850_v52 = vadd.f32 %v4656_v4, %v7923_v14  ;;  %v2832_v5 = vadd.f32 %v7419_v8, %v7968_v24  ;;  %v7970_v14 = vld [vmem:[#allocation67_spill] sm:$0xff]  ;;  %v2845_v13 = vadd.f32 %v7389_v44, %v7971_v29  ;;  %v7973_v8 = vld [vmem:[#allocation78_spill] sm:$0xff]  ;;  %v7979_v23 = vld [vmem:[#allocation24_spill] sm:$0xff] }
 0xa6d   :  { %v4660_v49 = vpop.eup %4659  ;;  %4685 = vrcp.f32 %v1773_v3  ;;  %4024 = vmatpush1.msra.mxu1 %v3857_v46  ;;  %3960 = vmatprep.subr.mxu0 %v2840_v27  ;;  %v3849_v38 = vadd.f32 %v4658_v32, %v7922_v62  ;;  %v2831_v28 = vadd.f32 %v7415_v63, %v7970_v14  ;;  %v7972_v62 = vld [vmem:[#allocation48_spill] sm:$0xff]  ;;  %v2842_v26 = vadd.f32 %v7404_v25, %v7973_v8  ;;  %v7976_v63 = vld [vmem:[#allocation22_spill] sm:$0xff]  ;;  %v7985_v41 = vld [vmem:[#allocation25_spill] sm:$0xff] }
 0xa6e   :  { %v4662_v34 = vpop.eup %4661  ;;  %4687 = vrcp.f32 %v1770_v2  ;;  %4025 = vmatprep.subr.mxu1 %v3854_v6  ;;  %3961 = vmatpush1.msra.mxu0 %v2839_v0  ;;  %v1827_v59 = vadd.f32 %v4660_v49, %v7974_v42  ;;  %v2841_v48 = vadd.f32 %v7976_v63, %v7975_v58  ;;  %v2838_v17 = vadd.f32 %v7979_v23, %v7978_v35  ;;  %v7983_v1 = vld [vmem:[#allocation40_spill] sm:$0xff]  ;;  %v7984_v3 = vld [vmem:[#allocation70_spill] sm:$0xff]  ;;  %v7986_v7 = vld [vmem:[#allocation39_spill] sm:$0xff] }
 0xa6f   :  { %v4664_v22 = vpop.eup %4663  ;;  %4689 = vrcp.f32 %v1769_v20  ;;  %4026 = vmatpush1.msra.mxu1 %v3853_v12  ;;  %3962 = vmatprep.subr.mxu0 %v2836_v45  ;;  %v1828_v56 = vadd.f32 %v4662_v34, %v7972_v62  ;;  %v2837_v60 = vadd.f32 %v7982_v21, %v7981_v9  ;;  %v2834_v33 = vadd.f32 %v7985_v41, %v7984_v3  ;;  %v7987_v15 = vld [vmem:[#allocation69_spill] sm:$0xff]  ;;  %v7988_v36 = vld [vmem:[#allocation26_spill] sm:$0xff]  ;;  %v7989_v4 = vld [vmem:[#allocation36_spill] sm:$0xff] }
 0xa70   :  { %v4666_v57 = vpop.eup %4665  ;;  %4027 = vmatprep.subr.mxu1 %v3850_v52  ;;  %3963 = vmatpush1.msra.mxu0 %v2835_v10  ;;  %v2833_v18 = vadd.f32 %v7988_v36, %v7987_v15  ;;  %v1830_v27 = vadd.f32 %v4664_v22, %v7990_v47  ;;  %v7991_v32 = vld [vmem:[#allocation35_spill] sm:$0xff]  ;;  %v7992_v0 = vld [vmem:[#allocation49_spill] sm:$0xff]  ;;  %v7993_v37 = vld [vmem:[#allocation46_spill] sm:$0xff] }
 0xa71   :  { %v4668_v51 = vpop.eup %4667  ;;  %4028 = vmatpush1.msra.mxu1 %v3849_v38  ;;  %3964 = vmatprep.subr.mxu0 %v2832_v5  ;;  %v1824_v11 = vadd.f32 %v4666_v57, %v7977_v55  ;;  %v7994_v52 = vld [vmem:[#allocation45_spill] sm:$0xff]  ;;  %v7995_v10 = vld [vmem:[#allocation16_spill] sm:$0xff]  ;;  %v7996_v38 = vld [vmem:[#allocation42_spill] sm:$0xff] }
 0xa72   :  { %v4670_v31 = vpop.eup %4669  ;;  %4029 = vmatprep.subr.mxu1 %v2846_v50  ;;  %3965 = vmatpush1.msra.mxu0 %v2831_v28  ;;  %v1823_v19 = vadd.f32 %v4668_v51, %v7980_v61  ;;  %v7997_v5 = vld [vmem:[#allocation15_spill] sm:$0xff]  ;;  %v7998_v57 = vld [vmem:[#allocation41_spill] sm:$0xff]  ;;  %v7999_v50 = vld [vmem:[#allocation12_spill] sm:$0xff] }
 0xa73   :  { %v4672_v54 = vpop.eup %4671  ;;  %4030 = vmatpush1.msra.mxu1 %v2845_v13  ;;  %3966 = vmatprep.subr.mxu0 %v1828_v56  ;;  %v1820_v43 = vadd.f32 %v4670_v31, %v7983_v1  ;;  %v8000_v14 = vld [vmem:[#allocation38_spill] sm:$0xff]  ;;  %v8001_v51 = vld [vmem:[#allocation11_spill] sm:$0xff]  ;;  %v8002_v29 = vld [vmem:[#allocation37_spill] sm:$0xff] }
 0xa74   :  { %v4674_v44 = vpop.eup %4673  ;;  %4031 = vmatprep.subr.mxu1 %v2842_v26  ;;  %3967 = vmatpush1.msra.mxu0 %v1827_v59  ;;  %v1819_v40 = vadd.f32 %v4672_v54, %v7986_v7  ;;  %v8003_v62 = vld [vmem:[#allocation8_spill] sm:$0xff]  ;;  %v8004_v56 = vld [vmem:[#allocation7_spill] sm:$0xff]  ;;  %v8006_v26 = vld [vmem:[#allocation18_spill] sm:$0xff] }
 0xa75   :  { %v4676_v25 = vpop.eup %4675  ;;  %4032 = vmatpush1.msra.mxu1 %v2841_v48  ;;  %3968 = vmatprep.subr.mxu0 %v1824_v11  ;;  %v1816_v20 = vadd.f32 %v4674_v44, %v7989_v4  ;;  %v3879_v31 = vld [vmem:[%s7587_s3] sm:$0xf]  ;;  %v8005_v8 = vld [vmem:[#allocation4_spill] sm:$0xff]  ;;  %v8008_v59 = vld [vmem:[#allocation17_spill] sm:$0xff]  ;;  %v3948_v44 = vpop.permute.xlu0 %3947 }
 0xa76   :  { %v4678_v30 = vpop.eup %4677  ;;  %4033 = vmatprep.subr.mxu1 %v2838_v17  ;;  %3969 = vmatpush1.msra.mxu0 %v1823_v19  ;;  %v1815_v6 = vadd.f32 %v4676_v25, %v7991_v32  ;;  %v8007_v42 = vld [vmem:[#allocation3_spill] sm:$0xff]  ;;  %v8009_v54 = vld [vmem:[#allocation14_spill] sm:$0xff]  ;;  %v8010_v58 = vld [vmem:[#allocation13_spill] sm:$0xff] }
 0xa77   :  { %v4680_v2 = vpop.eup %4679  ;;  %4034 = vmatpush1.msra.mxu1 %v2837_v60  ;;  %3970 = vmatprep.subr.mxu0 %v1820_v43  ;;  %v1829_v49 = vadd.f32 %v4678_v30, %v7992_v0  ;;  %v8011_v63 = vld [vmem:[#allocation10_spill] sm:$0xff]  ;;  %v8012_v48 = vld [vmem:[#allocation9_spill] sm:$0xff] }
 0xa78   :  { %v4682_v46 = vpop.eup %4681  ;;  %4035 = vmatprep.subr.mxu1 %v2834_v33  ;;  %3971 = vmatpush1.msra.mxu0 %v1819_v40  ;;  %v1826_v45 = vadd.f32 %v4680_v2, %v7993_v37  ;;  %v8013_v55 = vld [vmem:[#allocation6_spill] sm:$0xff]  ;;  %v8014_v11 = vld [vmem:[#allocation5_spill] sm:$0xff] }
 0xa79   :  { %v4684_v53 = vpop.eup %4683  ;;  %4036 = vmatpush1.msra.mxu1 %v2833_v18  ;;  %3972 = vmatprep.subr.mxu0 %v1816_v20  ;;  %v1825_v16 = vadd.f32 %v4682_v46, %v7994_v52 }
 0xa7a   :  { %v4686_v12 = vpop.eup %4685  ;;  %4037 = vmatprep.subr.mxu1 %v1830_v27  ;;  %3973 = vmatpush1.msra.mxu0 %v1815_v6  ;;  %v1822_v24 = vadd.f32 %v4684_v53, %v7996_v38 }
 0xa7b   :  { %v4688_v34 = vpop.eup %4687  ;;  %4038 = vmatpush1.msra.mxu1 %v1829_v49  ;;  %3974 = vmatprep.subr.mxu0 %v7995_v10  ;;  %v1821_v39 = vadd.f32 %v4686_v12, %v7998_v57 }
 0xa7c   :  { %v4690_v22 = vpop.eup %4689  ;;  %4039 = vmatprep.subr.mxu1 %v1826_v45  ;;  %3975 = vmatpush1.msra.mxu0 %v7997_v5  ;;  %v1818_v28 = vadd.f32 %v4688_v34, %v8000_v14 }
 0xa7d   :  { %4040 = vmatpush1.msra.mxu1 %v1825_v16  ;;  %3976 = vmatprep.subr.mxu0 %v7999_v50  ;;  %v1817_v13 = vadd.f32 %v4690_v22, %v8002_v29 }
 0xa7e   :  { %4041 = vmatprep.subr.mxu1 %v1822_v24  ;;  %3977 = vmatpush1.msra.mxu0 %v8001_v51 }
 0xa7f   :  { %4042 = vmatpush1.msra.mxu1 %v1821_v39  ;;  %3978 = vmatprep.subr.mxu0 %v8003_v62 }
 0xa80   :  { %4043 = vmatprep.subr.mxu1 %v1818_v28  ;;  %3979 = vmatpush1.msra.mxu0 %v8004_v56 }
 0xa81   :  { %4044 = vmatpush1.msra.mxu1 %v1817_v13  ;;  %3980 = vmatprep.subr.mxu0 %v8005_v8 }
 0xa82   :  { %4045 = vmatprep.subr.mxu1 %v8006_v26  ;;  %3981 = vmatpush1.msra.mxu0 %v8007_v42 }
 0xa83   :  { %4046 = vmatpush1.msra.mxu1 %v8008_v59  ;;  %4015 = vmatmul.mubr.f32.vlgmr.msra.gmra.mxu0 %v3879_v31 }
 0xa84   :  { %4047 = vmatprep.subr.mxu1 %v8009_v54 }
 0xa85   :  { %4048 = vmatpush1.msra.mxu1 %v8010_v58 }
 0xa86   :  { %4049 = vmatprep.subr.mxu1 %v8011_v63 }
 0xa87   :  { %4050 = vmatpush1.msra.mxu1 %v8012_v48 }
 0xa88   :  { %4051 = vmatprep.subr.mxu1 %v8013_v55 }
 0xa89   :  { %4052 = vmatpush1.msra.mxu1 %v8014_v11 }
 0xa8a   :  { %4086 = vmatmul.mubr.f32.vlgmr.msra.gmra.mxu1 %v3879_v31 }
 0xb43   :  { %v4016_v35 = vpop.f32.mrf.mxu0 }
 0xb44   :  { %v4017_v23 = vadd.f32 %v4016_v35, %v3948_v44 }
 0xb45   :  { %v4018_v17 = vpop.f32.mrf.mxu0 }
 0xb46   :  { %v4019_v61 = vadd.f32 %v4018_v17, %v3948_v44  ;;  %v4092_v19 = vmax.f32 %v4017_v23, 0.0 }
 0xb48   :  { %v4093_v25 = vmax.f32 %v4019_v61, 0.0 }
 0xb4a   :  { %v4098_v9 = vcombine.low %v4092_v19, %v4093_v25  ;;  %v4087_v21 = vpop.f32.mrf.mxu1 }
 0xb4b   :  { %v4088_v60 = vadd.f32 %v4087_v21, %v3948_v44 }
 0xb4c   :  { %4100 = vst [vmem:[%s7588_s6] sm:$0xff] %v4098_v9  ;;  %v4089_v1 = vpop.f32.mrf.mxu1 }
 0xb4d   :  { %v4090_v43 = vadd.f32 %v4089_v1, %v3948_v44  ;;  %v4094_v30 = vmax.f32 %v4088_v60, 0.0 }
 0xb4f   :  { %v4095_v3 = vmax.f32 %v4090_v43, 0.0 }
 0xb51   :  { %v4103_v41 = vcombine.low %v4094_v30, %v4095_v3 }
 0xb53   :  { %4232 = vst [vmem:[%s7588_s6 + $0x8] sm:$0xff] %v4103_v41 }

</bundles_post_ra>
